<compile_context>
chip_gen: v6e
topology: v6e:2x2x1
jax: 0.10.0
libtpu: 0.0.40
codegen_flags: <defaults>
</compile_context>

<pallas_src>
import functools

import jax
import jax.numpy as jnp
from jax import lax
from jax.experimental import pallas as pl
from jax.experimental.pallas import tpu as pltpu


def _round_up(x, m):
    return ((x + m - 1) // m) * m


def _make_kernel(num_layers, T, bc, Hp):
    H2 = 2 * Hp
    H3 = 3 * Hp

    def _sigmoid(v):
        # 0.5*tanh(0.5x)+0.5: one EUP push per gate slab instead of exp + reciprocal.
        return 0.5 * jnp.tanh(0.5 * v) + 0.5

    def kernel(*refs):
        # refs: x_ref, [wih_T, whh_T, bih_folded, bhn] * num_layers, wout_T, bout, out_ref
        x_ref = refs[0]                              # (T*bc, Ip)   bf16
        layer_refs = refs[1:1 + 4 * num_layers]
        wout_ref = refs[1 + 4 * num_layers]          # (Hp, Cp)     bf16
        bout_ref = refs[2 + 4 * num_layers]          # (1, Cp)      f32
        out_ref = refs[3 + 4 * num_layers]           # (bc, Cp)     f32

        def cell(gi, gh, h, bhn_b):
            # gi/gh: (bc, 3Hp) f32, h: (bc, Hp) f32.  One sigmoid over the r|z slab.
            rz = _sigmoid(gi[:, :H2] + gh[:, :H2])
            r = rz[:, :Hp]
            z = rz[:, Hp:]
            n = jnp.tanh(gi[:, H2:] + r * (gh[:, H2:] + bhn_b))
            # (1-z)*n + z*h  ==  n + z*(h-n): one fewer dependent VPU op.
            return n + z * (h - n)

        prev_seq = None                  # per-step bf16 outputs of the previous layer
        h_bf = jnp.zeros((bc, Hp), jnp.bfloat16)
        for layer in range(num_layers):
            wih_T = layer_refs[4 * layer][...]       # (in_pad, 3Hp) bf16
            whh_T = layer_refs[4 * layer + 1][...]   # (Hp, 3Hp)     bf16
            bih = layer_refs[4 * layer + 2][...]     # (1, 3Hp)      f32 (folded)
            bhn = layer_refs[4 * layer + 3][...]     # (1, Hp)       f32

            # Hoisted broadcasts (JAX does not CSE broadcast_in_dim per iteration).
            bih_b = jnp.broadcast_to(bih, (bc, H3))
            bhn_b = jnp.broadcast_to(bhn, (bc, Hp))

            if layer == 0:
                # Whole-sequence input-path GEMM: one (T*bc, Ip)@(Ip, 3Hp) MXU matmul.
                gi_all = jnp.dot(x_ref[...], wih_T,
                                 preferred_element_type=jnp.float32) + bih

            last = layer == num_layers - 1
            h = jnp.zeros((bc, Hp), jnp.float32)
            h_bf = jnp.zeros((bc, Hp), jnp.bfloat16)
            outs = []
            # T is static & small -> fully unrolled.  For layer > 0 the per-step
            # input GEMM depends only on the previous layer's step-t output, so the
            # dataflow is a layer/time wavefront the scheduler can overlap.
            for t in range(T):
                if layer == 0:
                    gi = gi_all[t * bc:(t + 1) * bc, :]
                else:
                    gi = jnp.dot(prev_seq[t], wih_T,
                                 preferred_element_type=jnp.float32) + bih_b
                if t == 0:
                    gh = jnp.zeros((bc, H3), jnp.float32)      # h0 == 0
                else:
                    gh = jnp.dot(h_bf, whh_T, preferred_element_type=jnp.float32)
                h = cell(gi, gh, h, bhn_b)
                h_bf = h.astype(jnp.bfloat16)      # MXU operand for next step / layer
                if not last:
                    outs.append(h_bf)
            if not last:
                prev_seq = outs

        # Linear head on the last time step of the top layer (lane-dense store).
        logits = jnp.dot(h_bf, wout_ref[...], preferred_element_type=jnp.float32)
        out_ref[...] = logits + jnp.broadcast_to(bout_ref[...], logits.shape)

    return kernel


def rnn_forward(x, params, *, hidden_size, num_layers, num_classes):
    """x: (B, T, I) float32 (batch_first, as in the PyTorch module)."""
    B, T, I = x.shape
    H = hidden_size
    C = num_classes

    Hp = _round_up(max(H, 128), 128)      # per-gate lane alignment
    Ip = _round_up(max(I, 128), 128)
    Cp = _round_up(max(C, 128), 128)

    # Batch: pad to f32 sublanes; with >= 16 rows, split into two parallel grid
    # chunks so both v7x TensorCores get work.
    Bp_min = _round_up(max(B, 8), 8)
    if Bp_min >= 16:
        num_chunks = 2
        Bp = _round_up(Bp_min, 16)
    else:
        num_chunks = 1
        Bp = Bp_min
    bc = Bp // num_chunks

    def pad_cols(a, n):
        return jnp.pad(a, ((0, 0), (0, n - a.shape[1])))

    def pad_rows(a, n):
        return jnp.pad(a, ((0, n - a.shape[0]), (0, 0)))

    def pad_vec(v):
        return jnp.pad(v.reshape(1, -1), ((0, 0), (0, Hp - H)))

    # Time-major, padded, chunked over batch: (num_chunks, T*bc, Ip), bf16 for MXU.
    x_tm = jnp.transpose(x.astype(jnp.float32), (1, 0, 2))            # (T, B, I)
    x_tm = jnp.pad(x_tm, ((0, 0), (0, Bp - B), (0, Ip - I)))          # (T, Bp, Ip)
    x_ck = x_tm.reshape(T, num_chunks, bc, Ip).transpose(1, 0, 2, 3)  # (nc, T, bc, Ip)
    x_flat = x_ck.reshape(num_chunks, T * bc, Ip).astype(jnp.bfloat16)

    args = [x_flat]
    for layer in range(num_layers):
        w_ih, w_hh, b_ih, b_hh = params["layers"][layer]
        in_pad = Ip if layer == 0 else Hp

        # Per-gate padded, pre-transposed bf16 weights (f32 accumulation in-kernel).
        wih_T = jnp.concatenate(
            [pad_cols(w_ih[g * H:(g + 1) * H, :].T, Hp) for g in range(3)], axis=1)
        wih_T = pad_rows(wih_T, in_pad).astype(jnp.bfloat16)
        whh_T = jnp.concatenate(
            [pad_cols(w_hh[g * H:(g + 1) * H, :].T, Hp) for g in range(3)], axis=1)
        whh_T = pad_rows(whh_T, Hp).astype(jnp.bfloat16)

        # Folded biases (kept f32: all gate math stays f32 -> safe on v5e VPU/EUP).
        # r/z columns carry b_ih + b_hh; n column carries b_in only; b_hn stays
        # separate because it sits inside the r * (W_hn h + b_hn) term.
        bih = jnp.concatenate([pad_vec(b_ih[0:H] + b_hh[0:H]),
                               pad_vec(b_ih[H:2 * H] + b_hh[H:2 * H]),
                               pad_vec(b_ih[2 * H:3 * H])], axis=1).astype(jnp.float32)
        bhn = pad_vec(b_hh[2 * H:3 * H]).astype(jnp.float32)

        args += [wih_T, whh_T, bih, bhn]

    wout_T = pad_cols(pad_rows(params["w_out"].T, Hp), Cp).astype(jnp.bfloat16)
    bout = jnp.pad(params["b_out"].reshape(1, C),
                   ((0, 0), (0, Cp - C))).astype(jnp.float32)
    args += [wout_T, bout]

    # BlockSpecs: x / out are chunked over the (parallel) batch-chunk grid axis;
    # weights & biases are whole-array blocks with a constant index map (stay
    # VMEM-resident, no re-DMA between chunks).
    in_specs = [pl.BlockSpec((None, T * bc, Ip), lambda c: (c, 0, 0))]
    in_specs += [pl.BlockSpec(a.shape, lambda c: (0, 0)) for a in args[1:]]
    out_specs = pl.BlockSpec((None, bc, Cp), lambda c: (c, 0, 0))

    # VMEM sizing from the actual buffers; clamp at 48 MiB to keep headroom on v7x.
    def nbytes(a):
        return int(a.size) * a.dtype.itemsize
    weight_bytes = 2 * sum(nbytes(a) for a in args[1:])          # double-buffered
    io_bytes = 2 * (nbytes(x_flat) // num_chunks) + 2 * bc * Cp * 4
    tmp_bytes = (2 * T * bc * 3 * Hp + (T + 4) * num_layers * bc * Hp) * 4
    vmem_limit = int(min(max(weight_bytes + io_bytes + tmp_bytes + (8 << 20),
                             16 << 20), 48 << 20))

    kernel = _make_kernel(num_layers, T, bc, Hp)
    out = pl.pallas_call(
        kernel,
        out_shape=jax.ShapeDtypeStruct((num_chunks, bc, Cp), jnp.float32),
        grid_spec=pltpu.PrefetchScalarGridSpec(
            num_scalar_prefetch=0,
            grid=(num_chunks,),
            in_specs=in_specs,
            out_specs=out_specs),
        compiler_params=pltpu.CompilerParams(
            dimension_semantics=("parallel",),
            vmem_limit_bytes=vmem_limit),
    )(*args)
    return out.reshape(num_chunks * bc, Cp)[:B, :C]


def rnn_reference(x, params, *, hidden_size, num_layers, num_classes):
    """Pure-JAX reference (same math as PyTorch GRU + Linear)."""
    B, T, I = x.shape
    H = hidden_size
    seq = x.astype(jnp.float32)
    for layer in range(num_layers):
        w_ih, w_hh, b_ih, b_hh = params["layers"][layer]

        def step(h, x_t):
            gi = x_t @ w_ih.T + b_ih
            gh = h @ w_hh.T + b_hh
            r = jax.nn.sigmoid(gi[:, :H] + gh[:, :H])
            z = jax.nn.sigmoid(gi[:, H:2 * H] + gh[:, H:2 * H])
            n = jnp.tanh(gi[:, 2 * H:] + r * gh[:, 2 * H:])
            h_new = (1 - z) * n + z * h
            return h_new, h_new

        h0 = jnp.zeros((B, H), jnp.float32)
        _, ys = lax.scan(step, h0, jnp.transpose(seq, (1, 0, 2)))
        seq = jnp.transpose(ys, (1, 0, 2))
    last = seq[:, -1, :]
    return last @ params["w_out"].T + params["b_out"]


def init_params(key, input_size, hidden_size, num_layers, num_classes):
    """Deterministic init mimicking PyTorch's U(-1/sqrt(H), 1/sqrt(H))."""
    H = hidden_size
    bound = 1.0 / jnp.sqrt(jnp.float32(H))
    layers = []
    for layer in range(num_layers):
        in_dim = input_size if layer == 0 else H
        key, k1, k2, k3, k4 = jax.random.split(key, 5)
        w_ih = jax.random.uniform(k1, (3 * H, in_dim), jnp.float32, -bound, bound)
        w_hh = jax.random.uniform(k2, (3 * H, H), jnp.float32, -bound, bound)
        b_ih = jax.random.uniform(k3, (3 * H,), jnp.float32, -bound, bound)
        b_hh = jax.random.uniform(k4, (3 * H,), jnp.float32, -bound, bound)
        layers.append((w_ih, w_hh, b_ih, b_hh))
    key, k5, k6 = jax.random.split(key, 3)
    w_out = jax.random.uniform(k5, (num_classes, H), jnp.float32, -bound, bound)
    b_out = jax.random.uniform(k6, (num_classes,), jnp.float32, -bound, bound)
    return {"layers": layers, "w_out": w_out, "b_out": b_out}


if __name__ == "__main__":
    # Small shapes consistent with the module's forward.
    batch = 4
    seq_len = 8
    input_size = 16
    hidden_size = 32
    num_layers = 2
    num_classes = 8

    key = jax.random.PRNGKey(0)
    key, kx = jax.random.split(key)
    x = jax.random.normal(kx, (batch, seq_len, input_size), jnp.float32)

    params = init_params(key, input_size, hidden_size, num_layers, num_classes)

    fwd = functools.partial(rnn_forward, hidden_size=hidden_size,
                            num_layers=num_layers, num_classes=num_classes)
    out = jax.block_until_ready(fwd(x, params))

    ref = rnn_reference(x, params, hidden_size=hidden_size,
                        num_layers=num_layers, num_classes=num_classes)
    assert out.shape == (batch, num_classes)
    # bf16 MXU operands vs. f32 reference -> relaxed tolerance.
    assert jnp.allclose(out, ref, atol=3e-2, rtol=3e-2), (
        f"max abs diff = {jnp.max(jnp.abs(out - ref))}")

    print("KERNEL_OK")
</pallas_src>

<mosaic_0001>
module attributes {stable_mosaic.version = 11 : i64} {
  func.func @kernel(%arg0: i32, %arg1: memref<1x64x128xbf16, #tpu.memory_space<vmem>>, %arg2: memref<128x384xbf16, #tpu.memory_space<vmem>>, %arg3: memref<128x384xbf16, #tpu.memory_space<vmem>>, %arg4: memref<1x384xf32, #tpu.memory_space<vmem>>, %arg5: memref<1x128xf32, #tpu.memory_space<vmem>>, %arg6: memref<128x384xbf16, #tpu.memory_space<vmem>>, %arg7: memref<128x384xbf16, #tpu.memory_space<vmem>>, %arg8: memref<1x384xf32, #tpu.memory_space<vmem>>, %arg9: memref<1x128xf32, #tpu.memory_space<vmem>>, %arg10: memref<128x128xbf16, #tpu.memory_space<vmem>>, %arg11: memref<1x128xf32, #tpu.memory_space<vmem>>, %arg12: memref<1x8x128xf32, #tpu.memory_space<vmem>>) attributes {dimension_semantics = [#tpu.dimension_semantics<parallel>], iteration_bounds = array<i64: 1>, scalar_prefetch = 0 : i64, scratch_operands = 0 : i64, tpu.core_type = #tpu.core_type<tc>, window_params = [{transform_indices = @transform_0, window_bounds = array<i64: 1, 64, 128>}, {pipeline_mode = #tpu.pipeline_mode<synchronous>, transform_indices = @transform_1, window_bounds = array<i64: 128, 384>}, {pipeline_mode = #tpu.pipeline_mode<synchronous>, transform_indices = @transform_2, window_bounds = array<i64: 128, 384>}, {pipeline_mode = #tpu.pipeline_mode<synchronous>, transform_indices = @transform_3, window_bounds = array<i64: 1, 384>}, {pipeline_mode = #tpu.pipeline_mode<synchronous>, transform_indices = @transform_4, window_bounds = array<i64: 1, 128>}, {pipeline_mode = #tpu.pipeline_mode<synchronous>, transform_indices = @transform_5, window_bounds = array<i64: 128, 384>}, {pipeline_mode = #tpu.pipeline_mode<synchronous>, transform_indices = @transform_6, window_bounds = array<i64: 128, 384>}, {pipeline_mode = #tpu.pipeline_mode<synchronous>, transform_indices = @transform_7, window_bounds = array<i64: 1, 384>}, {pipeline_mode = #tpu.pipeline_mode<synchronous>, transform_indices = @transform_8, window_bounds = array<i64: 1, 128>}, {pipeline_mode = #tpu.pipeline_mode<synchronous>, transform_indices = @transform_9, window_bounds = array<i64: 128, 128>}, {pipeline_mode = #tpu.pipeline_mode<synchronous>, transform_indices = @transform_10, window_bounds = array<i64: 1, 128>}, {transform_indices = @transform_11, window_bounds = array<i64: 1, 8, 128>}]} {
    %c0 = arith.constant 0 : index
    %c0_0 = arith.constant 0 : index
    %0 = vector.load %arg2[%c0, %c0_0] : memref<128x384xbf16, #tpu.memory_space<vmem>>, vector<128x384xbf16>
    %c0_1 = arith.constant 0 : index
    %c0_2 = arith.constant 0 : index
    %1 = vector.load %arg3[%c0_1, %c0_2] : memref<128x384xbf16, #tpu.memory_space<vmem>>, vector<128x384xbf16>
    %c0_3 = arith.constant 0 : index
    %c0_4 = arith.constant 0 : index
    %2 = vector.load %arg4[%c0_3, %c0_4] : memref<1x384xf32, #tpu.memory_space<vmem>>, vector<1x384xf32>
    %c0_5 = arith.constant 0 : index
    %c0_6 = arith.constant 0 : index
    %3 = vector.load %arg5[%c0_5, %c0_6] : memref<1x128xf32, #tpu.memory_space<vmem>>, vector<1x128xf32>
    %4 = vector.shape_cast %3 : vector<1x128xf32> to vector<1x128xf32>
    %5 = vector.broadcast %4 : vector<1x128xf32> to vector<8x128xf32>
    %c0_7 = arith.constant 0 : index
    %c0_8 = arith.constant 0 : index
    %c0_9 = arith.constant 0 : index
    %6 = vector.load %arg1[%c0_7, %c0_8, %c0_9] : memref<1x64x128xbf16, #tpu.memory_space<vmem>>, vector<1x64x128xbf16>
    %7 = vector.shape_cast %6 : vector<1x64x128xbf16> to vector<64x128xbf16>
    %cst = arith.constant dense<0.000000e+00> : vector<64x384xf32>
    %8 = tpu.matmul %7, %0, %cst {dimension_numbers = #tpu.dot_dimension_numbers<[1], [0], [0], [1], [0, 0, 1, 1], [], []>} : vector<64x128xbf16>, vector<128x384xbf16>, vector<64x384xf32> -> vector<64x384xf32>
    %9 = vector.broadcast %2 : vector<1x384xf32> to vector<64x384xf32>
    %10 = arith.addf %8, %9 : vector<64x384xf32>
    %cst_10 = arith.constant 0.000000e+00 : f32
    %11 = vector.broadcast %cst_10 : f32 to vector<8x128xf32>
    %12 = vector.extract_strided_slice %10 {offsets = [0, 0], sizes = [8, 384], strides = [1, 1]} : vector<64x384xf32> to vector<8x384xf32>
    %cst_11 = arith.constant 0.000000e+00 : f32
    %13 = vector.broadcast %cst_11 : f32 to vector<8x384xf32>
    %14 = vector.extract_strided_slice %12 {offsets = [0, 0], sizes = [8, 256], strides = [1, 1]} : vector<8x384xf32> to vector<8x256xf32>
    %15 = vector.extract_strided_slice %13 {offsets = [0, 0], sizes = [8, 256], strides = [1, 1]} : vector<8x384xf32> to vector<8x256xf32>
    %16 = arith.addf %14, %15 : vector<8x256xf32>
    %cst_12 = arith.constant 5.000000e-01 : f32
    %17 = vector.broadcast %cst_12 : f32 to vector<8x256xf32>
    %18 = arith.mulf %17, %16 : vector<8x256xf32>
    %19 = math.tanh %18 : vector<8x256xf32>
    %cst_13 = arith.constant 5.000000e-01 : f32
    %20 = vector.broadcast %cst_13 : f32 to vector<8x256xf32>
    %21 = arith.mulf %20, %19 : vector<8x256xf32>
    %cst_14 = arith.constant 5.000000e-01 : f32
    %22 = vector.broadcast %cst_14 : f32 to vector<8x256xf32>
    %23 = arith.addf %21, %22 : vector<8x256xf32>
    %24 = vector.extract_strided_slice %23 {offsets = [0, 0], sizes = [8, 128], strides = [1, 1]} : vector<8x256xf32> to vector<8x128xf32>
    %25 = vector.extract_strided_slice %23 {offsets = [0, 128], sizes = [8, 128], strides = [1, 1]} : vector<8x256xf32> to vector<8x128xf32>
    %26 = vector.extract_strided_slice %12 {offsets = [0, 256], sizes = [8, 128], strides = [1, 1]} : vector<8x384xf32> to vector<8x128xf32>
    %27 = vector.extract_strided_slice %13 {offsets = [0, 256], sizes = [8, 128], strides = [1, 1]} : vector<8x384xf32> to vector<8x128xf32>
    %28 = arith.addf %27, %5 : vector<8x128xf32>
    %29 = arith.mulf %24, %28 : vector<8x128xf32>
    %30 = arith.addf %26, %29 : vector<8x128xf32>
    %31 = math.tanh %30 : vector<8x128xf32>
    %32 = arith.subf %11, %31 : vector<8x128xf32>
    %33 = arith.mulf %25, %32 : vector<8x128xf32>
    %34 = arith.addf %31, %33 : vector<8x128xf32>
    %35 = arith.truncf %34 : vector<8x128xf32> to vector<8x128xbf16>
    %36 = vector.extract_strided_slice %10 {offsets = [8, 0], sizes = [8, 384], strides = [1, 1]} : vector<64x384xf32> to vector<8x384xf32>
    %cst_15 = arith.constant dense<0.000000e+00> : vector<8x384xf32>
    %37 = tpu.matmul %35, %1, %cst_15 {dimension_numbers = #tpu.dot_dimension_numbers<[1], [0], [0], [1], [0, 0, 1, 1], [], []>} : vector<8x128xbf16>, vector<128x384xbf16>, vector<8x384xf32> -> vector<8x384xf32>
    %38 = vector.extract_strided_slice %36 {offsets = [0, 0], sizes = [8, 256], strides = [1, 1]} : vector<8x384xf32> to vector<8x256xf32>
    %39 = vector.extract_strided_slice %37 {offsets = [0, 0], sizes = [8, 256], strides = [1, 1]} : vector<8x384xf32> to vector<8x256xf32>
    %40 = arith.addf %38, %39 : vector<8x256xf32>
    %cst_16 = arith.constant 5.000000e-01 : f32
    %41 = vector.broadcast %cst_16 : f32 to vector<8x256xf32>
    %42 = arith.mulf %41, %40 : vector<8x256xf32>
    %43 = math.tanh %42 : vector<8x256xf32>
    %cst_17 = arith.constant 5.000000e-01 : f32
    %44 = vector.broadcast %cst_17 : f32 to vector<8x256xf32>
    %45 = arith.mulf %44, %43 : vector<8x256xf32>
    %cst_18 = arith.constant 5.000000e-01 : f32
    %46 = vector.broadcast %cst_18 : f32 to vector<8x256xf32>
    %47 = arith.addf %45, %46 : vector<8x256xf32>
    %48 = vector.extract_strided_slice %47 {offsets = [0, 0], sizes = [8, 128], strides = [1, 1]} : vector<8x256xf32> to vector<8x128xf32>
    %49 = vector.extract_strided_slice %47 {offsets = [0, 128], sizes = [8, 128], strides = [1, 1]} : vector<8x256xf32> to vector<8x128xf32>
    %50 = vector.extract_strided_slice %36 {offsets = [0, 256], sizes = [8, 128], strides = [1, 1]} : vector<8x384xf32> to vector<8x128xf32>
    %51 = vector.extract_strided_slice %37 {offsets = [0, 256], sizes = [8, 128], strides = [1, 1]} : vector<8x384xf32> to vector<8x128xf32>
    %52 = arith.addf %51, %5 : vector<8x128xf32>
    %53 = arith.mulf %48, %52 : vector<8x128xf32>
    %54 = arith.addf %50, %53 : vector<8x128xf32>
    %55 = math.tanh %54 : vector<8x128xf32>
    %56 = arith.subf %34, %55 : vector<8x128xf32>
    %57 = arith.mulf %49, %56 : vector<8x128xf32>
    %58 = arith.addf %55, %57 : vector<8x128xf32>
    %59 = arith.truncf %58 : vector<8x128xf32> to vector<8x128xbf16>
    %60 = vector.extract_strided_slice %10 {offsets = [16, 0], sizes = [8, 384], strides = [1, 1]} : vector<64x384xf32> to vector<8x384xf32>
    %cst_19 = arith.constant dense<0.000000e+00> : vector<8x384xf32>
    %61 = tpu.matmul %59, %1, %cst_19 {dimension_numbers = #tpu.dot_dimension_numbers<[1], [0], [0], [1], [0, 0, 1, 1], [], []>} : vector<8x128xbf16>, vector<128x384xbf16>, vector<8x384xf32> -> vector<8x384xf32>
    %62 = vector.extract_strided_slice %60 {offsets = [0, 0], sizes = [8, 256], strides = [1, 1]} : vector<8x384xf32> to vector<8x256xf32>
    %63 = vector.extract_strided_slice %61 {offsets = [0, 0], sizes = [8, 256], strides = [1, 1]} : vector<8x384xf32> to vector<8x256xf32>
    %64 = arith.addf %62, %63 : vector<8x256xf32>
    %cst_20 = arith.constant 5.000000e-01 : f32
    %65 = vector.broadcast %cst_20 : f32 to vector<8x256xf32>
    %66 = arith.mulf %65, %64 : vector<8x256xf32>
    %67 = math.tanh %66 : vector<8x256xf32>
    %cst_21 = arith.constant 5.000000e-01 : f32
    %68 = vector.broadcast %cst_21 : f32 to vector<8x256xf32>
    %69 = arith.mulf %68, %67 : vector<8x256xf32>
    %cst_22 = arith.constant 5.000000e-01 : f32
    %70 = vector.broadcast %cst_22 : f32 to vector<8x256xf32>
    %71 = arith.addf %69, %70 : vector<8x256xf32>
    %72 = vector.extract_strided_slice %71 {offsets = [0, 0], sizes = [8, 128], strides = [1, 1]} : vector<8x256xf32> to vector<8x128xf32>
    %73 = vector.extract_strided_slice %71 {offsets = [0, 128], sizes = [8, 128], strides = [1, 1]} : vector<8x256xf32> to vector<8x128xf32>
    %74 = vector.extract_strided_slice %60 {offsets = [0, 256], sizes = [8, 128], strides = [1, 1]} : vector<8x384xf32> to vector<8x128xf32>
    %75 = vector.extract_strided_slice %61 {offsets = [0, 256], sizes = [8, 128], strides = [1, 1]} : vector<8x384xf32> to vector<8x128xf32>
    %76 = arith.addf %75, %5 : vector<8x128xf32>
    %77 = arith.mulf %72, %76 : vector<8x128xf32>
    %78 = arith.addf %74, %77 : vector<8x128xf32>
    %79 = math.tanh %78 : vector<8x128xf32>
    %80 = arith.subf %58, %79 : vector<8x128xf32>
    %81 = arith.mulf %73, %80 : vector<8x128xf32>
    %82 = arith.addf %79, %81 : vector<8x128xf32>
    %83 = arith.truncf %82 : vector<8x128xf32> to vector<8x128xbf16>
    %84 = vector.extract_strided_slice %10 {offsets = [24, 0], sizes = [8, 384], strides = [1, 1]} : vector<64x384xf32> to vector<8x384xf32>
    %cst_23 = arith.constant dense<0.000000e+00> : vector<8x384xf32>
    %85 = tpu.matmul %83, %1, %cst_23 {dimension_numbers = #tpu.dot_dimension_numbers<[1], [0], [0], [1], [0, 0, 1, 1], [], []>} : vector<8x128xbf16>, vector<128x384xbf16>, vector<8x384xf32> -> vector<8x384xf32>
    %86 = vector.extract_strided_slice %84 {offsets = [0, 0], sizes = [8, 256], strides = [1, 1]} : vector<8x384xf32> to vector<8x256xf32>
    %87 = vector.extract_strided_slice %85 {offsets = [0, 0], sizes = [8, 256], strides = [1, 1]} : vector<8x384xf32> to vector<8x256xf32>
    %88 = arith.addf %86, %87 : vector<8x256xf32>
    %cst_24 = arith.constant 5.000000e-01 : f32
    %89 = vector.broadcast %cst_24 : f32 to vector<8x256xf32>
    %90 = arith.mulf %89, %88 : vector<8x256xf32>
    %91 = math.tanh %90 : vector<8x256xf32>
    %cst_25 = arith.constant 5.000000e-01 : f32
    %92 = vector.broadcast %cst_25 : f32 to vector<8x256xf32>
    %93 = arith.mulf %92, %91 : vector<8x256xf32>
    %cst_26 = arith.constant 5.000000e-01 : f32
    %94 = vector.broadcast %cst_26 : f32 to vector<8x256xf32>
    %95 = arith.addf %93, %94 : vector<8x256xf32>
    %96 = vector.extract_strided_slice %95 {offsets = [0, 0], sizes = [8, 128], strides = [1, 1]} : vector<8x256xf32> to vector<8x128xf32>
    %97 = vector.extract_strided_slice %95 {offsets = [0, 128], sizes = [8, 128], strides = [1, 1]} : vector<8x256xf32> to vector<8x128xf32>
    %98 = vector.extract_strided_slice %84 {offsets = [0, 256], sizes = [8, 128], strides = [1, 1]} : vector<8x384xf32> to vector<8x128xf32>
    %99 = vector.extract_strided_slice %85 {offsets = [0, 256], sizes = [8, 128], strides = [1, 1]} : vector<8x384xf32> to vector<8x128xf32>
    %100 = arith.addf %99, %5 : vector<8x128xf32>
    %101 = arith.mulf %96, %100 : vector<8x128xf32>
    %102 = arith.addf %98, %101 : vector<8x128xf32>
    %103 = math.tanh %102 : vector<8x128xf32>
    %104 = arith.subf %82, %103 : vector<8x128xf32>
    %105 = arith.mulf %97, %104 : vector<8x128xf32>
    %106 = arith.addf %103, %105 : vector<8x128xf32>
    %107 = arith.truncf %106 : vector<8x128xf32> to vector<8x128xbf16>
    %108 = vector.extract_strided_slice %10 {offsets = [32, 0], sizes = [8, 384], strides = [1, 1]} : vector<64x384xf32> to vector<8x384xf32>
    %cst_27 = arith.constant dense<0.000000e+00> : vector<8x384xf32>
    %109 = tpu.matmul %107, %1, %cst_27 {dimension_numbers = #tpu.dot_dimension_numbers<[1], [0], [0], [1], [0, 0, 1, 1], [], []>} : vector<8x128xbf16>, vector<128x384xbf16>, vector<8x384xf32> -> vector<8x384xf32>
    %110 = vector.extract_strided_slice %108 {offsets = [0, 0], sizes = [8, 256], strides = [1, 1]} : vector<8x384xf32> to vector<8x256xf32>
    %111 = vector.extract_strided_slice %109 {offsets = [0, 0], sizes = [8, 256], strides = [1, 1]} : vector<8x384xf32> to vector<8x256xf32>
    %112 = arith.addf %110, %111 : vector<8x256xf32>
    %cst_28 = arith.constant 5.000000e-01 : f32
    %113 = vector.broadcast %cst_28 : f32 to vector<8x256xf32>
    %114 = arith.mulf %113, %112 : vector<8x256xf32>
    %115 = math.tanh %114 : vector<8x256xf32>
    %cst_29 = arith.constant 5.000000e-01 : f32
    %116 = vector.broadcast %cst_29 : f32 to vector<8x256xf32>
    %117 = arith.mulf %116, %115 : vector<8x256xf32>
    %cst_30 = arith.constant 5.000000e-01 : f32
    %118 = vector.broadcast %cst_30 : f32 to vector<8x256xf32>
    %119 = arith.addf %117, %118 : vector<8x256xf32>
    %120 = vector.extract_strided_slice %119 {offsets = [0, 0], sizes = [8, 128], strides = [1, 1]} : vector<8x256xf32> to vector<8x128xf32>
    %121 = vector.extract_strided_slice %119 {offsets = [0, 128], sizes = [8, 128], strides = [1, 1]} : vector<8x256xf32> to vector<8x128xf32>
    %122 = vector.extract_strided_slice %108 {offsets = [0, 256], sizes = [8, 128], strides = [1, 1]} : vector<8x384xf32> to vector<8x128xf32>
    %123 = vector.extract_strided_slice %109 {offsets = [0, 256], sizes = [8, 128], strides = [1, 1]} : vector<8x384xf32> to vector<8x128xf32>
    %124 = arith.addf %123, %5 : vector<8x128xf32>
    %125 = arith.mulf %120, %124 : vector<8x128xf32>
    %126 = arith.addf %122, %125 : vector<8x128xf32>
    %127 = math.tanh %126 : vector<8x128xf32>
    %128 = arith.subf %106, %127 : vector<8x128xf32>
    %129 = arith.mulf %121, %128 : vector<8x128xf32>
    %130 = arith.addf %127, %129 : vector<8x128xf32>
    %131 = arith.truncf %130 : vector<8x128xf32> to vector<8x128xbf16>
    %132 = vector.extract_strided_slice %10 {offsets = [40, 0], sizes = [8, 384], strides = [1, 1]} : vector<64x384xf32> to vector<8x384xf32>
    %cst_31 = arith.constant dense<0.000000e+00> : vector<8x384xf32>
    %133 = tpu.matmul %131, %1, %cst_31 {dimension_numbers = #tpu.dot_dimension_numbers<[1], [0], [0], [1], [0, 0, 1, 1], [], []>} : vector<8x128xbf16>, vector<128x384xbf16>, vector<8x384xf32> -> vector<8x384xf32>
    %134 = vector.extract_strided_slice %132 {offsets = [0, 0], sizes = [8, 256], strides = [1, 1]} : vector<8x384xf32> to vector<8x256xf32>
    %135 = vector.extract_strided_slice %133 {offsets = [0, 0], sizes = [8, 256], strides = [1, 1]} : vector<8x384xf32> to vector<8x256xf32>
    %136 = arith.addf %134, %135 : vector<8x256xf32>
    %cst_32 = arith.constant 5.000000e-01 : f32
    %137 = vector.broadcast %cst_32 : f32 to vector<8x256xf32>
    %138 = arith.mulf %137, %136 : vector<8x256xf32>
    %139 = math.tanh %138 : vector<8x256xf32>
    %cst_33 = arith.constant 5.000000e-01 : f32
    %140 = vector.broadcast %cst_33 : f32 to vector<8x256xf32>
    %141 = arith.mulf %140, %139 : vector<8x256xf32>
    %cst_34 = arith.constant 5.000000e-01 : f32
    %142 = vector.broadcast %cst_34 : f32 to vector<8x256xf32>
    %143 = arith.addf %141, %142 : vector<8x256xf32>
    %144 = vector.extract_strided_slice %143 {offsets = [0, 0], sizes = [8, 128], strides = [1, 1]} : vector<8x256xf32> to vector<8x128xf32>
    %145 = vector.extract_strided_slice %143 {offsets = [0, 128], sizes = [8, 128], strides = [1, 1]} : vector<8x256xf32> to vector<8x128xf32>
    %146 = vector.extract_strided_slice %132 {offsets = [0, 256], sizes = [8, 128], strides = [1, 1]} : vector<8x384xf32> to vector<8x128xf32>
    %147 = vector.extract_strided_slice %133 {offsets = [0, 256], sizes = [8, 128], strides = [1, 1]} : vector<8x384xf32> to vector<8x128xf32>
    %148 = arith.addf %147, %5 : vector<8x128xf32>
    %149 = arith.mulf %144, %148 : vector<8x128xf32>
    %150 = arith.addf %146, %149 : vector<8x128xf32>
    %151 = math.tanh %150 : vector<8x128xf32>
    %152 = arith.subf %130, %151 : vector<8x128xf32>
    %153 = arith.mulf %145, %152 : vector<8x128xf32>
    %154 = arith.addf %151, %153 : vector<8x128xf32>
    %155 = arith.truncf %154 : vector<8x128xf32> to vector<8x128xbf16>
    %156 = vector.extract_strided_slice %10 {offsets = [48, 0], sizes = [8, 384], strides = [1, 1]} : vector<64x384xf32> to vector<8x384xf32>
    %cst_35 = arith.constant dense<0.000000e+00> : vector<8x384xf32>
    %157 = tpu.matmul %155, %1, %cst_35 {dimension_numbers = #tpu.dot_dimension_numbers<[1], [0], [0], [1], [0, 0, 1, 1], [], []>} : vector<8x128xbf16>, vector<128x384xbf16>, vector<8x384xf32> -> vector<8x384xf32>
    %158 = vector.extract_strided_slice %156 {offsets = [0, 0], sizes = [8, 256], strides = [1, 1]} : vector<8x384xf32> to vector<8x256xf32>
    %159 = vector.extract_strided_slice %157 {offsets = [0, 0], sizes = [8, 256], strides = [1, 1]} : vector<8x384xf32> to vector<8x256xf32>
    %160 = arith.addf %158, %159 : vector<8x256xf32>
    %cst_36 = arith.constant 5.000000e-01 : f32
    %161 = vector.broadcast %cst_36 : f32 to vector<8x256xf32>
    %162 = arith.mulf %161, %160 : vector<8x256xf32>
    %163 = math.tanh %162 : vector<8x256xf32>
    %cst_37 = arith.constant 5.000000e-01 : f32
    %164 = vector.broadcast %cst_37 : f32 to vector<8x256xf32>
    %165 = arith.mulf %164, %163 : vector<8x256xf32>
    %cst_38 = arith.constant 5.000000e-01 : f32
    %166 = vector.broadcast %cst_38 : f32 to vector<8x256xf32>
    %167 = arith.addf %165, %166 : vector<8x256xf32>
    %168 = vector.extract_strided_slice %167 {offsets = [0, 0], sizes = [8, 128], strides = [1, 1]} : vector<8x256xf32> to vector<8x128xf32>
    %169 = vector.extract_strided_slice %167 {offsets = [0, 128], sizes = [8, 128], strides = [1, 1]} : vector<8x256xf32> to vector<8x128xf32>
    %170 = vector.extract_strided_slice %156 {offsets = [0, 256], sizes = [8, 128], strides = [1, 1]} : vector<8x384xf32> to vector<8x128xf32>
    %171 = vector.extract_strided_slice %157 {offsets = [0, 256], sizes = [8, 128], strides = [1, 1]} : vector<8x384xf32> to vector<8x128xf32>
    %172 = arith.addf %171, %5 : vector<8x128xf32>
    %173 = arith.mulf %168, %172 : vector<8x128xf32>
    %174 = arith.addf %170, %173 : vector<8x128xf32>
    %175 = math.tanh %174 : vector<8x128xf32>
    %176 = arith.subf %154, %175 : vector<8x128xf32>
    %177 = arith.mulf %169, %176 : vector<8x128xf32>
    %178 = arith.addf %175, %177 : vector<8x128xf32>
    %179 = arith.truncf %178 : vector<8x128xf32> to vector<8x128xbf16>
    %180 = vector.extract_strided_slice %10 {offsets = [56, 0], sizes = [8, 384], strides = [1, 1]} : vector<64x384xf32> to vector<8x384xf32>
    %cst_39 = arith.constant dense<0.000000e+00> : vector<8x384xf32>
    %181 = tpu.matmul %179, %1, %cst_39 {dimension_numbers = #tpu.dot_dimension_numbers<[1], [0], [0], [1], [0, 0, 1, 1], [], []>} : vector<8x128xbf16>, vector<128x384xbf16>, vector<8x384xf32> -> vector<8x384xf32>
    %182 = vector.extract_strided_slice %180 {offsets = [0, 0], sizes = [8, 256], strides = [1, 1]} : vector<8x384xf32> to vector<8x256xf32>
    %183 = vector.extract_strided_slice %181 {offsets = [0, 0], sizes = [8, 256], strides = [1, 1]} : vector<8x384xf32> to vector<8x256xf32>
    %184 = arith.addf %182, %183 : vector<8x256xf32>
    %cst_40 = arith.constant 5.000000e-01 : f32
    %185 = vector.broadcast %cst_40 : f32 to vector<8x256xf32>
    %186 = arith.mulf %185, %184 : vector<8x256xf32>
    %187 = math.tanh %186 : vector<8x256xf32>
    %cst_41 = arith.constant 5.000000e-01 : f32
    %188 = vector.broadcast %cst_41 : f32 to vector<8x256xf32>
    %189 = arith.mulf %188, %187 : vector<8x256xf32>
    %cst_42 = arith.constant 5.000000e-01 : f32
    %190 = vector.broadcast %cst_42 : f32 to vector<8x256xf32>
    %191 = arith.addf %189, %190 : vector<8x256xf32>
    %192 = vector.extract_strided_slice %191 {offsets = [0, 0], sizes = [8, 128], strides = [1, 1]} : vector<8x256xf32> to vector<8x128xf32>
    %193 = vector.extract_strided_slice %191 {offsets = [0, 128], sizes = [8, 128], strides = [1, 1]} : vector<8x256xf32> to vector<8x128xf32>
    %194 = vector.extract_strided_slice %180 {offsets = [0, 256], sizes = [8, 128], strides = [1, 1]} : vector<8x384xf32> to vector<8x128xf32>
    %195 = vector.extract_strided_slice %181 {offsets = [0, 256], sizes = [8, 128], strides = [1, 1]} : vector<8x384xf32> to vector<8x128xf32>
    %196 = arith.addf %195, %5 : vector<8x128xf32>
    %197 = arith.mulf %192, %196 : vector<8x128xf32>
    %198 = arith.addf %194, %197 : vector<8x128xf32>
    %199 = math.tanh %198 : vector<8x128xf32>
    %200 = arith.subf %178, %199 : vector<8x128xf32>
    %201 = arith.mulf %193, %200 : vector<8x128xf32>
    %202 = arith.addf %199, %201 : vector<8x128xf32>
    %203 = arith.truncf %202 : vector<8x128xf32> to vector<8x128xbf16>
    %c0_43 = arith.constant 0 : index
    %c0_44 = arith.constant 0 : index
    %204 = vector.load %arg6[%c0_43, %c0_44] : memref<128x384xbf16, #tpu.memory_space<vmem>>, vector<128x384xbf16>
    %c0_45 = arith.constant 0 : index
    %c0_46 = arith.constant 0 : index
    %205 = vector.load %arg7[%c0_45, %c0_46] : memref<128x384xbf16, #tpu.memory_space<vmem>>, vector<128x384xbf16>
    %c0_47 = arith.constant 0 : index
    %c0_48 = arith.constant 0 : index
    %206 = vector.load %arg8[%c0_47, %c0_48] : memref<1x384xf32, #tpu.memory_space<vmem>>, vector<1x384xf32>
    %c0_49 = arith.constant 0 : index
    %c0_50 = arith.constant 0 : index
    %207 = vector.load %arg9[%c0_49, %c0_50] : memref<1x128xf32, #tpu.memory_space<vmem>>, vector<1x128xf32>
    %208 = vector.shape_cast %206 : vector<1x384xf32> to vector<1x384xf32>
    %209 = vector.broadcast %208 : vector<1x384xf32> to vector<8x384xf32>
    %210 = vector.shape_cast %207 : vector<1x128xf32> to vector<1x128xf32>
    %211 = vector.broadcast %210 : vector<1x128xf32> to vector<8x128xf32>
    %cst_51 = arith.constant 0.000000e+00 : f32
    %212 = vector.broadcast %cst_51 : f32 to vector<8x128xf32>
    %cst_52 = arith.constant dense<0.000000e+00> : vector<8x384xf32>
    %213 = tpu.matmul %35, %204, %cst_52 {dimension_numbers = #tpu.dot_dimension_numbers<[1], [0], [0], [1], [0, 0, 1, 1], [], []>} : vector<8x128xbf16>, vector<128x384xbf16>, vector<8x384xf32> -> vector<8x384xf32>
    %214 = arith.addf %213, %209 : vector<8x384xf32>
    %cst_53 = arith.constant 0.000000e+00 : f32
    %215 = vector.broadcast %cst_53 : f32 to vector<8x384xf32>
    %216 = vector.extract_strided_slice %214 {offsets = [0, 0], sizes = [8, 256], strides = [1, 1]} : vector<8x384xf32> to vector<8x256xf32>
    %217 = vector.extract_strided_slice %215 {offsets = [0, 0], sizes = [8, 256], strides = [1, 1]} : vector<8x384xf32> to vector<8x256xf32>
    %218 = arith.addf %216, %217 : vector<8x256xf32>
    %cst_54 = arith.constant 5.000000e-01 : f32
    %219 = vector.broadcast %cst_54 : f32 to vector<8x256xf32>
    %220 = arith.mulf %219, %218 : vector<8x256xf32>
    %221 = math.tanh %220 : vector<8x256xf32>
    %cst_55 = arith.constant 5.000000e-01 : f32
    %222 = vector.broadcast %cst_55 : f32 to vector<8x256xf32>
    %223 = arith.mulf %222, %221 : vector<8x256xf32>
    %cst_56 = arith.constant 5.000000e-01 : f32
    %224 = vector.broadcast %cst_56 : f32 to vector<8x256xf32>
    %225 = arith.addf %223, %224 : vector<8x256xf32>
    %226 = vector.extract_strided_slice %225 {offsets = [0, 0], sizes = [8, 128], strides = [1, 1]} : vector<8x256xf32> to vector<8x128xf32>
    %227 = vector.extract_strided_slice %225 {offsets = [0, 128], sizes = [8, 128], strides = [1, 1]} : vector<8x256xf32> to vector<8x128xf32>
    %228 = vector.extract_strided_slice %214 {offsets = [0, 256], sizes = [8, 128], strides = [1, 1]} : vector<8x384xf32> to vector<8x128xf32>
    %229 = vector.extract_strided_slice %215 {offsets = [0, 256], sizes = [8, 128], strides = [1, 1]} : vector<8x384xf32> to vector<8x128xf32>
    %230 = arith.addf %229, %211 : vector<8x128xf32>
    %231 = arith.mulf %226, %230 : vector<8x128xf32>
    %232 = arith.addf %228, %231 : vector<8x128xf32>
    %233 = math.tanh %232 : vector<8x128xf32>
    %234 = arith.subf %212, %233 : vector<8x128xf32>
    %235 = arith.mulf %227, %234 : vector<8x128xf32>
    %236 = arith.addf %233, %235 : vector<8x128xf32>
    %237 = arith.truncf %236 : vector<8x128xf32> to vector<8x128xbf16>
    %cst_57 = arith.constant dense<0.000000e+00> : vector<8x384xf32>
    %238 = tpu.matmul %59, %204, %cst_57 {dimension_numbers = #tpu.dot_dimension_numbers<[1], [0], [0], [1], [0, 0, 1, 1], [], []>} : vector<8x128xbf16>, vector<128x384xbf16>, vector<8x384xf32> -> vector<8x384xf32>
    %239 = arith.addf %238, %209 : vector<8x384xf32>
    %cst_58 = arith.constant dense<0.000000e+00> : vector<8x384xf32>
    %240 = tpu.matmul %237, %205, %cst_58 {dimension_numbers = #tpu.dot_dimension_numbers<[1], [0], [0], [1], [0, 0, 1, 1], [], []>} : vector<8x128xbf16>, vector<128x384xbf16>, vector<8x384xf32> -> vector<8x384xf32>
    %241 = vector.extract_strided_slice %239 {offsets = [0, 0], sizes = [8, 256], strides = [1, 1]} : vector<8x384xf32> to vector<8x256xf32>
    %242 = vector.extract_strided_slice %240 {offsets = [0, 0], sizes = [8, 256], strides = [1, 1]} : vector<8x384xf32> to vector<8x256xf32>
    %243 = arith.addf %241, %242 : vector<8x256xf32>
    %cst_59 = arith.constant 5.000000e-01 : f32
    %244 = vector.broadcast %cst_59 : f32 to vector<8x256xf32>
    %245 = arith.mulf %244, %243 : vector<8x256xf32>
    %246 = math.tanh %245 : vector<8x256xf32>
    %cst_60 = arith.constant 5.000000e-01 : f32
    %247 = vector.broadcast %cst_60 : f32 to vector<8x256xf32>
    %248 = arith.mulf %247, %246 : vector<8x256xf32>
    %cst_61 = arith.constant 5.000000e-01 : f32
    %249 = vector.broadcast %cst_61 : f32 to vector<8x256xf32>
    %250 = arith.addf %248, %249 : vector<8x256xf32>
    %251 = vector.extract_strided_slice %250 {offsets = [0, 0], sizes = [8, 128], strides = [1, 1]} : vector<8x256xf32> to vector<8x128xf32>
    %252 = vector.extract_strided_slice %250 {offsets = [0, 128], sizes = [8, 128], strides = [1, 1]} : vector<8x256xf32> to vector<8x128xf32>
    %253 = vector.extract_strided_slice %239 {offsets = [0, 256], sizes = [8, 128], strides = [1, 1]} : vector<8x384xf32> to vector<8x128xf32>
    %254 = vector.extract_strided_slice %240 {offsets = [0, 256], sizes = [8, 128], strides = [1, 1]} : vector<8x384xf32> to vector<8x128xf32>
    %255 = arith.addf %254, %211 : vector<8x128xf32>
    %256 = arith.mulf %251, %255 : vector<8x128xf32>
    %257 = arith.addf %253, %256 : vector<8x128xf32>
    %258 = math.tanh %257 : vector<8x128xf32>
    %259 = arith.subf %236, %258 : vector<8x128xf32>
    %260 = arith.mulf %252, %259 : vector<8x128xf32>
    %261 = arith.addf %258, %260 : vector<8x128xf32>
    %262 = arith.truncf %261 : vector<8x128xf32> to vector<8x128xbf16>
    %cst_62 = arith.constant dense<0.000000e+00> : vector<8x384xf32>
    %263 = tpu.matmul %83, %204, %cst_62 {dimension_numbers = #tpu.dot_dimension_numbers<[1], [0], [0], [1], [0, 0, 1, 1], [], []>} : vector<8x128xbf16>, vector<128x384xbf16>, vector<8x384xf32> -> vector<8x384xf32>
    %264 = arith.addf %263, %209 : vector<8x384xf32>
    %cst_63 = arith.constant dense<0.000000e+00> : vector<8x384xf32>
    %265 = tpu.matmul %262, %205, %cst_63 {dimension_numbers = #tpu.dot_dimension_numbers<[1], [0], [0], [1], [0, 0, 1, 1], [], []>} : vector<8x128xbf16>, vector<128x384xbf16>, vector<8x384xf32> -> vector<8x384xf32>
    %266 = vector.extract_strided_slice %264 {offsets = [0, 0], sizes = [8, 256], strides = [1, 1]} : vector<8x384xf32> to vector<8x256xf32>
    %267 = vector.extract_strided_slice %265 {offsets = [0, 0], sizes = [8, 256], strides = [1, 1]} : vector<8x384xf32> to vector<8x256xf32>
    %268 = arith.addf %266, %267 : vector<8x256xf32>
    %cst_64 = arith.constant 5.000000e-01 : f32
    %269 = vector.broadcast %cst_64 : f32 to vector<8x256xf32>
    %270 = arith.mulf %269, %268 : vector<8x256xf32>
    %271 = math.tanh %270 : vector<8x256xf32>
    %cst_65 = arith.constant 5.000000e-01 : f32
    %272 = vector.broadcast %cst_65 : f32 to vector<8x256xf32>
    %273 = arith.mulf %272, %271 : vector<8x256xf32>
    %cst_66 = arith.constant 5.000000e-01 : f32
    %274 = vector.broadcast %cst_66 : f32 to vector<8x256xf32>
    %275 = arith.addf %273, %274 : vector<8x256xf32>
    %276 = vector.extract_strided_slice %275 {offsets = [0, 0], sizes = [8, 128], strides = [1, 1]} : vector<8x256xf32> to vector<8x128xf32>
    %277 = vector.extract_strided_slice %275 {offsets = [0, 128], sizes = [8, 128], strides = [1, 1]} : vector<8x256xf32> to vector<8x128xf32>
    %278 = vector.extract_strided_slice %264 {offsets = [0, 256], sizes = [8, 128], strides = [1, 1]} : vector<8x384xf32> to vector<8x128xf32>
    %279 = vector.extract_strided_slice %265 {offsets = [0, 256], sizes = [8, 128], strides = [1, 1]} : vector<8x384xf32> to vector<8x128xf32>
    %280 = arith.addf %279, %211 : vector<8x128xf32>
    %281 = arith.mulf %276, %280 : vector<8x128xf32>
    %282 = arith.addf %278, %281 : vector<8x128xf32>
    %283 = math.tanh %282 : vector<8x128xf32>
    %284 = arith.subf %261, %283 : vector<8x128xf32>
    %285 = arith.mulf %277, %284 : vector<8x128xf32>
    %286 = arith.addf %283, %285 : vector<8x128xf32>
    %287 = arith.truncf %286 : vector<8x128xf32> to vector<8x128xbf16>
    %cst_67 = arith.constant dense<0.000000e+00> : vector<8x384xf32>
    %288 = tpu.matmul %107, %204, %cst_67 {dimension_numbers = #tpu.dot_dimension_numbers<[1], [0], [0], [1], [0, 0, 1, 1], [], []>} : vector<8x128xbf16>, vector<128x384xbf16>, vector<8x384xf32> -> vector<8x384xf32>
    %289 = arith.addf %288, %209 : vector<8x384xf32>
    %cst_68 = arith.constant dense<0.000000e+00> : vector<8x384xf32>
    %290 = tpu.matmul %287, %205, %cst_68 {dimension_numbers = #tpu.dot_dimension_numbers<[1], [0], [0], [1], [0, 0, 1, 1], [], []>} : vector<8x128xbf16>, vector<128x384xbf16>, vector<8x384xf32> -> vector<8x384xf32>
    %291 = vector.extract_strided_slice %289 {offsets = [0, 0], sizes = [8, 256], strides = [1, 1]} : vector<8x384xf32> to vector<8x256xf32>
    %292 = vector.extract_strided_slice %290 {offsets = [0, 0], sizes = [8, 256], strides = [1, 1]} : vector<8x384xf32> to vector<8x256xf32>
    %293 = arith.addf %291, %292 : vector<8x256xf32>
    %cst_69 = arith.constant 5.000000e-01 : f32
    %294 = vector.broadcast %cst_69 : f32 to vector<8x256xf32>
    %295 = arith.mulf %294, %293 : vector<8x256xf32>
    %296 = math.tanh %295 : vector<8x256xf32>
    %cst_70 = arith.constant 5.000000e-01 : f32
    %297 = vector.broadcast %cst_70 : f32 to vector<8x256xf32>
    %298 = arith.mulf %297, %296 : vector<8x256xf32>
    %cst_71 = arith.constant 5.000000e-01 : f32
    %299 = vector.broadcast %cst_71 : f32 to vector<8x256xf32>
    %300 = arith.addf %298, %299 : vector<8x256xf32>
    %301 = vector.extract_strided_slice %300 {offsets = [0, 0], sizes = [8, 128], strides = [1, 1]} : vector<8x256xf32> to vector<8x128xf32>
    %302 = vector.extract_strided_slice %300 {offsets = [0, 128], sizes = [8, 128], strides = [1, 1]} : vector<8x256xf32> to vector<8x128xf32>
    %303 = vector.extract_strided_slice %289 {offsets = [0, 256], sizes = [8, 128], strides = [1, 1]} : vector<8x384xf32> to vector<8x128xf32>
    %304 = vector.extract_strided_slice %290 {offsets = [0, 256], sizes = [8, 128], strides = [1, 1]} : vector<8x384xf32> to vector<8x128xf32>
    %305 = arith.addf %304, %211 : vector<8x128xf32>
    %306 = arith.mulf %301, %305 : vector<8x128xf32>
    %307 = arith.addf %303, %306 : vector<8x128xf32>
    %308 = math.tanh %307 : vector<8x128xf32>
    %309 = arith.subf %286, %308 : vector<8x128xf32>
    %310 = arith.mulf %302, %309 : vector<8x128xf32>
    %311 = arith.addf %308, %310 : vector<8x128xf32>
    %312 = arith.truncf %311 : vector<8x128xf32> to vector<8x128xbf16>
    %cst_72 = arith.constant dense<0.000000e+00> : vector<8x384xf32>
    %313 = tpu.matmul %131, %204, %cst_72 {dimension_numbers = #tpu.dot_dimension_numbers<[1], [0], [0], [1], [0, 0, 1, 1], [], []>} : vector<8x128xbf16>, vector<128x384xbf16>, vector<8x384xf32> -> vector<8x384xf32>
    %314 = arith.addf %313, %209 : vector<8x384xf32>
    %cst_73 = arith.constant dense<0.000000e+00> : vector<8x384xf32>
    %315 = tpu.matmul %312, %205, %cst_73 {dimension_numbers = #tpu.dot_dimension_numbers<[1], [0], [0], [1], [0, 0, 1, 1], [], []>} : vector<8x128xbf16>, vector<128x384xbf16>, vector<8x384xf32> -> vector<8x384xf32>
    %316 = vector.extract_strided_slice %314 {offsets = [0, 0], sizes = [8, 256], strides = [1, 1]} : vector<8x384xf32> to vector<8x256xf32>
    %317 = vector.extract_strided_slice %315 {offsets = [0, 0], sizes = [8, 256], strides = [1, 1]} : vector<8x384xf32> to vector<8x256xf32>
    %318 = arith.addf %316, %317 : vector<8x256xf32>
    %cst_74 = arith.constant 5.000000e-01 : f32
    %319 = vector.broadcast %cst_74 : f32 to vector<8x256xf32>
    %320 = arith.mulf %319, %318 : vector<8x256xf32>
    %321 = math.tanh %320 : vector<8x256xf32>
    %cst_75 = arith.constant 5.000000e-01 : f32
    %322 = vector.broadcast %cst_75 : f32 to vector<8x256xf32>
    %323 = arith.mulf %322, %321 : vector<8x256xf32>
    %cst_76 = arith.constant 5.000000e-01 : f32
    %324 = vector.broadcast %cst_76 : f32 to vector<8x256xf32>
    %325 = arith.addf %323, %324 : vector<8x256xf32>
    %326 = vector.extract_strided_slice %325 {offsets = [0, 0], sizes = [8, 128], strides = [1, 1]} : vector<8x256xf32> to vector<8x128xf32>
    %327 = vector.extract_strided_slice %325 {offsets = [0, 128], sizes = [8, 128], strides = [1, 1]} : vector<8x256xf32> to vector<8x128xf32>
    %328 = vector.extract_strided_slice %314 {offsets = [0, 256], sizes = [8, 128], strides = [1, 1]} : vector<8x384xf32> to vector<8x128xf32>
    %329 = vector.extract_strided_slice %315 {offsets = [0, 256], sizes = [8, 128], strides = [1, 1]} : vector<8x384xf32> to vector<8x128xf32>
    %330 = arith.addf %329, %211 : vector<8x128xf32>
    %331 = arith.mulf %326, %330 : vector<8x128xf32>
    %332 = arith.addf %328, %331 : vector<8x128xf32>
    %333 = math.tanh %332 : vector<8x128xf32>
    %334 = arith.subf %311, %333 : vector<8x128xf32>
    %335 = arith.mulf %327, %334 : vector<8x128xf32>
    %336 = arith.addf %333, %335 : vector<8x128xf32>
    %337 = arith.truncf %336 : vector<8x128xf32> to vector<8x128xbf16>
    %cst_77 = arith.constant dense<0.000000e+00> : vector<8x384xf32>
    %338 = tpu.matmul %155, %204, %cst_77 {dimension_numbers = #tpu.dot_dimension_numbers<[1], [0], [0], [1], [0, 0, 1, 1], [], []>} : vector<8x128xbf16>, vector<128x384xbf16>, vector<8x384xf32> -> vector<8x384xf32>
    %339 = arith.addf %338, %209 : vector<8x384xf32>
    %cst_78 = arith.constant dense<0.000000e+00> : vector<8x384xf32>
    %340 = tpu.matmul %337, %205, %cst_78 {dimension_numbers = #tpu.dot_dimension_numbers<[1], [0], [0], [1], [0, 0, 1, 1], [], []>} : vector<8x128xbf16>, vector<128x384xbf16>, vector<8x384xf32> -> vector<8x384xf32>
    %341 = vector.extract_strided_slice %339 {offsets = [0, 0], sizes = [8, 256], strides = [1, 1]} : vector<8x384xf32> to vector<8x256xf32>
    %342 = vector.extract_strided_slice %340 {offsets = [0, 0], sizes = [8, 256], strides = [1, 1]} : vector<8x384xf32> to vector<8x256xf32>
    %343 = arith.addf %341, %342 : vector<8x256xf32>
    %cst_79 = arith.constant 5.000000e-01 : f32
    %344 = vector.broadcast %cst_79 : f32 to vector<8x256xf32>
    %345 = arith.mulf %344, %343 : vector<8x256xf32>
    %346 = math.tanh %345 : vector<8x256xf32>
    %cst_80 = arith.constant 5.000000e-01 : f32
    %347 = vector.broadcast %cst_80 : f32 to vector<8x256xf32>
    %348 = arith.mulf %347, %346 : vector<8x256xf32>
    %cst_81 = arith.constant 5.000000e-01 : f32
    %349 = vector.broadcast %cst_81 : f32 to vector<8x256xf32>
    %350 = arith.addf %348, %349 : vector<8x256xf32>
    %351 = vector.extract_strided_slice %350 {offsets = [0, 0], sizes = [8, 128], strides = [1, 1]} : vector<8x256xf32> to vector<8x128xf32>
    %352 = vector.extract_strided_slice %350 {offsets = [0, 128], sizes = [8, 128], strides = [1, 1]} : vector<8x256xf32> to vector<8x128xf32>
    %353 = vector.extract_strided_slice %339 {offsets = [0, 256], sizes = [8, 128], strides = [1, 1]} : vector<8x384xf32> to vector<8x128xf32>
    %354 = vector.extract_strided_slice %340 {offsets = [0, 256], sizes = [8, 128], strides = [1, 1]} : vector<8x384xf32> to vector<8x128xf32>
    %355 = arith.addf %354, %211 : vector<8x128xf32>
    %356 = arith.mulf %351, %355 : vector<8x128xf32>
    %357 = arith.addf %353, %356 : vector<8x128xf32>
    %358 = math.tanh %357 : vector<8x128xf32>
    %359 = arith.subf %336, %358 : vector<8x128xf32>
    %360 = arith.mulf %352, %359 : vector<8x128xf32>
    %361 = arith.addf %358, %360 : vector<8x128xf32>
    %362 = arith.truncf %361 : vector<8x128xf32> to vector<8x128xbf16>
    %cst_82 = arith.constant dense<0.000000e+00> : vector<8x384xf32>
    %363 = tpu.matmul %179, %204, %cst_82 {dimension_numbers = #tpu.dot_dimension_numbers<[1], [0], [0], [1], [0, 0, 1, 1], [], []>} : vector<8x128xbf16>, vector<128x384xbf16>, vector<8x384xf32> -> vector<8x384xf32>
    %364 = arith.addf %363, %209 : vector<8x384xf32>
    %cst_83 = arith.constant dense<0.000000e+00> : vector<8x384xf32>
    %365 = tpu.matmul %362, %205, %cst_83 {dimension_numbers = #tpu.dot_dimension_numbers<[1], [0], [0], [1], [0, 0, 1, 1], [], []>} : vector<8x128xbf16>, vector<128x384xbf16>, vector<8x384xf32> -> vector<8x384xf32>
    %366 = vector.extract_strided_slice %364 {offsets = [0, 0], sizes = [8, 256], strides = [1, 1]} : vector<8x384xf32> to vector<8x256xf32>
    %367 = vector.extract_strided_slice %365 {offsets = [0, 0], sizes = [8, 256], strides = [1, 1]} : vector<8x384xf32> to vector<8x256xf32>
    %368 = arith.addf %366, %367 : vector<8x256xf32>
    %cst_84 = arith.constant 5.000000e-01 : f32
    %369 = vector.broadcast %cst_84 : f32 to vector<8x256xf32>
    %370 = arith.mulf %369, %368 : vector<8x256xf32>
    %371 = math.tanh %370 : vector<8x256xf32>
    %cst_85 = arith.constant 5.000000e-01 : f32
    %372 = vector.broadcast %cst_85 : f32 to vector<8x256xf32>
    %373 = arith.mulf %372, %371 : vector<8x256xf32>
    %cst_86 = arith.constant 5.000000e-01 : f32
    %374 = vector.broadcast %cst_86 : f32 to vector<8x256xf32>
    %375 = arith.addf %373, %374 : vector<8x256xf32>
    %376 = vector.extract_strided_slice %375 {offsets = [0, 0], sizes = [8, 128], strides = [1, 1]} : vector<8x256xf32> to vector<8x128xf32>
    %377 = vector.extract_strided_slice %375 {offsets = [0, 128], sizes = [8, 128], strides = [1, 1]} : vector<8x256xf32> to vector<8x128xf32>
    %378 = vector.extract_strided_slice %364 {offsets = [0, 256], sizes = [8, 128], strides = [1, 1]} : vector<8x384xf32> to vector<8x128xf32>
    %379 = vector.extract_strided_slice %365 {offsets = [0, 256], sizes = [8, 128], strides = [1, 1]} : vector<8x384xf32> to vector<8x128xf32>
    %380 = arith.addf %379, %211 : vector<8x128xf32>
    %381 = arith.mulf %376, %380 : vector<8x128xf32>
    %382 = arith.addf %378, %381 : vector<8x128xf32>
    %383 = math.tanh %382 : vector<8x128xf32>
    %384 = arith.subf %361, %383 : vector<8x128xf32>
    %385 = arith.mulf %377, %384 : vector<8x128xf32>
    %386 = arith.addf %383, %385 : vector<8x128xf32>
    %387 = arith.truncf %386 : vector<8x128xf32> to vector<8x128xbf16>
    %cst_87 = arith.constant dense<0.000000e+00> : vector<8x384xf32>
    %388 = tpu.matmul %203, %204, %cst_87 {dimension_numbers = #tpu.dot_dimension_numbers<[1], [0], [0], [1], [0, 0, 1, 1], [], []>} : vector<8x128xbf16>, vector<128x384xbf16>, vector<8x384xf32> -> vector<8x384xf32>
    %389 = arith.addf %388, %209 : vector<8x384xf32>
    %cst_88 = arith.constant dense<0.000000e+00> : vector<8x384xf32>
    %390 = tpu.matmul %387, %205, %cst_88 {dimension_numbers = #tpu.dot_dimension_numbers<[1], [0], [0], [1], [0, 0, 1, 1], [], []>} : vector<8x128xbf16>, vector<128x384xbf16>, vector<8x384xf32> -> vector<8x384xf32>
    %391 = vector.extract_strided_slice %389 {offsets = [0, 0], sizes = [8, 256], strides = [1, 1]} : vector<8x384xf32> to vector<8x256xf32>
    %392 = vector.extract_strided_slice %390 {offsets = [0, 0], sizes = [8, 256], strides = [1, 1]} : vector<8x384xf32> to vector<8x256xf32>
    %393 = arith.addf %391, %392 : vector<8x256xf32>
    %cst_89 = arith.constant 5.000000e-01 : f32
    %394 = vector.broadcast %cst_89 : f32 to vector<8x256xf32>
    %395 = arith.mulf %394, %393 : vector<8x256xf32>
    %396 = math.tanh %395 : vector<8x256xf32>
    %cst_90 = arith.constant 5.000000e-01 : f32
    %397 = vector.broadcast %cst_90 : f32 to vector<8x256xf32>
    %398 = arith.mulf %397, %396 : vector<8x256xf32>
    %cst_91 = arith.constant 5.000000e-01 : f32
    %399 = vector.broadcast %cst_91 : f32 to vector<8x256xf32>
    %400 = arith.addf %398, %399 : vector<8x256xf32>
    %401 = vector.extract_strided_slice %400 {offsets = [0, 0], sizes = [8, 128], strides = [1, 1]} : vector<8x256xf32> to vector<8x128xf32>
    %402 = vector.extract_strided_slice %400 {offsets = [0, 128], sizes = [8, 128], strides = [1, 1]} : vector<8x256xf32> to vector<8x128xf32>
    %403 = vector.extract_strided_slice %389 {offsets = [0, 256], sizes = [8, 128], strides = [1, 1]} : vector<8x384xf32> to vector<8x128xf32>
    %404 = vector.extract_strided_slice %390 {offsets = [0, 256], sizes = [8, 128], strides = [1, 1]} : vector<8x384xf32> to vector<8x128xf32>
    %405 = arith.addf %404, %211 : vector<8x128xf32>
    %406 = arith.mulf %401, %405 : vector<8x128xf32>
    %407 = arith.addf %403, %406 : vector<8x128xf32>
    %408 = math.tanh %407 : vector<8x128xf32>
    %409 = arith.subf %386, %408 : vector<8x128xf32>
    %410 = arith.mulf %402, %409 : vector<8x128xf32>
    %411 = arith.addf %408, %410 : vector<8x128xf32>
    %412 = arith.truncf %411 : vector<8x128xf32> to vector<8x128xbf16>
    %c0_92 = arith.constant 0 : index
    %c0_93 = arith.constant 0 : index
    %413 = vector.load %arg10[%c0_92, %c0_93] : memref<128x128xbf16, #tpu.memory_space<vmem>>, vector<128x128xbf16>
    %cst_94 = arith.constant dense<0.000000e+00> : vector<8x128xf32>
    %414 = tpu.matmul %412, %413, %cst_94 {dimension_numbers = #tpu.dot_dimension_numbers<[1], [0], [0], [1], [0, 0, 1, 1], [], []>} : vector<8x128xbf16>, vector<128x128xbf16>, vector<8x128xf32> -> vector<8x128xf32>
    %c0_95 = arith.constant 0 : index
    %c0_96 = arith.constant 0 : index
    %415 = vector.load %arg11[%c0_95, %c0_96] : memref<1x128xf32, #tpu.memory_space<vmem>>, vector<1x128xf32>
    %416 = vector.shape_cast %415 : vector<1x128xf32> to vector<1x128xf32>
    %417 = vector.broadcast %416 : vector<1x128xf32> to vector<8x128xf32>
    %418 = arith.addf %414, %417 : vector<8x128xf32>
    %c0_97 = arith.constant 0 : index
    %c0_98 = arith.constant 0 : index
    %c0_99 = arith.constant 0 : index
    %419 = vector.load %arg12[%c0_97, %c0_98, %c0_99] : memref<1x8x128xf32, #tpu.memory_space<vmem>>, vector<1x8x128xf32>
    %420 = vector.shape_cast %419 : vector<1x8x128xf32> to vector<8x128xf32>
    %421 = vector.shape_cast %418 : vector<8x128xf32> to vector<1x8x128xf32>
    tpu.vector_store %arg12[%c0_97, %c0_98, %c0_99], %421 {strides = array<i32>} : memref<1x8x128xf32, #tpu.memory_space<vmem>>, vector<1x8x128xf32>,
    return
  }
  func.func @transform_0(%arg0: i32) -> (i32, i32, i32) {
    %c0_i32 = arith.constant 0 : i32
    %c0_i32_0 = arith.constant 0 : i32
    %c0_i32_1 = arith.constant 0 : i32
    return %arg0, %c0_i32, %c0_i32_0 : i32, i32, i32
  }
  func.func @transform_1(%arg0: i32) -> (i32, i32) {
    %c0_i32 = arith.constant 0 : i32
    %c0_i32_0 = arith.constant 0 : i32
    %c0_i32_1 = arith.constant 0 : i32
    return %c0_i32, %c0_i32_0 : i32, i32
  }
  func.func @transform_2(%arg0: i32) -> (i32, i32) {
    %c0_i32 = arith.constant 0 : i32
    %c0_i32_0 = arith.constant 0 : i32
    %c0_i32_1 = arith.constant 0 : i32
    return %c0_i32, %c0_i32_0 : i32, i32
  }
  func.func @transform_3(%arg0: i32) -> (i32, i32) {
    %c0_i32 = arith.constant 0 : i32
    %c0_i32_0 = arith.constant 0 : i32
    %c0_i32_1 = arith.constant 0 : i32
    return %c0_i32, %c0_i32_0 : i32, i32
  }
  func.func @transform_4(%arg0: i32) -> (i32, i32) {
    %c0_i32 = arith.constant 0 : i32
    %c0_i32_0 = arith.constant 0 : i32
    %c0_i32_1 = arith.constant 0 : i32
    return %c0_i32, %c0_i32_0 : i32, i32
  }
  func.func @transform_5(%arg0: i32) -> (i32, i32) {
    %c0_i32 = arith.constant 0 : i32
    %c0_i32_0 = arith.constant 0 : i32
    %c0_i32_1 = arith.constant 0 : i32
    return %c0_i32, %c0_i32_0 : i32, i32
  }
  func.func @transform_6(%arg0: i32) -> (i32, i32) {
    %c0_i32 = arith.constant 0 : i32
    %c0_i32_0 = arith.constant 0 : i32
    %c0_i32_1 = arith.constant 0 : i32
    return %c0_i32, %c0_i32_0 : i32, i32
  }
  func.func @transform_7(%arg0: i32) -> (i32, i32) {
    %c0_i32 = arith.constant 0 : i32
    %c0_i32_0 = arith.constant 0 : i32
    %c0_i32_1 = arith.constant 0 : i32
    return %c0_i32, %c0_i32_0 : i32, i32
  }
  func.func @transform_8(%arg0: i32) -> (i32, i32) {
    %c0_i32 = arith.constant 0 : i32
    %c0_i32_0 = arith.constant 0 : i32
    %c0_i32_1 = arith.constant 0 : i32
    return %c0_i32, %c0_i32_0 : i32, i32
  }
  func.func @transform_9(%arg0: i32) -> (i32, i32) {
    %c0_i32 = arith.constant 0 : i32
    %c0_i32_0 = arith.constant 0 : i32
    %c0_i32_1 = arith.constant 0 : i32
    return %c0_i32, %c0_i32_0 : i32, i32
  }
  func.func @transform_10(%arg0: i32) -> (i32, i32) {
    %c0_i32 = arith.constant 0 : i32
    %c0_i32_0 = arith.constant 0 : i32
    %c0_i32_1 = arith.constant 0 : i32
    return %c0_i32, %c0_i32_0 : i32, i32
  }
  func.func @transform_11(%arg0: i32) -> (i32, i32, i32) {
    %c0_i32 = arith.constant 0 : i32
    %c0_i32_0 = arith.constant 0 : i32
    %c0_i32_1 = arith.constant 0 : i32
    return %arg0, %c0_i32, %c0_i32_0 : i32, i32, i32
  }
}

</mosaic_0001>

<bundles_post_ra>
// kernel: tpu_custom_call.1
= control target key start
LH: loop header
LB: loop body
LE: loop exit
PB: predicated region body
PF: predicated region fallthrough
CT: control target
= control target key end

     0   :  { %16 = vsyncpa [#allocation3], 0  ;;  %s5919_s0 = inlined_call_operand.hbm [shape: bf16[1,64,128], index: 0, kind: input, shape index: {}]   ;;  %s5920_s1 = inlined_call_operand.hbm [shape: bf16[128,384], index: 1, kind: input, shape index: {}]   ;;  %s5921_s2 = inlined_call_operand.hbm [shape: bf16[128,384], index: 2, kind: input, shape index: {}]   ;;  %s5922_s3 = inlined_call_operand.vmem [shape: f32[1,384], index: 3, kind: input, shape index: {}]   ;;  %s5923_s4 = inlined_call_operand.vmem [shape: f32[1,128], index: 4, kind: input, shape index: {}]   ;;  %s5924_s5 = inlined_call_operand.hbm [shape: bf16[128,384], index: 5, kind: input, shape index: {}]   ;;  %s5925_s6 = inlined_call_operand.hbm [shape: bf16[128,384], index: 6, kind: input, shape index: {}]   ;;  %s5926_s7 = inlined_call_operand.vmem [shape: f32[1,384], index: 7, kind: input, shape index: {}]   ;;  %s5927_s8 = inlined_call_operand.vmem [shape: f32[1,128], index: 8, kind: input, shape index: {}]   ;;  %s5928_s9 = inlined_call_operand.hbm [shape: bf16[128,128], index: 9, kind: input, shape index: {}]   ;;  %s5929_s10 = inlined_call_operand.vmem [shape: f32[1,128], index: 10, kind: input, shape index: {}]   ;;  %s5930_s11 = inlined_call_operand.hbm [shape: f32[1,8,128], index: 11, kind: output, shape index: {}]  }
   0x1   :  { %17 = vsyncpa [#allocation6], 0 }
   0x2   :  { %18 = vsyncpa [#allocation9], 0 }
   0x3   :  { %19 = vsyncpa [#allocation12], 0 }
   0x4   :  { %20 = vsyncpa [#allocation4], 0  ;;  %s4444_s17 = smov [#allocation5]  }
   0x5   :  { %s38_s18 = sshll.u32 %s4444_s17, 4  ;;  %s39_s18 = int_to_ptr.vmem [resolvable:$true] %s38_s18 }
   0x6   :  { %s4302_s19 = scalar_lea.vmem %s39_s18, 3072  ;;  %p4307_p1 = scmp.lt.s32.totalorder %s39_s18, %s39_s18 }
   0x7   :  { %p4303_p0 = scmp.ne.s32.totalorder %s39_s18, %s4302_s19  ;;  %p4308_p2 = scmp.lt.s32.totalorder %s4302_s19, %s4302_s19 }
   0x9   :  { %p4309_p3 = por %p4308_p2, %p4307_p1 }
   0xb   :  { %p4310_p4 = pnand %p4309_p3, %p4303_p0 }
   0xd   :  { %4313 = shalt.err (!%p4310_p4)
}
   0xe   :  { %s4445_s20 = smov 192   ;;  %s4446_s21 = smov 12  }
   0xf   :  { %44 = dma.hbm_to_vmem [thread:$0]  %s5920_s1, 3072, %s39_s18, [#allocation6], %s4445_s20, %s4445_s20, %s4446_s21  }
  0x10   :  { %s4447_s24 = smov [#allocation8]   ;;  %s4448_s26 = smov [#allocation2]  }
  0x11   :  { %s66_s25 = sshll.u32 %s4447_s24, 4  ;;  %s26_s27 = sshll.u32 %s4448_s26, 4  ;;  %s67_s25 = int_to_ptr.vmem [resolvable:$true] %s66_s25  ;;  %s27_s27 = int_to_ptr.vmem [resolvable:$true] %s26_s27 }
  0x12   :  { %s4322_s28 = scalar_lea.vmem %s67_s25, 3072  ;;  %p4327_p6 = scmp.lt.s32.totalorder %s67_s25, %s67_s25 }
  0x13   :  { %p4323_p5 = scmp.ne.s32.totalorder %s67_s25, %s4322_s28  ;;  %p4328_p7 = scmp.lt.s32.totalorder %s4322_s28, %s4322_s28 }
  0x15   :  { %p4329_p8 = por %p4328_p7, %p4327_p6 }
  0x17   :  { %p4330_p9 = pnand %p4329_p8, %p4323_p5 }
  0x19   :  { %4333 = shalt.err (!%p4330_p9)
}
  0x1a   :  { %72 = dma.hbm_to_vmem [thread:$0]  %s5924_s5, 3072, %s67_s25, [#allocation9], %s4445_s20, %s4445_s20, %s4446_s21  }
  0x1b   :  { %s4342_s1 = scalar_lea.vmem %s27_s27, 512  ;;  %p4347_p11 = scmp.lt.s32.totalorder %s27_s27, %s27_s27 }
  0x1c   :  { %p4343_p10 = scmp.ne.s32.totalorder %s27_s27, %s4342_s1  ;;  %p4348_p12 = scmp.lt.s32.totalorder %s4342_s1, %s4342_s1 }
  0x1e   :  { %p4349_p13 = por %p4348_p12, %p4347_p11 }
  0x20   :  { %p4350_p0 = pnand %p4349_p13, %p4343_p10 }
  0x22   :  { %4353 = shalt.err (!%p4350_p0)
}
  0x23   :  { %s4449_s12 = smov 64   ;;  %s4450_s13 = smov 4  }
  0x24   :  { %32 = dma.hbm_to_vmem [thread:$0]  %s5919_s0, 512, %s27_s27, [#allocation3], %s4449_s12, %s4449_s12, %s4450_s13  }
  0x25   :  { %s4451_s16 = smov [#allocation7]   ;;  %s4452_s5 = smov [#allocation10]  }
  0x26   :  { %s50_s17 = sshll.u32 %s4451_s16, 4  ;;  %s78_s18 = sshll.u32 %s4452_s5, 4  ;;  %s51_s17 = int_to_ptr.vmem [resolvable:$true] %s50_s17  ;;  %s79_s18 = int_to_ptr.vmem [resolvable:$true] %s78_s18 }
  0x27   :  { %s4362_s19 = scalar_lea.vmem %s51_s17, 3072  ;;  %p4367_p2 = scmp.lt.s32.totalorder %s51_s17, %s51_s17 }
  0x28   :  { %p4363_p1 = scmp.ne.s32.totalorder %s51_s17, %s4362_s19  ;;  %p4368_p3 = scmp.lt.s32.totalorder %s4362_s19, %s4362_s19 }
  0x2a   :  { %p4369_p4 = por %p4368_p3, %p4367_p2 }
  0x2c   :  { %p4370_p5 = pnand %p4369_p4, %p4363_p1 }
  0x2e   :  { %4373 = shalt.err (!%p4370_p5)
}
  0x2f   :  { %56 = dma.hbm_to_vmem [thread:$0]  %s5921_s2, 3072, %s51_s17, [#allocation6], %s4445_s20, %s4445_s20, %s4446_s21  }
  0x30   :  { %s4382_s0 = scalar_lea.vmem %s79_s18, 3072  ;;  %p4387_p7 = scmp.lt.s32.totalorder %s79_s18, %s79_s18 }
  0x31   :  { %p4383_p6 = scmp.ne.s32.totalorder %s79_s18, %s4382_s0  ;;  %p4388_p8 = scmp.lt.s32.totalorder %s4382_s0, %s4382_s0 }
  0x33   :  { %p4389_p9 = por %p4388_p8, %p4387_p7 }
  0x35   :  { %p4390_p10 = pnand %p4389_p9, %p4383_p6 }
  0x37   :  { %4393 = shalt.err (!%p4390_p10)
}
  0x38   :  { %84 = dma.hbm_to_vmem [thread:$0]  %s5925_s6, 3072, %s79_s18, [#allocation9], %s4445_s20, %s4445_s20, %s4446_s21  }
  0x39   :  { %s4453_s26 = smov [#allocation11]  }
  0x3a   :  { %s94_s27 = sshll.u32 %s4453_s26, 4  ;;  %s95_s27 = int_to_ptr.vmem [resolvable:$true] %s94_s27 }
  0x3b   :  { %s4402_s28 = scalar_lea.vmem %s95_s27, 1024  ;;  %p4407_p12 = scmp.lt.s32.totalorder %s95_s27, %s95_s27 }
  0x3c   :  { %p4403_p11 = scmp.ne.s32.totalorder %s95_s27, %s4402_s28  ;;  %p4408_p13 = scmp.lt.s32.totalorder %s4402_s28, %s4402_s28 }
  0x3e   :  { %p4409_p0 = por %p4408_p13, %p4407_p12 }
  0x40   :  { %p4410_p1 = pnand %p4409_p0, %p4403_p11 }
  0x42   :  { %4413 = shalt.err (!%p4410_p1)
}
  0x43   :  { %100 = dma.hbm_to_vmem [thread:$0]  %s5928_s9, 1024, %s95_s27, [#allocation12], %s4449_s12, %s4449_s12, %s4450_s13  }
  0x44   :  { %4434 = dma.done.wait [#allocation3], 512  }
  0x45   :  { %4435 = vsyncadd [#allocation3], 4294966784 }
  0x46   :  { %4436 = dma.done.wait [#allocation6], 6144  }
  0x47   :  { %4437 = vsyncadd [#allocation6], 4294961152 }
  0x48   :  { %4438 = dma.done.wait [#allocation9], 6144  }
  0x49   :  { %4439 = vsyncadd [#allocation9], 4294961152 }
  0x4a   :  { %4440 = dma.done.wait [#allocation12], 1024  }
  0x4b   :  { %4441 = vsyncadd [#allocation12], 4294966272  ;;  %v5934_v0 = vmov 0   ;;  %v4008_v1 = vld [vmem:[#allocation5 + $0xac] ss:$12 sps:$4 sm:$0xff]   ;;  %v4037_v16 = vld [vmem:[#allocation2] sm:$0xff]   ;;  %v203_v54 = vlaneseq }
  0x4c   :  { %402 = vmatprep.mubr.bf16.mxu0 %v5934_v0  ;;  %v4010_v2 = vld [vmem:[#allocation5 + $0xa8] ss:$12 sps:$4 sm:$0xff]   ;;  %370 = vmatprep.subr.bf16.mxu0 %v4008_v1  ;;  %v4013_v4 = vld [vmem:[#allocation5 + $0x90] ss:$12 sps:$4 sm:$0xff]   ;;  %v4016_v7 = vld [vmem:[#allocation5 + $0x78] ss:$12 sps:$4 sm:$0xff]  }
  0x4d   :  { %v4011_v3 = vld [vmem:[#allocation5 + $0x94] ss:$12 sps:$4 sm:$0xff]   ;;  %371 = vmatpush1.bf16.msra.mxu0 %v4010_v2  ;;  %v4014_v5 = vld [vmem:[#allocation5 + $0x7c] ss:$12 sps:$4 sm:$0xff]   ;;  %v4017_v8 = vld [vmem:[#allocation5 + $0x64] ss:$12 sps:$4 sm:$0xff]   ;;  %3526 = vmatprep.mubr.bf16.mxu1 %v4037_v16 }
  0x4e   :  { %372 = vmatprep.subr.bf16.mxu0 %v4011_v3  ;;  %v4020_v6 = vld [vmem:[#allocation5 + $0xb0] ss:$12 sps:$4 sm:$0xff]   ;;  %v4024_v9 = vld [vmem:[#allocation5 + $0x98] ss:$12 sps:$4 sm:$0xff]   ;;  %v4028_v10 = vld [vmem:[#allocation5 + $0x80] ss:$12 sps:$4 sm:$0xff]  }
  0x4f   :  { %3510 = vmatprep.subr.bf16.mxu1 %v4020_v6  ;;  %v4019_v11 = vld [vmem:[#allocation5 + $0x60] ss:$12 sps:$4 sm:$0xff]   ;;  %v4023_v13 = vld [vmem:[#allocation5 + $0x48] ss:$12 sps:$4 sm:$0xff]   ;;  %v4036_v17 = vld [vmem:[#allocation5 + $0x50] ss:$12 sps:$4 sm:$0xff]  }
  0x50   :  { %3511 = vmatpush3.bf16.msra.mxu1 %v4020_v6  ;;  %v4021_v12 = vld [vmem:[#allocation5 + $0x4c] ss:$12 sps:$4 sm:$0xff]   ;;  %v4032_v14 = vld [vmem:[#allocation5 + $0x68] ss:$12 sps:$4 sm:$0xff]   ;;  %v4027_v18 = vld [vmem:[#allocation5 + $0x30] ss:$12 sps:$4 sm:$0xff]  }
  0x51   :  { %373 = vmatpush1.bf16.msra.mxu0 %v4013_v4  ;;  %3512 = vmatprep.subr.bf16.mxu1 %v4024_v9  ;;  %v4025_v15 = vld [vmem:[#allocation5 + $0x34] ss:$12 sps:$4 sm:$0xff]   ;;  %v4029_v19 = vld [vmem:[#allocation5 + $0x1c] ss:$12 sps:$4 sm:$0xff]   ;;  %v4038_v20 = vld [vmem:[#allocation5 + $0x38] ss:$12 sps:$4 sm:$0xff]  }
  0x52   :  { %374 = vmatprep.subr.bf16.mxu0 %v4014_v5  ;;  %v4031_v21 = vld [vmem:[#allocation5 + $0x18] ss:$12 sps:$4 sm:$0xff]   ;;  %v4039_v23 = vld [vmem:[#allocation5 + $0x20] ss:$12 sps:$4 sm:$0xff]   ;;  %v4040_v25 = vld [vmem:[#allocation5 + $0x8] ss:$12 sps:$4 sm:$0xff]  }
  0x53   :  { %v4033_v22 = vld [vmem:[#allocation5 + $0x4] ss:$12 sps:$4 sm:$0xff]   ;;  %v4035_v24 = vld [vmem:[#allocation5] ss:$12 sps:$4 sm:$0xff]   ;;  %v4559_v28 = vld [vmem:[#allocation7 + $0xa8] ss:$12 sps:$4 sm:$0xff]  }
  0x54   :  { %3513 = vmatpush3.bf16.msra.mxu1 %v4024_v9  ;;  %v4041_v26 = vld [vmem:[#allocation2 + $0x8] sm:$0xff]   ;;  %v4561_v29 = vld [vmem:[#allocation7 + $0xb0] ss:$12 sps:$4 sm:$0xff]   ;;  %v5936_v30 = vmov 0.0   ;;  %v4567_v31 = vld [vmem:[#allocation7 + $0x94] ss:$12 sps:$4 sm:$0xff]  }
  0x55   :  { %375 = vmatpush1.bf16.msra.mxu0 %v4016_v7  ;;  %3514 = vmatprep.subr.bf16.mxu1 %v4028_v10  ;;  %v4557_v27 = vld [vmem:[#allocation7 + $0xac] ss:$12 sps:$4 sm:$0xff]   ;;  %v4570_v32 = vld [vmem:[#allocation7 + $0x90] ss:$12 sps:$4 sm:$0xff]   ;;  %v4592_v40 = vld [vmem:[#allocation7 + $0x68] ss:$12 sps:$4 sm:$0xff]  }
  0x56   :  { %376 = vmatprep.subr.bf16.mxu0 %v4017_v8  ;;  %v4572_v33 = vld [vmem:[#allocation7 + $0x98] ss:$12 sps:$4 sm:$0xff]   ;;  %v4577_v34 = vld [vmem:[#allocation7 + $0x7c] ss:$12 sps:$4 sm:$0xff]   ;;  %v4582_v36 = vld [vmem:[#allocation7 + $0x80] ss:$12 sps:$4 sm:$0xff]  }
  0x57   :  { %v4580_v35 = vld [vmem:[#allocation7 + $0x78] ss:$12 sps:$4 sm:$0xff]   ;;  %v4054_v37 = vld [vmem:[#allocation2 + $0x10] sm:$0xff]   ;;  %v4590_v39 = vld [vmem:[#allocation7 + $0x60] ss:$12 sps:$4 sm:$0xff]   ;;  %vm4456_vm0 = vmmov 0  }
  0x58   :  { %3515 = vmatpush3.bf16.msra.mxu1 %v4028_v10  ;;  %v4587_v38 = vld [vmem:[#allocation7 + $0x64] ss:$12 sps:$4 sm:$0xff]   ;;  %v4598_v41 = vld [vmem:[#allocation7 + $0x4c] ss:$12 sps:$4 sm:$0xff]   ;;  %v4601_v42 = vld [vmem:[#allocation7 + $0x48] ss:$12 sps:$4 sm:$0xff]  }
  0x59   :  { %377 = vmatpush1.bf16.msra.mxu0 %v4019_v11  ;;  %3516 = vmatprep.subr.bf16.mxu1 %v4032_v14  ;;  %v4603_v43 = vld [vmem:[#allocation7 + $0x50] ss:$12 sps:$4 sm:$0xff]   ;;  %v4608_v45 = vld [vmem:[#allocation7 + $0x34] ss:$12 sps:$4 sm:$0xff]   ;;  %v4613_v47 = vld [vmem:[#allocation7 + $0x38] ss:$12 sps:$4 sm:$0xff]  }
  0x5a   :  { %378 = vmatprep.subr.bf16.mxu0 %v4021_v12  ;;  %v4063_v44 = vld [vmem:[#allocation2 + $0x18] sm:$0xff]   ;;  %v4624_v50 = vld [vmem:[#allocation7 + $0x20] ss:$12 sps:$4 sm:$0xff]   ;;  %v4627_v51 = vld [vmem:[#allocation7 + $0x4] ss:$12 sps:$4 sm:$0xff]   ;;  %v4643_v55 = vshrl.u32 %v203_v54, 7 }
  0x5b   :  { %v4611_v46 = vld [vmem:[#allocation7 + $0x30] ss:$12 sps:$4 sm:$0xff]   ;;  %v4622_v49 = vld [vmem:[#allocation7 + $0x18] ss:$12 sps:$4 sm:$0xff]   ;;  %v4631_v52 = vld [vmem:[#allocation7] ss:$12 sps:$4 sm:$0xff]  }
  0x5c   :  { %3517 = vmatpush3.bf16.msra.mxu1 %v4032_v14  ;;  %v4619_v48 = vld [vmem:[#allocation7 + $0x1c] ss:$12 sps:$4 sm:$0xff]   ;;  %5981 = vst [vmem:[#allocation19_spill] sm:$0xff] %v4643_v55  ;;  %v5933_v56 = vsub.s32 0, %v4643_v55  ;;  %v186_v57 = vld [vmem:[%s5922_s3] sm:$0x7] }
  0x5d   :  { %379 = vmatpush1.bf16.msra.mxu0 %v4023_v13  ;;  %3518 = vmatprep.subr.bf16.mxu1 %v4036_v17  ;;  %v4633_v53 = vld [vmem:[#allocation7 + $0x8] ss:$12 sps:$4 sm:$0xff]   ;;  %v5932_v62 = vsub.s32 1, %v4643_v55  ;;  %v5931_v3 = vsub.s32 2, %v4643_v55  ;;  %v4670_v9 = vld [vmem:[%s5923_s4] ss:$0 sm:$0xff] }
  0x5e   :  { %380 = vmatprep.subr.bf16.mxu0 %v4025_v15  ;;  %v4651_v58 = vrot.slane %v186_v57, %v5933_v56  ;;  %s4457_s16 = smov [#allocation13]  }
  0x5f   :  { %v4657_v63 = vrot.slane %v186_v57, %v5932_v62  ;;  %v4665_v8 = vrot.slane %v186_v57, %v5931_v3  ;;  %s3168_s17 = sshll.u32 %s4457_s16, 4  ;;  %s3169_s17 = int_to_ptr.vmem [resolvable:$true] %s3168_s17 }
  0x60   :  { %3519 = vmatpush3.bf16.msra.mxu1 %v4036_v17  ;;  %s4414_s5 = scalar_lea.vmem %s3169_s17, 128  ;;  %p4419_p3 = scmp.lt.s32.totalorder %s3169_s17, %s3169_s17 }
  0x61   :  { %381 = vmatpush1.bf16.msra.mxu0 %v4027_v18  ;;  %3520 = vmatprep.subr.bf16.mxu1 %v4038_v20  ;;  %p4415_p2 = scmp.ne.s32.totalorder %s3169_s17, %s4414_s5  ;;  %p4420_p4 = scmp.lt.s32.totalorder %s4414_s5, %s4414_s5 }
  0x62   :  { %382 = vmatprep.subr.bf16.mxu0 %v4029_v19 }
  0x63   :  { %p4421_p5 = por %p4420_p4, %p4419_p3 }
  0x64   :  { %3521 = vmatpush3.bf16.msra.mxu1 %v4038_v20 }
  0x65   :  { %383 = vmatpush1.bf16.msra.mxu0 %v4031_v21  ;;  %3522 = vmatprep.subr.bf16.mxu1 %v4039_v23  ;;  %p4422_p6 = pnand %p4421_p5, %p4415_p2 }
  0x66   :  { %384 = vmatprep.subr.bf16.mxu0 %v4033_v22 }
  0x68   :  { %3523 = vmatpush3.bf16.msra.mxu1 %v4039_v23 }
  0x69   :  { %385 = vmatpush1.bf16.msra.mxu0 %v4035_v24  ;;  %3524 = vmatprep.subr.bf16.mxu1 %v4040_v25 }
  0x6a   :  { %654 = vmatprep.subr.bf16.mxu0 %v4557_v27 }
  0x6c   :  { %403 = vmatmul.mubr.bf16.vlgmr.msra.gmra.mxu0 %v4037_v16  ;;  %3525 = vmatpush3.bf16.msra.mxu1 %v4040_v25 }
  0x6d   :  { %412 = vmatprep.mubr.bf16.mxu0 %v5934_v0  ;;  %3534 = vmatprep.subr.bf16.mxu1 %v5936_v30 }
  0x6e   :  { %655 = vmatpush1.bf16.msra.mxu0 %v4559_v28 }
  0x6f   :  { %3527 = vmatmul.mubr.bf16.vlgmr.msra.gmra.mxu1 %v4041_v26  ;;  %656 = vmatprep.subr.bf16.mxu0 %v4567_v31 }
  0x70   :  { %3535 = vmatpush3.bf16.msra.mxu1 %v4561_v29  ;;  %3530 = vmatprep.mubr.bf16.mxu1 %v4054_v37 }
  0x71   :  { %3536 = vmatprep.subr.bf16.mxu1 %v5936_v30 }
  0x72   :  { %657 = vmatpush1.bf16.msra.mxu0 %v4570_v32 }
  0x73   :  { %658 = vmatprep.subr.bf16.mxu0 %v4577_v34 }
  0x74   :  { %413 = vmatmul.mubr.bf16.gmra.mxu0 %v4041_v26  ;;  %3537 = vmatpush3.bf16.msra.mxu1 %v4572_v33 }
  0x75   :  { %422 = vmatprep.mubr.bf16.mxu0 %v5934_v0  ;;  %3538 = vmatprep.subr.bf16.mxu1 %v5936_v30 }
  0x76   :  { %659 = vmatpush1.bf16.msra.mxu0 %v4580_v35 }
  0x77   :  { %660 = vmatprep.subr.bf16.mxu0 %v4587_v38  ;;  %3531 = vmatmul.mubr.bf16.gmra.mxu1 %v4063_v44 }
  0x78   :  { %3539 = vmatpush3.bf16.msra.mxu1 %v4582_v36  ;;  %3550 = vmatprep.mubr.msk.bf16.mxu1 %vm4456_vm0, %v5936_v30 }
  0x79   :  { %3540 = vmatprep.subr.bf16.mxu1 %v5936_v30 }
  0x7a   :  { %661 = vmatpush1.bf16.msra.mxu0 %v4590_v39 }
  0x7b   :  { %662 = vmatprep.subr.bf16.mxu0 %v4598_v41 }
  0x7c   :  { %423 = vmatmul.mubr.bf16.gmra.mxu0 %v4054_v37  ;;  %3541 = vmatpush3.bf16.msra.mxu1 %v4592_v40 }
  0x7d   :  { %432 = vmatprep.mubr.bf16.mxu0 %v5934_v0  ;;  %3542 = vmatprep.subr.bf16.mxu1 %v5936_v30 }
  0x7e   :  { %663 = vmatpush1.bf16.msra.mxu0 %v4601_v42 }
  0x7f   :  { %664 = vmatprep.subr.bf16.mxu0 %v4608_v45 }
  0x80   :  { %3543 = vmatpush3.bf16.msra.mxu1 %v4603_v43 }
  0x81   :  { %3544 = vmatprep.subr.bf16.mxu1 %v5936_v30 }
  0x82   :  { %665 = vmatpush1.bf16.msra.mxu0 %v4611_v46 }
  0x83   :  { %666 = vmatprep.subr.bf16.mxu0 %v4619_v48 }
  0x84   :  { %433 = vmatmul.mubr.bf16.gmra.mxu0 %v4063_v44  ;;  %3545 = vmatpush3.bf16.msra.mxu1 %v4613_v47 }
  0x85   :  { %686 = vmatprep.mubr.bf16.mxu0 %v5934_v0  ;;  %3546 = vmatprep.subr.bf16.mxu1 %v5936_v30 }
  0x86   :  { %667 = vmatpush1.bf16.msra.mxu0 %v4622_v49 }
  0x87   :  { %668 = vmatprep.subr.bf16.mxu0 %v4627_v51 }
  0x88   :  { %3547 = vmatpush3.bf16.msra.mxu1 %v4624_v50 }
  0x89   :  { %3548 = vmatprep.subr.bf16.mxu1 %v5936_v30 }
  0x8a   :  { %669 = vmatpush1.bf16.msra.mxu0 %v4631_v52 }
  0x8b   :  { %753 = vmatprep.subr.bf16.mxu0 %v4557_v27 }
  0x8c   :  { %3549 = vmatpush3.bf16.msra.mxu1 %v4633_v53 }
  0x8d   :  { %3554 = vmatprep.subr.bf16.mxu1 %v5936_v30 }
 0x12c   :  { %v404_v59 = vpop.f32.mrf.mxu0 }
 0x12d   :  { %v405_v60 = vadd.f32 %v404_v59, %v4651_v58 }
 0x12e   :  { %v406_v1 = vpop.f32.mrf.mxu0 }
 0x12f   :  { %v510_v61 = vmul.f32 0.5, %v405_v60  ;;  %v407_v2 = vadd.f32 %v406_v1, %v4657_v63  ;;  %v4661_v6 = vpop.f32.mrf.mxu1 }
 0x130   :  { %v408_v23 = vpop.f32.mrf.mxu0 }
 0x131   :  { %4148 = vtanh.f32 %v510_v61  ;;  %v511_v4 = vmul.f32 0.5, %v407_v2  ;;  %v477_v11 = vpop.f32.mrf.mxu1 }
 0x132   :  { %v478_v12 = vadd.f32 %v477_v11, %v4665_v8  ;;  %v410_v24 = vpop.f32.mrf.mxu0 }
 0x133   :  { %4150 = vtanh.f32 %v511_v4  ;;  %v4729_v59 = vpop.f32.mrf.mxu1 }
 0x134   :  { %v4717_v25 = vpop.f32.mrf.mxu0 }
 0x135   :  { %v480_v61 = vpop.f32.mrf.mxu1 }
 0x136   :  { %v4719_v26 = vpop.f32.mrf.mxu0 }
 0x137   :  { %v4735_v2 = vpop.f32.mrf.mxu1 }
 0x138   :  { %v4721_v37 = vpop.f32.mrf.mxu0 }
 0x13a   :  { %v4723_v44 = vpop.f32.mrf.mxu0 }
 0x13c   :  { %v4725_v54 = vpop.f32.mrf.mxu0 }
 0x13e   :  { %v4149_v5 = vpop.eup %4148  ;;  %v4727_v57 = vpop.f32.mrf.mxu0 }
 0x13f   :  { %v514_v7 = vmul.f32 0.5, %v4149_v5  ;;  %v4739_v5 = vpop.f32.mrf.mxu1 }
 0x140   :  { %v4151_v15 = vpop.eup %4150  ;;  %v4731_v60 = vpop.f32.mrf.mxu0 }
 0x141   :  { %v516_v10 = vadd.f32 0.5, %v514_v7  ;;  %v515_v16 = vmul.f32 0.5, %v4151_v15 }
 0x142   :  { %v4733_v1 = vpop.f32.mrf.mxu0 }
 0x143   :  { %v519_v13 = vmul.f32 %v4670_v9, %v516_v10  ;;  %v517_v18 = vadd.f32 0.5, %v515_v16  ;;  %v4743_v10 = vpop.f32.mrf.mxu1 }
 0x144   :  { %v4737_v4 = vpop.f32.mrf.mxu0  ;;  %5983 = vst [vmem:[#allocation21_spill] sm:$0xff] %v4743_v10 }
 0x145   :  { %v520_v14 = vadd.f32 %v519_v13, %v478_v12  ;;  %v4747_v12 = vpop.f32.mrf.mxu1 }
 0x146   :  { %v4741_v7 = vpop.f32.mrf.mxu0 }
 0x147   :  { %4152 = vtanh.f32 %v520_v14  ;;  %v409_v14 = vadd.f32 %v408_v23, %v4651_v58 }
 0x148   :  { %v4745_v11 = vpop.f32.mrf.mxu0 }
 0x149   :  { %5984 = vst [vmem:[#allocation22_spill] sm:$0xff] %v4745_v11 }
 0x14a   :  { %v4749_v13 = vpop.f32.mrf.mxu0 }
 0x14b   :  { %5985 = vst [vmem:[#allocation23_spill] sm:$0xff] %v4749_v13 }
 0x154   :  { %v4153_v17 = vpop.eup %4152 }
 0x155   :  { %v522_v19 = vsub.f32 0.0, %v4153_v17 }
 0x157   :  { %v523_v20 = vmul.f32 %v522_v19, %v517_v18 }
 0x159   :  { %v4674_v21 = vadd.f32 %v4153_v17, %v523_v20 }
 0x15b   :  { %v4678_v22 = vpack.c.bf16 %v4674_v21, %v4674_v21 }
 0x15d   :  { %5982 = vst [vmem:[#allocation20_spill] sm:$0xff] %v4678_v22  ;;  %687 = vmatmul.mubr.bf16.vlgmr.msra.gmra.mxu0 %v4678_v22  ;;  %3551 = vmatmul.mubr.bf16.vlgmr.msra.gmra.mxu1 %v4678_v22 }
 0x15e   :  { %754 = vmatpush1.bf16.msra.mxu0 %v4559_v28  ;;  %3555 = vmatpush3.bf16.msra.mxu1 %v4561_v29 }
 0x15f   :  { %755 = vmatprep.subr.bf16.mxu0 %v4567_v31  ;;  %3556 = vmatprep.subr.bf16.mxu1 %v5936_v30 }
 0x160   :  { %785 = vmatprep.mubr.bf16.mxu0 %v5934_v0  ;;  %3570 = vmatprep.mubr.msk.bf16.mxu1 %vm4456_vm0, %v5936_v30 }
 0x162   :  { %756 = vmatpush1.bf16.msra.mxu0 %v4570_v32  ;;  %3557 = vmatpush3.bf16.msra.mxu1 %v4572_v33 }
 0x163   :  { %757 = vmatprep.subr.bf16.mxu0 %v4577_v34  ;;  %3558 = vmatprep.subr.bf16.mxu1 %v5936_v30 }
 0x166   :  { %758 = vmatpush1.bf16.msra.mxu0 %v4580_v35  ;;  %3559 = vmatpush3.bf16.msra.mxu1 %v4582_v36 }
 0x167   :  { %759 = vmatprep.subr.bf16.mxu0 %v4587_v38  ;;  %3560 = vmatprep.subr.bf16.mxu1 %v5936_v30 }
 0x16a   :  { %760 = vmatpush1.bf16.msra.mxu0 %v4590_v39  ;;  %3561 = vmatpush3.bf16.msra.mxu1 %v4592_v40 }
 0x16b   :  { %761 = vmatprep.subr.bf16.mxu0 %v4598_v41  ;;  %3562 = vmatprep.subr.bf16.mxu1 %v5936_v30 }
 0x16e   :  { %762 = vmatpush1.bf16.msra.mxu0 %v4601_v42  ;;  %3563 = vmatpush3.bf16.msra.mxu1 %v4603_v43 }
 0x16f   :  { %763 = vmatprep.subr.bf16.mxu0 %v4608_v45  ;;  %3564 = vmatprep.subr.bf16.mxu1 %v5936_v30 }
 0x172   :  { %764 = vmatpush1.bf16.msra.mxu0 %v4611_v46  ;;  %3565 = vmatpush3.bf16.msra.mxu1 %v4613_v47 }
 0x173   :  { %765 = vmatprep.subr.bf16.mxu0 %v4619_v48  ;;  %3566 = vmatprep.subr.bf16.mxu1 %v5936_v30 }
 0x176   :  { %766 = vmatpush1.bf16.msra.mxu0 %v4622_v49  ;;  %3567 = vmatpush3.bf16.msra.mxu1 %v4624_v50 }
 0x177   :  { %767 = vmatprep.subr.bf16.mxu0 %v4627_v51  ;;  %3568 = vmatprep.subr.bf16.mxu1 %v5936_v30 }
 0x17a   :  { %768 = vmatpush1.bf16.msra.mxu0 %v4631_v52  ;;  %3569 = vmatpush3.bf16.msra.mxu1 %v4633_v53 }
 0x17b   :  { %852 = vmatprep.subr.bf16.mxu0 %v4557_v27  ;;  %3574 = vmatprep.subr.bf16.mxu1 %v5936_v30  ;;  %v411_v30 = vadd.f32 %v410_v24, %v4657_v63 }
 0x21d   :  { %v688_v15 = vpop.f32.mrf.mxu0  ;;  %v729_v16 = vpop.f32.mrf.mxu1 }
 0x21e   :  { %v735_v17 = vadd.f32 %v688_v15, %v409_v14  ;;  %v745_v23 = vadd.f32 %v4670_v9, %v729_v16  ;;  %v481_v14 = vadd.f32 %v480_v61, %v4665_v8  ;;  %v415_v61 = vadd.f32 %v4717_v25, %v4651_v58 }
 0x21f   :  { %v690_v18 = vpop.f32.mrf.mxu0  ;;  %v3552_v19 = vpop.f32.mrf.mxu1 }
 0x220   :  { %v737_v20 = vmul.f32 0.5, %v735_v17  ;;  %v736_v55 = vadd.f32 %v690_v18, %v411_v30 }
 0x221   :  { %v692_v3 = vpop.f32.mrf.mxu0  ;;  %v732_v62 = vpop.f32.mrf.mxu1 }
 0x222   :  { %4154 = vtanh.f32 %v737_v20  ;;  %v738_v10 = vmul.f32 0.5, %v736_v55 }
 0x223   :  { %v693_v56 = vpop.f32.mrf.mxu0  ;;  %v3553_v0 = vpop.f32.mrf.mxu1 }
 0x224   :  { %4156 = vtanh.f32 %v738_v10 }
 0x22f   :  { %v4155_v11 = vpop.eup %4154 }
 0x230   :  { %v741_v22 = vmul.f32 0.5, %v4155_v11 }
 0x231   :  { %v4157_v3 = vpop.eup %4156 }
 0x232   :  { %v743_v13 = vadd.f32 0.5, %v741_v22  ;;  %v742_v62 = vmul.f32 0.5, %v4157_v3  ;;  %v5986_v22 = vmov 0.0   ;;  %v417_v3 = vadd.f32 %v4719_v26, %v4657_v63 }
 0x234   :  { %v746_v15 = vmul.f32 %v745_v23, %v743_v13  ;;  %v744_v56 = vadd.f32 0.5, %v742_v62 }
 0x236   :  { %v747_v19 = vadd.f32 %v746_v15, %v481_v14 }
 0x238   :  { %4158 = vtanh.f32 %v747_v19 }
 0x245   :  { %v4159_v17 = vpop.eup %4158 }
 0x246   :  { %v749_v0 = vsub.f32 %v4674_v21, %v4159_v17  ;;  %v5987_v21 = vmov 0  }
 0x248   :  { %v750_v24 = vmul.f32 %v749_v0, %v744_v56 }
 0x24a   :  { %v4756_v30 = vadd.f32 %v4159_v17, %v750_v24 }
 0x24c   :  { %v4760_v55 = vpack.c.bf16 %v4756_v30, %v4756_v30 }
 0x24e   :  { %786 = vmatmul.mubr.bf16.vlgmr.msra.gmra.mxu0 %v4760_v55  ;;  %3571 = vmatmul.mubr.bf16.vlgmr.msra.gmra.mxu1 %v4760_v55 }
 0x24f   :  { %853 = vmatpush1.bf16.msra.mxu0 %v4559_v28  ;;  %3575 = vmatpush3.bf16.msra.mxu1 %v4561_v29 }
 0x250   :  { %854 = vmatprep.subr.bf16.mxu0 %v4567_v31  ;;  %3576 = vmatprep.subr.bf16.mxu1 %v5986_v22 }
 0x251   :  { %884 = vmatprep.mubr.bf16.mxu0 %v5987_v21  ;;  %3590 = vmatprep.mubr.msk.bf16.mxu1 %vm4456_vm0, %v5986_v22 }
 0x253   :  { %855 = vmatpush1.bf16.msra.mxu0 %v4570_v32  ;;  %3577 = vmatpush3.bf16.msra.mxu1 %v4572_v33 }
 0x254   :  { %856 = vmatprep.subr.bf16.mxu0 %v4577_v34  ;;  %3578 = vmatprep.subr.bf16.mxu1 %v5986_v22 }
 0x257   :  { %857 = vmatpush1.bf16.msra.mxu0 %v4580_v35  ;;  %3579 = vmatpush3.bf16.msra.mxu1 %v4582_v36 }
 0x258   :  { %858 = vmatprep.subr.bf16.mxu0 %v4587_v38  ;;  %3580 = vmatprep.subr.bf16.mxu1 %v5986_v22 }
 0x25b   :  { %859 = vmatpush1.bf16.msra.mxu0 %v4590_v39  ;;  %3581 = vmatpush3.bf16.msra.mxu1 %v4592_v40 }
 0x25c   :  { %860 = vmatprep.subr.bf16.mxu0 %v4598_v41  ;;  %3582 = vmatprep.subr.bf16.mxu1 %v5986_v22 }
 0x25f   :  { %861 = vmatpush1.bf16.msra.mxu0 %v4601_v42  ;;  %3583 = vmatpush3.bf16.msra.mxu1 %v4603_v43 }
 0x260   :  { %862 = vmatprep.subr.bf16.mxu0 %v4608_v45  ;;  %3584 = vmatprep.subr.bf16.mxu1 %v5986_v22 }
 0x263   :  { %863 = vmatpush1.bf16.msra.mxu0 %v4611_v46  ;;  %3585 = vmatpush3.bf16.msra.mxu1 %v4613_v47 }
 0x264   :  { %864 = vmatprep.subr.bf16.mxu0 %v4619_v48  ;;  %3586 = vmatprep.subr.bf16.mxu1 %v5986_v22 }
 0x267   :  { %865 = vmatpush1.bf16.msra.mxu0 %v4622_v49  ;;  %3587 = vmatpush3.bf16.msra.mxu1 %v4624_v50 }
 0x268   :  { %866 = vmatprep.subr.bf16.mxu0 %v4627_v51  ;;  %3588 = vmatprep.subr.bf16.mxu1 %v5986_v22 }
 0x26b   :  { %867 = vmatpush1.bf16.msra.mxu0 %v4631_v52  ;;  %3589 = vmatpush3.bf16.msra.mxu1 %v4633_v53 }
 0x26c   :  { %951 = vmatprep.subr.bf16.mxu0 %v4557_v27  ;;  %3594 = vmatprep.subr.bf16.mxu1 %v5986_v22 }
 0x30e   :  { %v787_v10 = vpop.f32.mrf.mxu0  ;;  %v828_v11 = vpop.f32.mrf.mxu1 }
 0x30f   :  { %v834_v13 = vadd.f32 %v787_v10, %v415_v61  ;;  %v844_v25 = vadd.f32 %v4670_v9, %v828_v11  ;;  %v486_v61 = vadd.f32 %v4661_v6, %v4665_v8  ;;  %v419_v6 = vadd.f32 %v4721_v37, %v4651_v58 }
 0x310   :  { %v789_v16 = vpop.f32.mrf.mxu0  ;;  %v3572_v18 = vpop.f32.mrf.mxu1 }
 0x311   :  { %v836_v20 = vmul.f32 0.5, %v834_v13  ;;  %v835_v62 = vadd.f32 %v789_v16, %v417_v3 }
 0x312   :  { %v791_v23 = vpop.f32.mrf.mxu0  ;;  %v831_v14 = vpop.f32.mrf.mxu1 }
 0x313   :  { %4160 = vtanh.f32 %v836_v20  ;;  %v837_v17 = vmul.f32 0.5, %v835_v62 }
 0x314   :  { %v792_v15 = vpop.f32.mrf.mxu0  ;;  %v3573_v19 = vpop.f32.mrf.mxu1 }
 0x315   :  { %4162 = vtanh.f32 %v837_v17 }
 0x320   :  { %v4161_v56 = vpop.eup %4160 }
 0x321   :  { %v840_v0 = vmul.f32 0.5, %v4161_v56 }
 0x322   :  { %v4163_v18 = vpop.eup %4162 }
 0x323   :  { %v842_v24 = vadd.f32 0.5, %v840_v0  ;;  %v841_v20 = vmul.f32 0.5, %v4163_v18 }
 0x325   :  { %v845_v10 = vmul.f32 %v844_v25, %v842_v24  ;;  %v843_v14 = vadd.f32 0.5, %v841_v20 }
 0x327   :  { %v846_v13 = vadd.f32 %v845_v10, %v486_v61  ;;  %v421_v10 = vadd.f32 %v4723_v44, %v4657_v63 }
 0x329   :  { %4164 = vtanh.f32 %v846_v13 }
 0x336   :  { %v4165_v23 = vpop.eup %4164 }
 0x337   :  { %v848_v26 = vsub.f32 %v4756_v30, %v4165_v23 }
 0x339   :  { %v849_v16 = vmul.f32 %v848_v26, %v843_v14  ;;  %v489_v26 = vadd.f32 %v4729_v59, %v4665_v8  ;;  %v425_v59 = vadd.f32 %v4725_v54, %v4651_v58 }
 0x33b   :  { %v4807_v15 = vadd.f32 %v4165_v23, %v849_v16 }
 0x33d   :  { %v4811_v19 = vpack.c.bf16 %v4807_v15, %v4807_v15 }
 0x33f   :  { %885 = vmatmul.mubr.bf16.vlgmr.msra.gmra.mxu0 %v4811_v19  ;;  %3591 = vmatmul.mubr.bf16.vlgmr.msra.gmra.mxu1 %v4811_v19 }
 0x340   :  { %952 = vmatpush1.bf16.msra.mxu0 %v4559_v28  ;;  %3595 = vmatpush3.bf16.msra.mxu1 %v4561_v29 }
 0x341   :  { %953 = vmatprep.subr.bf16.mxu0 %v4567_v31  ;;  %3596 = vmatprep.subr.bf16.mxu1 %v5986_v22 }
 0x342   :  { %983 = vmatprep.mubr.bf16.mxu0 %v5987_v21  ;;  %3610 = vmatprep.mubr.msk.bf16.mxu1 %vm4456_vm0, %v5986_v22 }
 0x344   :  { %954 = vmatpush1.bf16.msra.mxu0 %v4570_v32  ;;  %3597 = vmatpush3.bf16.msra.mxu1 %v4572_v33 }
 0x345   :  { %955 = vmatprep.subr.bf16.mxu0 %v4577_v34  ;;  %3598 = vmatprep.subr.bf16.mxu1 %v5986_v22 }
 0x348   :  { %956 = vmatpush1.bf16.msra.mxu0 %v4580_v35  ;;  %3599 = vmatpush3.bf16.msra.mxu1 %v4582_v36 }
 0x349   :  { %957 = vmatprep.subr.bf16.mxu0 %v4587_v38  ;;  %3600 = vmatprep.subr.bf16.mxu1 %v5986_v22 }
 0x34c   :  { %958 = vmatpush1.bf16.msra.mxu0 %v4590_v39  ;;  %3601 = vmatpush3.bf16.msra.mxu1 %v4592_v40 }
 0x34d   :  { %959 = vmatprep.subr.bf16.mxu0 %v4598_v41  ;;  %3602 = vmatprep.subr.bf16.mxu1 %v5986_v22 }
 0x350   :  { %960 = vmatpush1.bf16.msra.mxu0 %v4601_v42  ;;  %3603 = vmatpush3.bf16.msra.mxu1 %v4603_v43 }
 0x351   :  { %961 = vmatprep.subr.bf16.mxu0 %v4608_v45  ;;  %3604 = vmatprep.subr.bf16.mxu1 %v5986_v22 }
 0x354   :  { %962 = vmatpush1.bf16.msra.mxu0 %v4611_v46  ;;  %3605 = vmatpush3.bf16.msra.mxu1 %v4613_v47 }
 0x355   :  { %963 = vmatprep.subr.bf16.mxu0 %v4619_v48  ;;  %3606 = vmatprep.subr.bf16.mxu1 %v5986_v22 }
 0x358   :  { %964 = vmatpush1.bf16.msra.mxu0 %v4622_v49  ;;  %3607 = vmatpush3.bf16.msra.mxu1 %v4624_v50 }
 0x359   :  { %965 = vmatprep.subr.bf16.mxu0 %v4627_v51  ;;  %3608 = vmatprep.subr.bf16.mxu1 %v5986_v22 }
 0x35c   :  { %966 = vmatpush1.bf16.msra.mxu0 %v4631_v52  ;;  %3609 = vmatpush3.bf16.msra.mxu1 %v4633_v53 }
 0x35d   :  { %1050 = vmatprep.subr.bf16.mxu0 %v4557_v27  ;;  %3614 = vmatprep.subr.bf16.mxu1 %v5986_v22 }
 0x3ff   :  { %v886_v30 = vpop.f32.mrf.mxu0  ;;  %v927_v11 = vpop.f32.mrf.mxu1 }
 0x400   :  { %v933_v3 = vadd.f32 %v886_v30, %v419_v6  ;;  %v943_v37 = vadd.f32 %v4670_v9, %v927_v11 }
 0x401   :  { %v888_v62 = vpop.f32.mrf.mxu0  ;;  %v3592_v17 = vpop.f32.mrf.mxu1 }
 0x402   :  { %v935_v56 = vmul.f32 0.5, %v933_v3  ;;  %v934_v13 = vadd.f32 %v888_v62, %v421_v10 }
 0x403   :  { %v890_v0 = vpop.f32.mrf.mxu0  ;;  %v930_v24 = vpop.f32.mrf.mxu1 }
 0x404   :  { %4166 = vtanh.f32 %v935_v56  ;;  %v936_v18 = vmul.f32 0.5, %v934_v13 }
 0x405   :  { %v891_v25 = vpop.f32.mrf.mxu0  ;;  %v3593_v61 = vpop.f32.mrf.mxu1 }
 0x406   :  { %4168 = vtanh.f32 %v936_v18 }
 0x411   :  { %v4167_v20 = vpop.eup %4166 }
 0x412   :  { %v939_v23 = vmul.f32 0.5, %v4167_v20 }
 0x413   :  { %v4169_v30 = vpop.eup %4168 }
 0x414   :  { %v941_v14 = vadd.f32 0.5, %v939_v23  ;;  %v940_v3 = vmul.f32 0.5, %v4169_v30 }
 0x416   :  { %v944_v16 = vmul.f32 %v943_v37, %v941_v14  ;;  %v942_v56 = vadd.f32 0.5, %v940_v3  ;;  %v427_v37 = vadd.f32 %v4727_v57, %v4657_v63 }
 0x418   :  { %v945_v6 = vadd.f32 %v944_v16, %v489_v26 }
 0x41a   :  { %4170 = vtanh.f32 %v945_v6 }
 0x427   :  { %v4171_v17 = vpop.eup %4170 }
 0x428   :  { %v947_v44 = vsub.f32 %v4807_v15, %v4171_v17 }
 0x42a   :  { %v948_v62 = vmul.f32 %v947_v44, %v942_v56 }
 0x42c   :  { %v4858_v0 = vadd.f32 %v4171_v17, %v948_v62  ;;  %v494_v17 = vadd.f32 %v4739_v5, %v4665_v8  ;;  %v429_v5 = vadd.f32 %v4731_v60, %v4651_v58 }
 0x42e   :  { %v4862_v24 = vpack.c.bf16 %v4858_v0, %v4858_v0 }
 0x430   :  { %5988 = vst [vmem:[#allocation24_spill] sm:$0xff] %v4862_v24  ;;  %984 = vmatmul.mubr.bf16.vlgmr.msra.gmra.mxu0 %v4862_v24  ;;  %3611 = vmatmul.mubr.bf16.vlgmr.msra.gmra.mxu1 %v4862_v24 }
 0x431   :  { %1051 = vmatpush1.bf16.msra.mxu0 %v4559_v28  ;;  %3615 = vmatpush3.bf16.msra.mxu1 %v4561_v29 }
 0x432   :  { %1052 = vmatprep.subr.bf16.mxu0 %v4567_v31  ;;  %3616 = vmatprep.subr.bf16.mxu1 %v5986_v22 }
 0x433   :  { %1082 = vmatprep.mubr.bf16.mxu0 %v5987_v21  ;;  %3630 = vmatprep.mubr.msk.bf16.mxu1 %vm4456_vm0, %v5986_v22 }
 0x435   :  { %1053 = vmatpush1.bf16.msra.mxu0 %v4570_v32  ;;  %3617 = vmatpush3.bf16.msra.mxu1 %v4572_v33 }
 0x436   :  { %1054 = vmatprep.subr.bf16.mxu0 %v4577_v34  ;;  %3618 = vmatprep.subr.bf16.mxu1 %v5986_v22 }
 0x439   :  { %1055 = vmatpush1.bf16.msra.mxu0 %v4580_v35  ;;  %3619 = vmatpush3.bf16.msra.mxu1 %v4582_v36 }
 0x43a   :  { %1056 = vmatprep.subr.bf16.mxu0 %v4587_v38  ;;  %3620 = vmatprep.subr.bf16.mxu1 %v5986_v22 }
 0x43d   :  { %1057 = vmatpush1.bf16.msra.mxu0 %v4590_v39  ;;  %3621 = vmatpush3.bf16.msra.mxu1 %v4592_v40 }
 0x43e   :  { %1058 = vmatprep.subr.bf16.mxu0 %v4598_v41  ;;  %3622 = vmatprep.subr.bf16.mxu1 %v5986_v22 }
 0x441   :  { %1059 = vmatpush1.bf16.msra.mxu0 %v4601_v42  ;;  %3623 = vmatpush3.bf16.msra.mxu1 %v4603_v43 }
 0x442   :  { %1060 = vmatprep.subr.bf16.mxu0 %v4608_v45  ;;  %3624 = vmatprep.subr.bf16.mxu1 %v5986_v22 }
 0x445   :  { %1061 = vmatpush1.bf16.msra.mxu0 %v4611_v46  ;;  %3625 = vmatpush3.bf16.msra.mxu1 %v4613_v47 }
 0x446   :  { %1062 = vmatprep.subr.bf16.mxu0 %v4619_v48  ;;  %3626 = vmatprep.subr.bf16.mxu1 %v5986_v22 }
 0x449   :  { %1063 = vmatpush1.bf16.msra.mxu0 %v4622_v49  ;;  %3627 = vmatpush3.bf16.msra.mxu1 %v4624_v50 }
 0x44a   :  { %1064 = vmatprep.subr.bf16.mxu0 %v4627_v51  ;;  %3628 = vmatprep.subr.bf16.mxu1 %v5986_v22 }
 0x44d   :  { %1065 = vmatpush1.bf16.msra.mxu0 %v4631_v52  ;;  %3629 = vmatpush3.bf16.msra.mxu1 %v4633_v53 }
 0x44e   :  { %1149 = vmatprep.subr.bf16.mxu0 %v4557_v27  ;;  %3634 = vmatprep.subr.bf16.mxu1 %v5986_v22 }
 0x4f0   :  { %v985_v15 = vpop.f32.mrf.mxu0  ;;  %v1026_v11 = vpop.f32.mrf.mxu1 }
 0x4f1   :  { %v1032_v25 = vadd.f32 %v985_v15, %v425_v59  ;;  %v1042_v54 = vadd.f32 %v4670_v9, %v1026_v11 }
 0x4f2   :  { %v987_v61 = vpop.f32.mrf.mxu0  ;;  %v3612_v10 = vpop.f32.mrf.mxu1 }
 0x4f3   :  { %v1034_v13 = vmul.f32 0.5, %v1032_v25  ;;  %v1033_v26 = vadd.f32 %v987_v61, %v427_v37 }
 0x4f4   :  { %v989_v18 = vpop.f32.mrf.mxu0  ;;  %v1029_v20 = vpop.f32.mrf.mxu1 }
 0x4f5   :  { %4172 = vtanh.f32 %v1034_v13  ;;  %v1035_v16 = vmul.f32 0.5, %v1033_v26 }
 0x4f6   :  { %v990_v23 = vpop.f32.mrf.mxu0  ;;  %v3613_v14 = vpop.f32.mrf.mxu1 }
 0x4f7   :  { %4174 = vtanh.f32 %v1035_v16 }
 0x502   :  { %v4173_v6 = vpop.eup %4172 }
 0x503   :  { %v1038_v30 = vmul.f32 0.5, %v4173_v6 }
 0x504   :  { %v4175_v62 = vpop.eup %4174 }
 0x505   :  { %v1040_v3 = vadd.f32 0.5, %v1038_v30  ;;  %v1039_v59 = vmul.f32 0.5, %v4175_v62  ;;  %v431_v30 = vadd.f32 %v4733_v1, %v4657_v63 }
 0x507   :  { %v1043_v56 = vmul.f32 %v1042_v54, %v1040_v3  ;;  %v1041_v25 = vadd.f32 0.5, %v1039_v59 }
 0x509   :  { %v1044_v44 = vadd.f32 %v1043_v56, %v494_v17 }
 0x50b   :  { %4176 = vtanh.f32 %v1044_v44  ;;  %v497_v44 = vadd.f32 %v4747_v12, %v4665_v8 }
 0x518   :  { %v4177_v15 = vpop.eup %4176 }
 0x519   :  { %v1046_v57 = vsub.f32 %v4858_v0, %v4177_v15 }
 0x51b   :  { %v1047_v61 = vmul.f32 %v1046_v57, %v1041_v25 }
 0x51d   :  { %v4909_v10 = vadd.f32 %v4177_v15, %v1047_v61 }
 0x51f   :  { %v4913_v13 = vpack.c.bf16 %v4909_v10, %v4909_v10 }
 0x521   :  { %5989 = vst [vmem:[#allocation25_spill] sm:$0xff] %v4913_v13  ;;  %1083 = vmatmul.mubr.bf16.vlgmr.msra.gmra.mxu0 %v4913_v13  ;;  %3631 = vmatmul.mubr.bf16.vlgmr.msra.gmra.mxu1 %v4913_v13 }
 0x522   :  { %1150 = vmatpush1.bf16.msra.mxu0 %v4559_v28  ;;  %3635 = vmatpush3.bf16.msra.mxu1 %v4561_v29 }
 0x523   :  { %1151 = vmatprep.subr.bf16.mxu0 %v4567_v31  ;;  %3636 = vmatprep.subr.bf16.mxu1 %v5986_v22 }
 0x524   :  { %1181 = vmatprep.mubr.bf16.mxu0 %v5987_v21  ;;  %3650 = vmatprep.mubr.msk.bf16.mxu1 %vm4456_vm0, %v5986_v22 }
 0x526   :  { %1152 = vmatpush1.bf16.msra.mxu0 %v4570_v32  ;;  %3637 = vmatpush3.bf16.msra.mxu1 %v4572_v33 }
 0x527   :  { %1153 = vmatprep.subr.bf16.mxu0 %v4577_v34  ;;  %3638 = vmatprep.subr.bf16.mxu1 %v5986_v22 }
 0x52a   :  { %1154 = vmatpush1.bf16.msra.mxu0 %v4580_v35  ;;  %3639 = vmatpush3.bf16.msra.mxu1 %v4582_v36 }
 0x52b   :  { %1155 = vmatprep.subr.bf16.mxu0 %v4587_v38  ;;  %3640 = vmatprep.subr.bf16.mxu1 %v5986_v22 }
 0x52e   :  { %1156 = vmatpush1.bf16.msra.mxu0 %v4590_v39  ;;  %3641 = vmatpush3.bf16.msra.mxu1 %v4592_v40 }
 0x52f   :  { %1157 = vmatprep.subr.bf16.mxu0 %v4598_v41  ;;  %3642 = vmatprep.subr.bf16.mxu1 %v5986_v22 }
 0x532   :  { %1158 = vmatpush1.bf16.msra.mxu0 %v4601_v42  ;;  %3643 = vmatpush3.bf16.msra.mxu1 %v4603_v43 }
 0x533   :  { %1159 = vmatprep.subr.bf16.mxu0 %v4608_v45  ;;  %3644 = vmatprep.subr.bf16.mxu1 %v5986_v22 }
 0x536   :  { %1160 = vmatpush1.bf16.msra.mxu0 %v4611_v46  ;;  %3645 = vmatpush3.bf16.msra.mxu1 %v4613_v47 }
 0x537   :  { %1161 = vmatprep.subr.bf16.mxu0 %v4619_v48  ;;  %3646 = vmatprep.subr.bf16.mxu1 %v5986_v22 }
 0x53a   :  { %1162 = vmatpush1.bf16.msra.mxu0 %v4622_v49  ;;  %3647 = vmatpush3.bf16.msra.mxu1 %v4624_v50 }
 0x53b   :  { %1163 = vmatprep.subr.bf16.mxu0 %v4627_v51  ;;  %3648 = vmatprep.subr.bf16.mxu1 %v5986_v22 }
 0x53e   :  { %1164 = vmatpush1.bf16.msra.mxu0 %v4631_v52  ;;  %3649 = vmatpush3.bf16.msra.mxu1 %v4633_v53 }
 0x53f   :  { %1248 = vmatprep.subr.bf16.mxu0 %v4557_v27  ;;  %3654 = vmatprep.subr.bf16.mxu1 %v5986_v22 }
 0x5e1   :  { %v1084_v0 = vpop.f32.mrf.mxu0  ;;  %v1125_v11 = vpop.f32.mrf.mxu1 }
 0x5e2   :  { %v1131_v18 = vadd.f32 %v1084_v0, %v429_v5  ;;  %v1141_v60 = vadd.f32 %v4670_v9, %v1125_v11 }
 0x5e3   :  { %v1086_v20 = vpop.f32.mrf.mxu0  ;;  %v3632_v23 = vpop.f32.mrf.mxu1 }
 0x5e4   :  { %v1133_v14 = vmul.f32 0.5, %v1131_v18  ;;  %v1132_v27 = vadd.f32 %v1086_v20, %v431_v30  ;;  %v5015_v23 = vld [vmem:[#allocation8 + $0xa8] ss:$12 sps:$4 sm:$0xff]   ;;  %v5044_v30 = vld [vmem:[#allocation8 + $0x80] ss:$12 sps:$4 sm:$0xff]  }
 0x5e5   :  { %v1088_v37 = vpop.f32.mrf.mxu0  ;;  %v1128_v26 = vpop.f32.mrf.mxu1 }
 0x5e6   :  { %4178 = vtanh.f32 %v1133_v14  ;;  %v1134_v3 = vmul.f32 0.5, %v1132_v27  ;;  %v5017_v14 = vld [vmem:[#allocation8 + $0xb0] ss:$12 sps:$4 sm:$0xff]   ;;  %v5031_v26 = vld [vmem:[#allocation8 + $0x98] ss:$12 sps:$4 sm:$0xff]  }
 0x5e7   :  { %v1089_v16 = vpop.f32.mrf.mxu0  ;;  %v3633_v6 = vpop.f32.mrf.mxu1  ;;  %v5029_v37 = vld [vmem:[#allocation8 + $0x90] ss:$12 sps:$4 sm:$0xff]  }
 0x5e8   :  { %4180 = vtanh.f32 %v1134_v3  ;;  %v5035_v16 = vld [vmem:[#allocation8 + $0x7c] ss:$12 sps:$4 sm:$0xff]   ;;  %v5042_v6 = vld [vmem:[#allocation8 + $0x78] ss:$12 sps:$4 sm:$0xff]   ;;  %v5052_v3 = vld [vmem:[#allocation8 + $0x60] ss:$12 sps:$4 sm:$0xff]  }
 0x5e9   :  { %v5048_v27 = vld [vmem:[#allocation8 + $0x64] ss:$12 sps:$4 sm:$0xff]  }
 0x5f3   :  { %v4179_v54 = vpop.eup %4178 }
 0x5f4   :  { %v1137_v17 = vmul.f32 0.5, %v4179_v54  ;;  %v5054_v54 = vld [vmem:[#allocation8 + $0x68] ss:$12 sps:$4 sm:$0xff]  }
 0x5f5   :  { %v4181_v15 = vpop.eup %4180 }
 0x5f6   :  { %v1139_v56 = vadd.f32 0.5, %v1137_v17  ;;  %v1138_v25 = vmul.f32 0.5, %v4181_v15  ;;  %v5058_v17 = vld [vmem:[#allocation8 + $0x4c] ss:$12 sps:$4 sm:$0xff]   ;;  %v5078_v15 = vld [vmem:[#allocation8 + $0x1c] ss:$12 sps:$4 sm:$0xff]  }
 0x5f8   :  { %v1142_v62 = vmul.f32 %v1141_v60, %v1139_v56  ;;  %v1140_v61 = vadd.f32 0.5, %v1138_v25  ;;  %v5062_v56 = vld [vmem:[#allocation8 + $0x48] ss:$12 sps:$4 sm:$0xff]   ;;  %v5064_v60 = vld [vmem:[#allocation8 + $0x50] ss:$12 sps:$4 sm:$0xff]  }
 0x5f9   :  { %v5082_v25 = vld [vmem:[#allocation8 + $0x18] ss:$12 sps:$4 sm:$0xff]  }
 0x5fa   :  { %v1143_v59 = vadd.f32 %v1142_v62, %v497_v44  ;;  %v5068_v44 = vld [vmem:[#allocation8 + $0x34] ss:$12 sps:$4 sm:$0xff]   ;;  %v5072_v62 = vld [vmem:[#allocation8 + $0x30] ss:$12 sps:$4 sm:$0xff]  }
 0x5fc   :  { %4182 = vtanh.f32 %v1143_v59  ;;  %v5074_v59 = vld [vmem:[#allocation8 + $0x38] ss:$12 sps:$4 sm:$0xff]  }
 0x609   :  { %v4183_v57 = vpop.eup %4182 }
 0x60a   :  { %v1145_v1 = vsub.f32 %v4909_v10, %v4183_v57 }
 0x60c   :  { %v1146_v5 = vmul.f32 %v1145_v1, %v1140_v61  ;;  %v5088_v61 = vld [vmem:[#allocation8 + $0x4] ss:$12 sps:$4 sm:$0xff]   ;;  %v5092_v1 = vld [vmem:[#allocation8] ss:$12 sps:$4 sm:$0xff]  }
 0x60e   :  { %v4960_v0 = vadd.f32 %v4183_v57, %v1146_v5  ;;  %v5084_v57 = vld [vmem:[#allocation8 + $0x20] ss:$12 sps:$4 sm:$0xff]   ;;  %v5094_v5 = vld [vmem:[#allocation8 + $0x8] ss:$12 sps:$4 sm:$0xff]  }
 0x610   :  { %v4964_v18 = vpack.c.bf16 %v4960_v0, %v4960_v0 }
 0x612   :  { %5990 = vst [vmem:[#allocation26_spill] sm:$0xff] %v4964_v18  ;;  %1182 = vmatmul.mubr.bf16.vlgmr.msra.gmra.mxu0 %v4964_v18  ;;  %3651 = vmatmul.mubr.bf16.vlgmr.msra.gmra.mxu1 %v4964_v18 }
 0x613   :  { %1249 = vmatpush1.bf16.msra.mxu0 %v4559_v28  ;;  %3655 = vmatpush3.bf16.msra.mxu1 %v4561_v29  ;;  %v5002_v28 = vld [vmem:[#allocation8 + $0xac] ss:$12 sps:$4 sm:$0xff]   ;;  %v435_v29 = vadd.f32 %v4737_v4, %v4651_v58 }
 0x614   :  { %1250 = vmatprep.subr.bf16.mxu0 %v4567_v31  ;;  %3656 = vmatprep.subr.bf16.mxu1 %v5986_v22  ;;  %5991 = vst [vmem:[#allocation27_spill] sm:$0xff] %v5002_v28 }
 0x615   :  { %1280 = vmatprep.mubr.bf16.mxu0 %v5987_v21  ;;  %3670 = vmatprep.mubr.msk.bf16.mxu1 %vm4456_vm0, %v5986_v22 }
 0x617   :  { %1251 = vmatpush1.bf16.msra.mxu0 %v4570_v32  ;;  %3657 = vmatpush3.bf16.msra.mxu1 %v4572_v33 }
 0x618   :  { %1252 = vmatprep.subr.bf16.mxu0 %v4577_v34  ;;  %3658 = vmatprep.subr.bf16.mxu1 %v5986_v22 }
 0x61b   :  { %1253 = vmatpush1.bf16.msra.mxu0 %v4580_v35  ;;  %3659 = vmatpush3.bf16.msra.mxu1 %v4582_v36 }
 0x61c   :  { %1254 = vmatprep.subr.bf16.mxu0 %v4587_v38  ;;  %3660 = vmatprep.subr.bf16.mxu1 %v5986_v22 }
 0x61f   :  { %1255 = vmatpush1.bf16.msra.mxu0 %v4590_v39  ;;  %3661 = vmatpush3.bf16.msra.mxu1 %v4592_v40 }
 0x620   :  { %1256 = vmatprep.subr.bf16.mxu0 %v4598_v41  ;;  %3662 = vmatprep.subr.bf16.mxu1 %v5986_v22 }
 0x623   :  { %1257 = vmatpush1.bf16.msra.mxu0 %v4601_v42  ;;  %3663 = vmatpush3.bf16.msra.mxu1 %v4603_v43  ;;  %v437_v42 = vadd.f32 %v4741_v7, %v4657_v63 }
 0x624   :  { %1258 = vmatprep.subr.bf16.mxu0 %v4608_v45  ;;  %3664 = vmatprep.subr.bf16.mxu1 %v5986_v22 }
 0x627   :  { %1259 = vmatpush1.bf16.msra.mxu0 %v4611_v46  ;;  %3665 = vmatpush3.bf16.msra.mxu1 %v4613_v47 }
 0x628   :  { %1260 = vmatprep.subr.bf16.mxu0 %v4619_v48  ;;  %3666 = vmatprep.subr.bf16.mxu1 %v5986_v22 }
 0x62b   :  { %1261 = vmatpush1.bf16.msra.mxu0 %v4622_v49  ;;  %3667 = vmatpush3.bf16.msra.mxu1 %v4624_v50  ;;  %v502_v50 = vadd.f32 %v4735_v2, %v4665_v8  ;;  %v5023_v2 = vld [vmem:[#allocation8 + $0x94] ss:$12 sps:$4 sm:$0xff]  }
 0x62c   :  { %1262 = vmatprep.subr.bf16.mxu0 %v4627_v51  ;;  %3668 = vmatprep.subr.bf16.mxu1 %v5986_v22 }
 0x62f   :  { %1263 = vmatpush1.bf16.msra.mxu0 %v4631_v52  ;;  %3669 = vmatpush3.bf16.msra.mxu1 %v4633_v53 }
 0x630   :  { %3674 = vmatprep.subr.bf16.mxu1 %v5986_v22  ;;  %1563 = vmatprep.subr.bf16.mxu0 %v5002_v28 }
 0x6d2   :  { %v1183_v31 = vpop.f32.mrf.mxu0  ;;  %v1224_v32 = vpop.f32.mrf.mxu1 }
 0x6d3   :  { %v1230_v33 = vadd.f32 %v1183_v31, %v435_v29  ;;  %v1240_v49 = vadd.f32 %v4670_v9, %v1224_v32  ;;  %v5143_v29 = vld [vmem:[#allocation10 + $0xac] ss:$12 sps:$4 sm:$0xff]   ;;  %v5145_v31 = vld [vmem:[#allocation10 + $0xa8] ss:$12 sps:$4 sm:$0xff]   ;;  %v5147_v32 = vld [vmem:[#allocation10 + $0xb0] ss:$12 sps:$4 sm:$0xff]  }
 0x6d4   :  { %v1185_v34 = vpop.f32.mrf.mxu0  ;;  %v3652_v35 = vpop.f32.mrf.mxu1 }
 0x6d5   :  { %v1232_v36 = vmul.f32 0.5, %v1230_v33  ;;  %v1231_v43 = vadd.f32 %v1185_v34, %v437_v42  ;;  %v5152_v33 = vld [vmem:[#allocation10 + $0x94] ss:$12 sps:$4 sm:$0xff]   ;;  %v5157_v34 = vld [vmem:[#allocation10 + $0x98] ss:$12 sps:$4 sm:$0xff]  }
 0x6d6   :  { %v1187_v38 = vpop.f32.mrf.mxu0  ;;  %v1227_v39 = vpop.f32.mrf.mxu1  ;;  %v5162_v35 = vld [vmem:[#allocation10 + $0x7c] ss:$12 sps:$4 sm:$0xff]   ;;  %v5182_v42 = vld [vmem:[#allocation10 + $0x4c] ss:$12 sps:$4 sm:$0xff]  }
 0x6d7   :  { %4184 = vtanh.f32 %v1232_v36  ;;  %v1233_v45 = vmul.f32 0.5, %v1231_v43  ;;  %v5165_v36 = vld [vmem:[#allocation10 + $0x78] ss:$12 sps:$4 sm:$0xff]   ;;  %v5167_v38 = vld [vmem:[#allocation10 + $0x80] ss:$12 sps:$4 sm:$0xff]  }
 0x6d8   :  { %v1188_v40 = vpop.f32.mrf.mxu0  ;;  %v3653_v41 = vpop.f32.mrf.mxu1  ;;  %v5172_v39 = vld [vmem:[#allocation10 + $0x64] ss:$12 sps:$4 sm:$0xff]   ;;  %v5185_v43 = vld [vmem:[#allocation10 + $0x48] ss:$12 sps:$4 sm:$0xff]  }
 0x6d9   :  { %4186 = vtanh.f32 %v1233_v45  ;;  %v5175_v40 = vld [vmem:[#allocation10 + $0x60] ss:$12 sps:$4 sm:$0xff]   ;;  %v5177_v41 = vld [vmem:[#allocation10 + $0x68] ss:$12 sps:$4 sm:$0xff]   ;;  %v5187_v45 = vld [vmem:[#allocation10 + $0x50] ss:$12 sps:$4 sm:$0xff]  }
 0x6e4   :  { %v4185_v46 = vpop.eup %4184 }
 0x6e5   :  { %v1236_v47 = vmul.f32 0.5, %v4185_v46  ;;  %v5192_v46 = vld [vmem:[#allocation10 + $0x34] ss:$12 sps:$4 sm:$0xff]  }
 0x6e6   :  { %v4187_v53 = vpop.eup %4186  ;;  %5995 = vst [vmem:[#allocation29_spill] sm:$0xff] %v5192_v46 }
 0x6e7   :  { %v1238_v48 = vadd.f32 0.5, %v1236_v47  ;;  %v1237_v4 = vmul.f32 0.5, %v4187_v53  ;;  %v5195_v47 = vld [vmem:[#allocation10 + $0x30] ss:$12 sps:$4 sm:$0xff]   ;;  %v5215_v53 = vld [vmem:[#allocation10] ss:$12 sps:$4 sm:$0xff]  }
 0x6e8   :  { %5996 = vst [vmem:[#allocation30_spill] sm:$0xff] %v5195_v47  ;;  %6002 = vst [vmem:[#allocation36_spill] sm:$0xff] %v5215_v53 }
 0x6e9   :  { %v1241_v51 = vmul.f32 %v1240_v49, %v1238_v48  ;;  %v1239_v10 = vadd.f32 0.5, %v1237_v4  ;;  %v5197_v48 = vld [vmem:[#allocation10 + $0x38] ss:$12 sps:$4 sm:$0xff]   ;;  %v5202_v49 = vld [vmem:[#allocation10 + $0x1c] ss:$12 sps:$4 sm:$0xff]  }
 0x6ea   :  { %5997 = vst [vmem:[#allocation31_spill] sm:$0xff] %v5197_v48  ;;  %5998 = vst [vmem:[#allocation32_spill] sm:$0xff] %v5202_v49  ;;  %v5217_v4 = vld [vmem:[#allocation10 + $0x8] ss:$12 sps:$4 sm:$0xff]  }
 0x6eb   :  { %v1242_v52 = vadd.f32 %v1241_v51, %v502_v50  ;;  %v5205_v50 = vld [vmem:[#allocation10 + $0x18] ss:$12 sps:$4 sm:$0xff]   ;;  %v5207_v51 = vld [vmem:[#allocation10 + $0x20] ss:$12 sps:$4 sm:$0xff]   ;;  %6003 = vst [vmem:[#allocation37_spill] sm:$0xff] %v5217_v4 }
 0x6ec   :  { %5999 = vst [vmem:[#allocation33_spill] sm:$0xff] %v5205_v50  ;;  %6000 = vst [vmem:[#allocation34_spill] sm:$0xff] %v5207_v51 }
 0x6ed   :  { %4188 = vtanh.f32 %v1242_v52  ;;  %v5212_v52 = vld [vmem:[#allocation10 + $0x4] ss:$12 sps:$4 sm:$0xff]  }
 0x6ee   :  { %6001 = vst [vmem:[#allocation35_spill] sm:$0xff] %v5212_v52 }
 0x6fa   :  { %v4189_v12 = vpop.eup %4188 }
 0x6fb   :  { %v1244_v7 = vsub.f32 %v4960_v0, %v4189_v12  ;;  %v5993_v0 = vld [vmem:[#allocation20_spill] sm:$0xff] }
 0x6fc   :  { %5994 = vst [vmem:[#allocation20_spill] sm:$0xff] %v5187_v45 }
 0x6fd   :  { %v1245_v11 = vmul.f32 %v1244_v7, %v1239_v10 }
 0x6ff   :  { %v5013_v20 = vadd.f32 %v4189_v12, %v1245_v11  ;;  %v6004_v12 = vld [vmem:[#allocation22_spill] sm:$0xff] }
 0x700   :  { %v439_v10 = vadd.f32 %v6004_v12, %v4651_v58  ;;  %v4244_v58 = vld [vmem:[%s5923_s4] ss:$0 sm:$0xff] }
 0x701   :  { %v5021_v9 = vpack.c.bf16 %v5013_v20, %v5013_v20 }
 0x703   :  { %5992 = vst [vmem:[#allocation28_spill] sm:$0xff] %v5021_v9  ;;  %1281 = vmatmul.mubr.bf16.vlgmr.msra.gmra.mxu0 %v5021_v9  ;;  %3671 = vmatmul.mubr.bf16.vlgmr.msra.gmra.mxu1 %v5021_v9 }
 0x704   :  { %1564 = vmatpush1.bf16.msra.mxu0 %v5015_v23  ;;  %3675 = vmatpush3.bf16.msra.mxu1 %v5017_v14 }
 0x705   :  { %1565 = vmatprep.subr.bf16.mxu0 %v5023_v2  ;;  %3676 = vmatprep.subr.bf16.mxu1 %v5986_v22 }
 0x706   :  { %1595 = vmatprep.mubr.bf16.mxu0 %v5987_v21  ;;  %3690 = vmatprep.mubr.msk.bf16.mxu1 %vm4456_vm0, %v5986_v22 }
 0x708   :  { %1566 = vmatpush1.bf16.msra.mxu0 %v5029_v37  ;;  %3677 = vmatpush3.bf16.msra.mxu1 %v5031_v26 }
 0x709   :  { %1567 = vmatprep.subr.bf16.mxu0 %v5035_v16  ;;  %3678 = vmatprep.subr.bf16.mxu1 %v5986_v22 }
 0x70c   :  { %1568 = vmatpush1.bf16.msra.mxu0 %v5042_v6  ;;  %3679 = vmatpush3.bf16.msra.mxu1 %v5044_v30 }
 0x70d   :  { %1569 = vmatprep.subr.bf16.mxu0 %v5048_v27  ;;  %3680 = vmatprep.subr.bf16.mxu1 %v5986_v22 }
 0x710   :  { %1570 = vmatpush1.bf16.msra.mxu0 %v5052_v3  ;;  %3681 = vmatpush3.bf16.msra.mxu1 %v5054_v54 }
 0x711   :  { %1571 = vmatprep.subr.bf16.mxu0 %v5058_v17  ;;  %3682 = vmatprep.subr.bf16.mxu1 %v5986_v22 }
 0x714   :  { %1572 = vmatpush1.bf16.msra.mxu0 %v5062_v56  ;;  %3683 = vmatpush3.bf16.msra.mxu1 %v5064_v60 }
 0x715   :  { %1573 = vmatprep.subr.bf16.mxu0 %v5068_v44  ;;  %3684 = vmatprep.subr.bf16.mxu1 %v5986_v22 }
 0x718   :  { %1574 = vmatpush1.bf16.msra.mxu0 %v5072_v62  ;;  %3685 = vmatpush3.bf16.msra.mxu1 %v5074_v59 }
 0x719   :  { %1575 = vmatprep.subr.bf16.mxu0 %v5078_v15  ;;  %3686 = vmatprep.subr.bf16.mxu1 %v5986_v22 }
 0x71c   :  { %1576 = vmatpush1.bf16.msra.mxu0 %v5082_v25  ;;  %3687 = vmatpush3.bf16.msra.mxu1 %v5084_v57 }
 0x71d   :  { %1577 = vmatprep.subr.bf16.mxu0 %v5088_v61  ;;  %3688 = vmatprep.subr.bf16.mxu1 %v5986_v22 }
 0x720   :  { %1578 = vmatpush1.bf16.msra.mxu0 %v5092_v1  ;;  %3689 = vmatpush3.bf16.msra.mxu1 %v5094_v5 }
 0x721   :  { %1662 = vmatprep.subr.bf16.mxu0 %v5002_v28  ;;  %3694 = vmatprep.subr.bf16.mxu1 %v5986_v22 }
 0x723   :  { %1596 = vmatmul.mubr.bf16.vlgmr.msra.gmra.mxu0 %v5993_v0  ;;  %3691 = vmatmul.mubr.bf16.vlgmr.msra.gmra.mxu1 %v5993_v0 }
 0x724   :  { %1663 = vmatpush1.bf16.msra.mxu0 %v5015_v23  ;;  %3695 = vmatpush3.bf16.msra.mxu1 %v5017_v14 }
 0x725   :  { %1664 = vmatprep.subr.bf16.mxu0 %v5023_v2  ;;  %3696 = vmatprep.subr.bf16.mxu1 %v5986_v22 }
 0x726   :  { %1694 = vmatprep.mubr.bf16.mxu0 %v5987_v21  ;;  %3710 = vmatprep.mubr.msk.bf16.mxu1 %vm4456_vm0, %v5986_v22 }
 0x728   :  { %1665 = vmatpush1.bf16.msra.mxu0 %v5029_v37  ;;  %3697 = vmatpush3.bf16.msra.mxu1 %v5031_v26 }
 0x729   :  { %1666 = vmatprep.subr.bf16.mxu0 %v5035_v16  ;;  %3698 = vmatprep.subr.bf16.mxu1 %v5986_v22 }
 0x72c   :  { %1667 = vmatpush1.bf16.msra.mxu0 %v5042_v6  ;;  %3699 = vmatpush3.bf16.msra.mxu1 %v5044_v30 }
 0x72d   :  { %1668 = vmatprep.subr.bf16.mxu0 %v5048_v27  ;;  %3700 = vmatprep.subr.bf16.mxu1 %v5986_v22 }
 0x730   :  { %1669 = vmatpush1.bf16.msra.mxu0 %v5052_v3  ;;  %3701 = vmatpush3.bf16.msra.mxu1 %v5054_v54 }
 0x731   :  { %1670 = vmatprep.subr.bf16.mxu0 %v5058_v17  ;;  %3702 = vmatprep.subr.bf16.mxu1 %v5986_v22 }
 0x734   :  { %1671 = vmatpush1.bf16.msra.mxu0 %v5062_v56  ;;  %3703 = vmatpush3.bf16.msra.mxu1 %v5064_v60 }
 0x735   :  { %1672 = vmatprep.subr.bf16.mxu0 %v5068_v44  ;;  %3704 = vmatprep.subr.bf16.mxu1 %v5986_v22 }
 0x738   :  { %1673 = vmatpush1.bf16.msra.mxu0 %v5072_v62  ;;  %3705 = vmatpush3.bf16.msra.mxu1 %v5074_v59 }
 0x739   :  { %1674 = vmatprep.subr.bf16.mxu0 %v5078_v15  ;;  %3706 = vmatprep.subr.bf16.mxu1 %v5986_v22 }
 0x73c   :  { %1675 = vmatpush1.bf16.msra.mxu0 %v5082_v25  ;;  %3707 = vmatpush3.bf16.msra.mxu1 %v5084_v57 }
 0x73d   :  { %1676 = vmatprep.subr.bf16.mxu0 %v5088_v61  ;;  %3708 = vmatprep.subr.bf16.mxu1 %v5986_v22 }
 0x740   :  { %1677 = vmatpush1.bf16.msra.mxu0 %v5092_v1  ;;  %3709 = vmatpush3.bf16.msra.mxu1 %v5094_v5 }
 0x741   :  { %3714 = vmatprep.subr.bf16.mxu1 %v5986_v22  ;;  %1871 = vmatprep.subr.bf16.mxu0 %v5143_v29 }
 0x743   :  { %1695 = vmatmul.mubr.bf16.vlgmr.msra.gmra.mxu0 %v4760_v55  ;;  %3711 = vmatmul.mubr.bf16.vlgmr.msra.gmra.mxu1 %v4760_v55  ;;  %v5155_v55 = vld [vmem:[#allocation10 + $0x90] ss:$12 sps:$4 sm:$0xff]  }
 0x744   :  { %1903 = vmatprep.mubr.bf16.mxu0 %v5987_v21  ;;  %3730 = vmatprep.mubr.msk.bf16.mxu1 %vm4456_vm0, %v5986_v22 }
 0x745   :  { %1872 = vmatpush1.bf16.msra.mxu0 %v5145_v31  ;;  %3715 = vmatpush3.bf16.msra.mxu1 %v5147_v32 }
 0x746   :  { %3716 = vmatprep.subr.bf16.mxu1 %v5986_v22  ;;  %1873 = vmatprep.subr.bf16.mxu0 %v5152_v33 }
 0x749   :  { %1874 = vmatpush1.bf16.msra.mxu0 %v5155_v55  ;;  %3717 = vmatpush3.bf16.msra.mxu1 %v5157_v34 }
 0x74a   :  { %3718 = vmatprep.subr.bf16.mxu1 %v5986_v22  ;;  %1875 = vmatprep.subr.bf16.mxu0 %v5162_v35 }
 0x74d   :  { %1876 = vmatpush1.bf16.msra.mxu0 %v5165_v36  ;;  %3719 = vmatpush3.bf16.msra.mxu1 %v5167_v38 }
 0x74e   :  { %3720 = vmatprep.subr.bf16.mxu1 %v5986_v22  ;;  %1877 = vmatprep.subr.bf16.mxu0 %v5172_v39 }
 0x751   :  { %1878 = vmatpush1.bf16.msra.mxu0 %v5175_v40  ;;  %3721 = vmatpush3.bf16.msra.mxu1 %v5177_v41 }
 0x752   :  { %3722 = vmatprep.subr.bf16.mxu1 %v5986_v22  ;;  %1879 = vmatprep.subr.bf16.mxu0 %v5182_v42 }
 0x755   :  { %1880 = vmatpush1.bf16.msra.mxu0 %v5185_v43  ;;  %3723 = vmatpush3.bf16.msra.mxu1 %v5187_v45 }
 0x756   :  { %3724 = vmatprep.subr.bf16.mxu1 %v5986_v22  ;;  %1881 = vmatprep.subr.bf16.mxu0 %v5192_v46 }
 0x759   :  { %1882 = vmatpush1.bf16.msra.mxu0 %v5195_v47  ;;  %3725 = vmatpush3.bf16.msra.mxu1 %v5197_v48 }
 0x75a   :  { %3726 = vmatprep.subr.bf16.mxu1 %v5986_v22  ;;  %1883 = vmatprep.subr.bf16.mxu0 %v5202_v49 }
 0x75d   :  { %1884 = vmatpush1.bf16.msra.mxu0 %v5205_v50  ;;  %3727 = vmatpush3.bf16.msra.mxu1 %v5207_v51 }
 0x75e   :  { %3728 = vmatprep.subr.bf16.mxu1 %v5986_v22  ;;  %1885 = vmatprep.subr.bf16.mxu0 %v5212_v52 }
 0x761   :  { %1886 = vmatpush1.bf16.msra.mxu0 %v5215_v53  ;;  %3729 = vmatpush3.bf16.msra.mxu1 %v5217_v4  ;;  %v6005_v4 = vld [vmem:[#allocation23_spill] sm:$0xff] }
 0x762   :  { %1970 = vmatprep.subr.bf16.mxu0 %v5002_v28  ;;  %3734 = vmatprep.subr.bf16.mxu1 %v5986_v22  ;;  %v441_v50 = vadd.f32 %v6005_v4, %v4657_v63  ;;  %v1411_v63 = vld [vmem:[%s5926_s7] sm:$0x7] }
 0x7c3   :  { %v1282_v7 = vpop.f32.mrf.mxu0  ;;  %v1323_v11 = vpop.f32.mrf.mxu1 }
 0x7c4   :  { %v1329_v0 = vadd.f32 %v1282_v7, %v439_v10  ;;  %v1339_v12 = vadd.f32 %v4244_v58, %v1323_v11 }
 0x7c5   :  { %v1284_v9 = vpop.f32.mrf.mxu0  ;;  %v3672_v18 = vpop.f32.mrf.mxu1 }
 0x7c6   :  { %v1331_v13 = vmul.f32 0.5, %v1329_v0  ;;  %v1330_v28 = vadd.f32 %v1284_v9, %v441_v50 }
 0x7c7   :  { %v1286_v24 = vpop.f32.mrf.mxu0  ;;  %v1326_v51 = vpop.f32.mrf.mxu1 }
 0x7c8   :  { %4190 = vtanh.f32 %v1331_v13  ;;  %v1332_v49 = vmul.f32 0.5, %v1330_v28  ;;  %v6006_v24 = vld [vmem:[#allocation21_spill] sm:$0xff]  ;;  %v6007_v28 = vld [vmem:[#allocation19_spill] sm:$0xff] }
 0x7c9   :  { %v1287_v52 = vpop.f32.mrf.mxu0  ;;  %v3673_v53 = vpop.f32.mrf.mxu1  ;;  %v505_v18 = vadd.f32 %v6006_v24, %v4665_v8  ;;  %v6008_v9 = vsub.s32 0, %v6007_v28 }
 0x7ca   :  { %4192 = vtanh.f32 %v1332_v49 }
 0x7d5   :  { %v4191_v48 = vpop.eup %4190 }
 0x7d6   :  { %v1335_v47 = vmul.f32 0.5, %v4191_v48  ;;  %v5238_v48 = vrot.slane %v1411_v63, %v6008_v9 }
 0x7d7   :  { %v4193_v53 = vpop.eup %4192 }
 0x7d8   :  { %v1337_v46 = vadd.f32 0.5, %v1335_v47  ;;  %v1336_v7 = vmul.f32 0.5, %v4193_v53  ;;  %v6011_v53 = vsub.s32 2, %v6007_v28 }
 0x7da   :  { %v1340_v13 = vmul.f32 %v1339_v12, %v1337_v46  ;;  %v1338_v12 = vadd.f32 0.5, %v1336_v7 }
 0x7dc   :  { %v1341_v51 = vadd.f32 %v1340_v13, %v505_v18  ;;  %v6009_v18 = vsub.s32 1, %v6007_v28 }
 0x7de   :  { %4194 = vtanh.f32 %v1341_v51  ;;  %v5244_v13 = vrot.slane %v1411_v63, %v6009_v18 }
 0x7e3   :  { %v1597_v47 = vpop.f32.mrf.mxu0  ;;  %v1638_v50 = vpop.f32.mrf.mxu1 }
 0x7e4   :  { %v1598_v52 = vadd.f32 %v1597_v47, %v5238_v48 }
 0x7e5   :  { %v1599_v49 = vpop.f32.mrf.mxu0  ;;  %v3692_v4 = vpop.f32.mrf.mxu1 }
 0x7e6   :  { %v1646_v10 = vmul.f32 0.5, %v1598_v52  ;;  %v1600_v9 = vadd.f32 %v1599_v49, %v5244_v13 }
 0x7e7   :  { %v1601_v8 = vpop.f32.mrf.mxu0  ;;  %v1641_v46 = vpop.f32.mrf.mxu1 }
 0x7e8   :  { %4196 = vtanh.f32 %v1646_v10  ;;  %v1647_v52 = vmul.f32 0.5, %v1600_v9  ;;  %v5251_v10 = vrot.slane %v1411_v63, %v6011_v53 }
 0x7e9   :  { %v1602_v11 = vpop.f32.mrf.mxu0  ;;  %v3693_v0 = vpop.f32.mrf.mxu1 }
 0x7ea   :  { %4198 = vtanh.f32 %v1647_v52  ;;  %v1639_v7 = vadd.f32 %v1638_v50, %v5251_v10 }
 0x7eb   :  { %v4195_v58 = vpop.eup %4194 }
 0x7ec   :  { %v1343_v24 = vsub.f32 %v5013_v20, %v4195_v58  ;;  %v5256_v20 = vld [vmem:[%s5927_s8] ss:$0 sm:$0xff] }
 0x7ee   :  { %v1344_v51 = vmul.f32 %v1343_v24, %v1338_v12 }
 0x7f0   :  { %v5247_v47 = vadd.f32 %v4195_v58, %v1344_v51 }
 0x7f2   :  { %6010 = vst [vmem:[#allocation22_spill] sm:$0xff] %v5247_v47 }
 0x7f5   :  { %v4197_v4 = vpop.eup %4196 }
 0x7f6   :  { %v1650_v8 = vmul.f32 0.5, %v4197_v4 }
 0x7f7   :  { %v4199_v28 = vpop.eup %4198 }
 0x7f8   :  { %v1652_v46 = vadd.f32 0.5, %v1650_v8  ;;  %v1651_v51 = vmul.f32 0.5, %v4199_v28  ;;  %v6015_v28 = vld [vmem:[#allocation32_spill] sm:$0xff] }
 0x7fa   :  { %v1655_v49 = vmul.f32 %v5256_v20, %v1652_v46  ;;  %v1653_v8 = vadd.f32 0.5, %v1651_v51  ;;  %v6019_v51 = vld [vmem:[#allocation36_spill] sm:$0xff] }
 0x7fc   :  { %v1656_v11 = vadd.f32 %v1655_v49, %v1639_v7  ;;  %v6013_v49 = vld [vmem:[#allocation30_spill] sm:$0xff] }
 0x7fe   :  { %4200 = vtanh.f32 %v1656_v11  ;;  %v6014_v11 = vld [vmem:[#allocation31_spill] sm:$0xff] }
 0x803   :  { %v5260_v0 = vpop.f32.mrf.mxu0  ;;  %v5262_v58 = vpop.f32.mrf.mxu1 }
 0x805   :  { %v5264_v63 = vpop.f32.mrf.mxu0  ;;  %v3712_v12 = vpop.f32.mrf.mxu1 }
 0x806   :  { %v6016_v12 = vld [vmem:[#allocation33_spill] sm:$0xff] }
 0x807   :  { %v1700_v24 = vpop.f32.mrf.mxu0  ;;  %v1740_v18 = vpop.f32.mrf.mxu1 }
 0x808   :  { %v6017_v24 = vld [vmem:[#allocation34_spill] sm:$0xff]  ;;  %v6018_v18 = vld [vmem:[#allocation35_spill] sm:$0xff] }
 0x809   :  { %v1701_v9 = vpop.f32.mrf.mxu0  ;;  %v3713_v4 = vpop.f32.mrf.mxu1 }
 0x80a   :  { %v6020_v9 = vld [vmem:[#allocation37_spill] sm:$0xff]  ;;  %v6021_v4 = vld [vmem:[#allocation27_spill] sm:$0xff] }
 0x80b   :  { %v4201_v52 = vpop.eup %4200 }
 0x80c   :  { %v1658_v50 = vsub.f32 0.0, %v4201_v52 }
 0x80e   :  { %v1659_v53 = vmul.f32 %v1658_v50, %v1653_v8 }
 0x810   :  { %v5266_v46 = vadd.f32 %v4201_v52, %v1659_v53  ;;  %v1697_v52 = vadd.f32 %v5260_v0, %v5238_v48 }
 0x812   :  { %v1661_v7 = vpack.c.bf16 %v5266_v46, %v5266_v46 }
 0x814   :  { %1904 = vmatmul.mubr.bf16.vlgmr.msra.gmra.mxu0 %v1661_v7  ;;  %3731 = vmatmul.mubr.bf16.vlgmr.msra.gmra.mxu1 %v1661_v7 }
 0x815   :  { %1971 = vmatpush1.bf16.msra.mxu0 %v5015_v23  ;;  %3735 = vmatpush3.bf16.msra.mxu1 %v5017_v14 }
 0x816   :  { %1972 = vmatprep.subr.bf16.mxu0 %v5023_v2  ;;  %3736 = vmatprep.subr.bf16.mxu1 %v5986_v22 }
 0x817   :  { %2002 = vmatprep.mubr.bf16.mxu0 %v5987_v21  ;;  %3750 = vmatprep.mubr.msk.bf16.mxu1 %vm4456_vm0, %v5986_v22 }
 0x819   :  { %1973 = vmatpush1.bf16.msra.mxu0 %v5029_v37  ;;  %3737 = vmatpush3.bf16.msra.mxu1 %v5031_v26 }
 0x81a   :  { %1974 = vmatprep.subr.bf16.mxu0 %v5035_v16  ;;  %3738 = vmatprep.subr.bf16.mxu1 %v5986_v22 }
 0x81d   :  { %1975 = vmatpush1.bf16.msra.mxu0 %v5042_v6  ;;  %3739 = vmatpush3.bf16.msra.mxu1 %v5044_v30 }
 0x81e   :  { %1976 = vmatprep.subr.bf16.mxu0 %v5048_v27  ;;  %3740 = vmatprep.subr.bf16.mxu1 %v5986_v22 }
 0x821   :  { %1977 = vmatpush1.bf16.msra.mxu0 %v5052_v3  ;;  %3741 = vmatpush3.bf16.msra.mxu1 %v5054_v54 }
 0x822   :  { %1978 = vmatprep.subr.bf16.mxu0 %v5058_v17  ;;  %3742 = vmatprep.subr.bf16.mxu1 %v5986_v22 }
 0x825   :  { %1979 = vmatpush1.bf16.msra.mxu0 %v5062_v56  ;;  %3743 = vmatpush3.bf16.msra.mxu1 %v5064_v60 }
 0x826   :  { %1980 = vmatprep.subr.bf16.mxu0 %v5068_v44  ;;  %3744 = vmatprep.subr.bf16.mxu1 %v5986_v22 }
 0x829   :  { %1981 = vmatpush1.bf16.msra.mxu0 %v5072_v62  ;;  %3745 = vmatpush3.bf16.msra.mxu1 %v5074_v59 }
 0x82a   :  { %1982 = vmatprep.subr.bf16.mxu0 %v5078_v15  ;;  %3746 = vmatprep.subr.bf16.mxu1 %v5986_v22 }
 0x82d   :  { %1983 = vmatpush1.bf16.msra.mxu0 %v5082_v25  ;;  %3747 = vmatpush3.bf16.msra.mxu1 %v5084_v57 }
 0x82e   :  { %1984 = vmatprep.subr.bf16.mxu0 %v5088_v61  ;;  %3748 = vmatprep.subr.bf16.mxu1 %v5986_v22 }
 0x831   :  { %1985 = vmatpush1.bf16.msra.mxu0 %v5092_v1  ;;  %3749 = vmatpush3.bf16.msra.mxu1 %v5094_v5 }
 0x832   :  { %2051 = vmatprep.subr.bf16.mxu0 %v5143_v29  ;;  %3754 = vmatprep.subr.bf16.mxu1 %v5986_v22 }
 0x834   :  { %2003 = vmatmul.mubr.bf16.vlgmr.msra.gmra.mxu0 %v4811_v19  ;;  %3751 = vmatmul.mubr.bf16.vlgmr.msra.gmra.mxu1 %v4811_v19  ;;  %v6012_v19 = vld [vmem:[#allocation29_spill] sm:$0xff] }
 0x835   :  { %2052 = vmatpush1.bf16.msra.mxu0 %v5145_v31  ;;  %3755 = vmatpush3.bf16.msra.mxu1 %v5147_v32 }
 0x836   :  { %2053 = vmatprep.subr.bf16.mxu0 %v5152_v33  ;;  %3756 = vmatprep.subr.bf16.mxu1 %v5986_v22 }
 0x837   :  { %2083 = vmatprep.mubr.bf16.mxu0 %v5987_v21  ;;  %3770 = vmatprep.mubr.msk.bf16.mxu1 %vm4456_vm0, %v5986_v22 }
 0x839   :  { %2054 = vmatpush1.bf16.msra.mxu0 %v5155_v55  ;;  %3757 = vmatpush3.bf16.msra.mxu1 %v5157_v34 }
 0x83a   :  { %2055 = vmatprep.subr.bf16.mxu0 %v5162_v35  ;;  %3758 = vmatprep.subr.bf16.mxu1 %v5986_v22 }
 0x83d   :  { %2056 = vmatpush1.bf16.msra.mxu0 %v5165_v36  ;;  %3759 = vmatpush3.bf16.msra.mxu1 %v5167_v38 }
 0x83e   :  { %2057 = vmatprep.subr.bf16.mxu0 %v5172_v39  ;;  %3760 = vmatprep.subr.bf16.mxu1 %v5986_v22 }
 0x841   :  { %2058 = vmatpush1.bf16.msra.mxu0 %v5175_v40  ;;  %3761 = vmatpush3.bf16.msra.mxu1 %v5177_v41 }
 0x842   :  { %2059 = vmatprep.subr.bf16.mxu0 %v5182_v42  ;;  %3762 = vmatprep.subr.bf16.mxu1 %v5986_v22 }
 0x845   :  { %2060 = vmatpush1.bf16.msra.mxu0 %v5185_v43  ;;  %3763 = vmatpush3.bf16.msra.mxu1 %v5187_v45 }
 0x846   :  { %2061 = vmatprep.subr.bf16.mxu0 %v6012_v19  ;;  %3764 = vmatprep.subr.bf16.mxu1 %v5986_v22 }
 0x849   :  { %2062 = vmatpush1.bf16.msra.mxu0 %v6013_v49  ;;  %3765 = vmatpush3.bf16.msra.mxu1 %v6014_v11 }
 0x84a   :  { %2063 = vmatprep.subr.bf16.mxu0 %v6015_v28  ;;  %3766 = vmatprep.subr.bf16.mxu1 %v5986_v22 }
 0x84d   :  { %2064 = vmatpush1.bf16.msra.mxu0 %v6016_v12  ;;  %3767 = vmatpush3.bf16.msra.mxu1 %v6017_v24 }
 0x84e   :  { %2065 = vmatprep.subr.bf16.mxu0 %v6018_v18  ;;  %3768 = vmatprep.subr.bf16.mxu1 %v5986_v22 }
 0x851   :  { %2066 = vmatpush1.bf16.msra.mxu0 %v6019_v51  ;;  %3769 = vmatpush3.bf16.msra.mxu1 %v6020_v9  ;;  %v1699_v9 = vadd.f32 %v5264_v63, %v5244_v13 }
 0x852   :  { %2150 = vmatprep.subr.bf16.mxu0 %v6021_v4  ;;  %3774 = vmatprep.subr.bf16.mxu1 %v5986_v22 }
 0x8d4   :  { %v1905_v8 = vpop.f32.mrf.mxu0  ;;  %v1946_v50 = vpop.f32.mrf.mxu1 }
 0x8d5   :  { %v1952_v53 = vadd.f32 %v1905_v8, %v1697_v52  ;;  %v1962_v0 = vadd.f32 %v5256_v20, %v1946_v50 }
 0x8d6   :  { %v1907_v7 = vpop.f32.mrf.mxu0  ;;  %v3732_v47 = vpop.f32.mrf.mxu1 }
 0x8d7   :  { %v1954_v24 = vmul.f32 0.5, %v1952_v53  ;;  %v1953_v4 = vadd.f32 %v1907_v7, %v1699_v9  ;;  %v1738_v47 = vadd.f32 %v5262_v58, %v5251_v10 }
 0x8d8   :  { %v1909_v18 = vpop.f32.mrf.mxu0  ;;  %v1949_v12 = vpop.f32.mrf.mxu1 }
 0x8d9   :  { %4202 = vtanh.f32 %v1954_v24  ;;  %v1955_v11 = vmul.f32 0.5, %v1953_v4 }
 0x8da   :  { %v1910_v28 = vpop.f32.mrf.mxu0  ;;  %v3733_v51 = vpop.f32.mrf.mxu1 }
 0x8db   :  { %4204 = vtanh.f32 %v1955_v11 }
 0x8e6   :  { %v4203_v49 = vpop.eup %4202 }
 0x8e7   :  { %v1958_v19 = vmul.f32 0.5, %v4203_v49 }
 0x8e8   :  { %v4205_v24 = vpop.eup %4204 }
 0x8e9   :  { %v1960_v45 = vadd.f32 0.5, %v1958_v19  ;;  %v1959_v19 = vmul.f32 0.5, %v4205_v24  ;;  %v6027_v24 = vld [vmem:[#allocation32_spill] sm:$0xff] }
 0x8eb   :  { %v1963_v52 = vmul.f32 %v1962_v0, %v1960_v45  ;;  %v1961_v50 = vadd.f32 0.5, %v1959_v19  ;;  %v6023_v0 = vld [vmem:[#allocation20_spill] sm:$0xff] }
 0x8ec   :  { %v6031_v19 = vld [vmem:[#allocation36_spill] sm:$0xff] }
 0x8ed   :  { %v1964_v18 = vadd.f32 %v1963_v52, %v1738_v47  ;;  %v6024_v47 = vld [vmem:[#allocation29_spill] sm:$0xff]  ;;  %v6025_v52 = vld [vmem:[#allocation30_spill] sm:$0xff] }
 0x8ef   :  { %4206 = vtanh.f32 %v1964_v18  ;;  %v6026_v18 = vld [vmem:[#allocation31_spill] sm:$0xff] }
 0x8f4   :  { %v5349_v12 = vpop.f32.mrf.mxu0  ;;  %v5351_v28 = vpop.f32.mrf.mxu1 }
 0x8f6   :  { %v5353_v63 = vpop.f32.mrf.mxu0  ;;  %v3752_v51 = vpop.f32.mrf.mxu1 }
 0x8f7   :  { %v6028_v51 = vld [vmem:[#allocation33_spill] sm:$0xff] }
 0x8f8   :  { %v2008_v9 = vpop.f32.mrf.mxu0  ;;  %v2048_v49 = vpop.f32.mrf.mxu1 }
 0x8f9   :  { %v6029_v9 = vld [vmem:[#allocation34_spill] sm:$0xff]  ;;  %v6030_v49 = vld [vmem:[#allocation35_spill] sm:$0xff] }
 0x8fa   :  { %v2009_v4 = vpop.f32.mrf.mxu0  ;;  %v3753_v8 = vpop.f32.mrf.mxu1 }
 0x8fb   :  { %v6032_v4 = vld [vmem:[#allocation37_spill] sm:$0xff]  ;;  %v6033_v8 = vld [vmem:[#allocation27_spill] sm:$0xff] }
 0x8fc   :  { %v4207_v11 = vpop.eup %4206 }
 0x8fd   :  { %v1966_v58 = vsub.f32 %v5266_v46, %v4207_v11  ;;  %v6022_v46 = vld [vmem:[#allocation24_spill] sm:$0xff] }
 0x8ff   :  { %v1967_v45 = vmul.f32 %v1966_v58, %v1961_v50 }
 0x901   :  { %v5356_v53 = vadd.f32 %v4207_v11, %v1967_v45  ;;  %v2005_v11 = vadd.f32 %v5349_v12, %v5238_v48 }
 0x903   :  { %v1969_v7 = vpack.c.bf16 %v5356_v53, %v5356_v53 }
 0x905   :  { %2084 = vmatmul.mubr.bf16.vlgmr.msra.gmra.mxu0 %v1969_v7  ;;  %3771 = vmatmul.mubr.bf16.vlgmr.msra.gmra.mxu1 %v1969_v7 }
 0x906   :  { %2151 = vmatpush1.bf16.msra.mxu0 %v5015_v23  ;;  %3775 = vmatpush3.bf16.msra.mxu1 %v5017_v14 }
 0x907   :  { %2152 = vmatprep.subr.bf16.mxu0 %v5023_v2  ;;  %3776 = vmatprep.subr.bf16.mxu1 %v5986_v22 }
 0x908   :  { %2182 = vmatprep.mubr.bf16.mxu0 %v5987_v21  ;;  %3790 = vmatprep.mubr.msk.bf16.mxu1 %vm4456_vm0, %v5986_v22 }
 0x90a   :  { %2153 = vmatpush1.bf16.msra.mxu0 %v5029_v37  ;;  %3777 = vmatpush3.bf16.msra.mxu1 %v5031_v26 }
 0x90b   :  { %2154 = vmatprep.subr.bf16.mxu0 %v5035_v16  ;;  %3778 = vmatprep.subr.bf16.mxu1 %v5986_v22 }
 0x90e   :  { %2155 = vmatpush1.bf16.msra.mxu0 %v5042_v6  ;;  %3779 = vmatpush3.bf16.msra.mxu1 %v5044_v30 }
 0x90f   :  { %2156 = vmatprep.subr.bf16.mxu0 %v5048_v27  ;;  %3780 = vmatprep.subr.bf16.mxu1 %v5986_v22 }
 0x912   :  { %2157 = vmatpush1.bf16.msra.mxu0 %v5052_v3  ;;  %3781 = vmatpush3.bf16.msra.mxu1 %v5054_v54 }
 0x913   :  { %2158 = vmatprep.subr.bf16.mxu0 %v5058_v17  ;;  %3782 = vmatprep.subr.bf16.mxu1 %v5986_v22 }
 0x916   :  { %2159 = vmatpush1.bf16.msra.mxu0 %v5062_v56  ;;  %3783 = vmatpush3.bf16.msra.mxu1 %v5064_v60 }
 0x917   :  { %2160 = vmatprep.subr.bf16.mxu0 %v5068_v44  ;;  %3784 = vmatprep.subr.bf16.mxu1 %v5986_v22 }
 0x91a   :  { %2161 = vmatpush1.bf16.msra.mxu0 %v5072_v62  ;;  %3785 = vmatpush3.bf16.msra.mxu1 %v5074_v59 }
 0x91b   :  { %2162 = vmatprep.subr.bf16.mxu0 %v5078_v15  ;;  %3786 = vmatprep.subr.bf16.mxu1 %v5986_v22 }
 0x91e   :  { %2163 = vmatpush1.bf16.msra.mxu0 %v5082_v25  ;;  %3787 = vmatpush3.bf16.msra.mxu1 %v5084_v57 }
 0x91f   :  { %2164 = vmatprep.subr.bf16.mxu0 %v5088_v61  ;;  %3788 = vmatprep.subr.bf16.mxu1 %v5986_v22 }
 0x922   :  { %2165 = vmatpush1.bf16.msra.mxu0 %v5092_v1  ;;  %3789 = vmatpush3.bf16.msra.mxu1 %v5094_v5 }
 0x923   :  { %2231 = vmatprep.subr.bf16.mxu0 %v5143_v29  ;;  %3794 = vmatprep.subr.bf16.mxu1 %v5986_v22 }
 0x925   :  { %2183 = vmatmul.mubr.bf16.vlgmr.msra.gmra.mxu0 %v6022_v46  ;;  %3791 = vmatmul.mubr.bf16.vlgmr.msra.gmra.mxu1 %v6022_v46 }
 0x926   :  { %2232 = vmatpush1.bf16.msra.mxu0 %v5145_v31  ;;  %3795 = vmatpush3.bf16.msra.mxu1 %v5147_v32 }
 0x927   :  { %2233 = vmatprep.subr.bf16.mxu0 %v5152_v33  ;;  %3796 = vmatprep.subr.bf16.mxu1 %v5986_v22 }
 0x928   :  { %2263 = vmatprep.mubr.bf16.mxu0 %v5987_v21  ;;  %3810 = vmatprep.mubr.msk.bf16.mxu1 %vm4456_vm0, %v5986_v22 }
 0x92a   :  { %2234 = vmatpush1.bf16.msra.mxu0 %v5155_v55  ;;  %3797 = vmatpush3.bf16.msra.mxu1 %v5157_v34 }
 0x92b   :  { %2235 = vmatprep.subr.bf16.mxu0 %v5162_v35  ;;  %3798 = vmatprep.subr.bf16.mxu1 %v5986_v22 }
 0x92e   :  { %2236 = vmatpush1.bf16.msra.mxu0 %v5165_v36  ;;  %3799 = vmatpush3.bf16.msra.mxu1 %v5167_v38 }
 0x92f   :  { %2237 = vmatprep.subr.bf16.mxu0 %v5172_v39  ;;  %3800 = vmatprep.subr.bf16.mxu1 %v5986_v22 }
 0x932   :  { %2238 = vmatpush1.bf16.msra.mxu0 %v5175_v40  ;;  %3801 = vmatpush3.bf16.msra.mxu1 %v5177_v41 }
 0x933   :  { %2239 = vmatprep.subr.bf16.mxu0 %v5182_v42  ;;  %3802 = vmatprep.subr.bf16.mxu1 %v5986_v22 }
 0x936   :  { %2240 = vmatpush1.bf16.msra.mxu0 %v5185_v43  ;;  %3803 = vmatpush3.bf16.msra.mxu1 %v6023_v0 }
 0x937   :  { %2241 = vmatprep.subr.bf16.mxu0 %v6024_v47  ;;  %3804 = vmatprep.subr.bf16.mxu1 %v5986_v22 }
 0x93a   :  { %2242 = vmatpush1.bf16.msra.mxu0 %v6025_v52  ;;  %3805 = vmatpush3.bf16.msra.mxu1 %v6026_v18 }
 0x93b   :  { %2243 = vmatprep.subr.bf16.mxu0 %v6027_v24  ;;  %3806 = vmatprep.subr.bf16.mxu1 %v5986_v22 }
 0x93e   :  { %2244 = vmatpush1.bf16.msra.mxu0 %v6028_v51  ;;  %3807 = vmatpush3.bf16.msra.mxu1 %v6029_v9 }
 0x93f   :  { %2245 = vmatprep.subr.bf16.mxu0 %v6030_v49  ;;  %3808 = vmatprep.subr.bf16.mxu1 %v5986_v22 }
 0x942   :  { %2246 = vmatpush1.bf16.msra.mxu0 %v6031_v19  ;;  %3809 = vmatpush3.bf16.msra.mxu1 %v6032_v4  ;;  %v2007_v4 = vadd.f32 %v5353_v63, %v5244_v13 }
 0x943   :  { %2330 = vmatprep.subr.bf16.mxu0 %v6033_v8  ;;  %3814 = vmatprep.subr.bf16.mxu1 %v5986_v22 }
 0x9c5   :  { %v2085_v50 = vpop.f32.mrf.mxu0  ;;  %v2126_v58 = vpop.f32.mrf.mxu1 }
 0x9c6   :  { %v2132_v45 = vadd.f32 %v2085_v50, %v2005_v11  ;;  %v2142_v12 = vadd.f32 %v5256_v20, %v2126_v58  ;;  %v2046_v11 = vadd.f32 %v5351_v28, %v5251_v10 }
 0x9c7   :  { %v2087_v7 = vpop.f32.mrf.mxu0  ;;  %v3772_v46 = vpop.f32.mrf.mxu1 }
 0x9c8   :  { %v2134_v9 = vmul.f32 0.5, %v2132_v45  ;;  %v2133_v8 = vadd.f32 %v2087_v7, %v2007_v4 }
 0x9c9   :  { %v2089_v49 = vpop.f32.mrf.mxu0  ;;  %v2129_v51 = vpop.f32.mrf.mxu1 }
 0x9ca   :  { %4208 = vtanh.f32 %v2134_v9  ;;  %v2135_v18 = vmul.f32 0.5, %v2133_v8 }
 0x9cb   :  { %v2090_v24 = vpop.f32.mrf.mxu0  ;;  %v3773_v19 = vpop.f32.mrf.mxu1 }
 0x9cc   :  { %4210 = vtanh.f32 %v2135_v18 }
 0x9d7   :  { %v4209_v52 = vpop.eup %4208 }
 0x9d8   :  { %v2138_v47 = vmul.f32 0.5, %v4209_v52 }
 0x9d9   :  { %v4211_v9 = vpop.eup %4210 }
 0x9da   :  { %v2140_v0 = vadd.f32 0.5, %v2138_v47  ;;  %v2139_v47 = vmul.f32 0.5, %v4211_v9 }
 0x9dc   :  { %v2143_v50 = vmul.f32 %v2142_v12, %v2140_v0  ;;  %v2141_v7 = vadd.f32 0.5, %v2139_v47 }
 0x9de   :  { %v2144_v49 = vadd.f32 %v2143_v50, %v2046_v11 }
 0x9e0   :  { %4212 = vtanh.f32 %v2144_v49 }
 0x9e5   :  { %v5439_v51 = vpop.f32.mrf.mxu0  ;;  %v5441_v24 = vpop.f32.mrf.mxu1 }
 0x9e7   :  { %v5443_v63 = vpop.f32.mrf.mxu0  ;;  %v3792_v19 = vpop.f32.mrf.mxu1 }
 0x9e8   :  { %v2226_v19 = vadd.f32 %v5441_v24, %v5251_v10 }
 0x9e9   :  { %v2188_v4 = vpop.f32.mrf.mxu0  ;;  %v2228_v52 = vpop.f32.mrf.mxu1 }
 0x9eb   :  { %v2189_v45 = vpop.f32.mrf.mxu0  ;;  %v3793_v58 = vpop.f32.mrf.mxu1 }
 0x9ed   :  { %v4213_v18 = vpop.eup %4212 }
 0x9ee   :  { %v2146_v28 = vsub.f32 %v5356_v53, %v4213_v18  ;;  %v2187_v53 = vadd.f32 %v5443_v63, %v5244_v13 }
 0x9f0   :  { %v2147_v0 = vmul.f32 %v2146_v28, %v2141_v7 }
 0x9f2   :  { %v5446_v46 = vadd.f32 %v4213_v18, %v2147_v0 }
 0x9f4   :  { %v2149_v8 = vpack.c.bf16 %v5446_v46, %v5446_v46 }
 0x9f6   :  { %2264 = vmatmul.mubr.bf16.vlgmr.msra.gmra.mxu0 %v2149_v8  ;;  %3811 = vmatmul.mubr.bf16.vlgmr.msra.gmra.mxu1 %v2149_v8 }
 0x9f7   :  { %2331 = vmatpush1.bf16.msra.mxu0 %v5015_v23  ;;  %3815 = vmatpush3.bf16.msra.mxu1 %v5017_v14  ;;  %v6034_v23 = vld [vmem:[#allocation25_spill] sm:$0xff]  ;;  %v6035_v14 = vld [vmem:[#allocation20_spill] sm:$0xff] }
 0x9f8   :  { %2332 = vmatprep.subr.bf16.mxu0 %v5023_v2  ;;  %3816 = vmatprep.subr.bf16.mxu1 %v5986_v22  ;;  %v6036_v2 = vld [vmem:[#allocation29_spill] sm:$0xff] }
 0x9f9   :  { %2362 = vmatprep.mubr.bf16.mxu0 %v5987_v21  ;;  %3830 = vmatprep.mubr.msk.bf16.mxu1 %vm4456_vm0, %v5986_v22 }
 0x9fb   :  { %2333 = vmatpush1.bf16.msra.mxu0 %v5029_v37  ;;  %3817 = vmatpush3.bf16.msra.mxu1 %v5031_v26  ;;  %v6037_v37 = vld [vmem:[#allocation30_spill] sm:$0xff]  ;;  %v6038_v26 = vld [vmem:[#allocation31_spill] sm:$0xff] }
 0x9fc   :  { %2334 = vmatprep.subr.bf16.mxu0 %v5035_v16  ;;  %3818 = vmatprep.subr.bf16.mxu1 %v5986_v22  ;;  %v6039_v16 = vld [vmem:[#allocation32_spill] sm:$0xff] }
 0x9ff   :  { %2335 = vmatpush1.bf16.msra.mxu0 %v5042_v6  ;;  %3819 = vmatpush3.bf16.msra.mxu1 %v5044_v30  ;;  %v6040_v6 = vld [vmem:[#allocation33_spill] sm:$0xff]  ;;  %v6041_v30 = vld [vmem:[#allocation34_spill] sm:$0xff] }
 0xa00   :  { %2336 = vmatprep.subr.bf16.mxu0 %v5048_v27  ;;  %3820 = vmatprep.subr.bf16.mxu1 %v5986_v22  ;;  %v6042_v27 = vld [vmem:[#allocation35_spill] sm:$0xff] }
 0xa03   :  { %2337 = vmatpush1.bf16.msra.mxu0 %v5052_v3  ;;  %3821 = vmatpush3.bf16.msra.mxu1 %v5054_v54  ;;  %v6043_v3 = vld [vmem:[#allocation36_spill] sm:$0xff]  ;;  %v6044_v54 = vld [vmem:[#allocation37_spill] sm:$0xff] }
 0xa04   :  { %2338 = vmatprep.subr.bf16.mxu0 %v5058_v17  ;;  %3822 = vmatprep.subr.bf16.mxu1 %v5986_v22  ;;  %v5520_v17 = vld [vmem:[#allocation8 + $0xac] ss:$12 sps:$4 sm:$0xff]  }
 0xa07   :  { %2339 = vmatpush1.bf16.msra.mxu0 %v5062_v56  ;;  %3823 = vmatpush3.bf16.msra.mxu1 %v5064_v60  ;;  %v2185_v56 = vadd.f32 %v5439_v51, %v5238_v48 }
 0xa08   :  { %2340 = vmatprep.subr.bf16.mxu0 %v5068_v44  ;;  %3824 = vmatprep.subr.bf16.mxu1 %v5986_v22 }
 0xa0b   :  { %2341 = vmatpush1.bf16.msra.mxu0 %v5072_v62  ;;  %3825 = vmatpush3.bf16.msra.mxu1 %v5074_v59 }
 0xa0c   :  { %2342 = vmatprep.subr.bf16.mxu0 %v5078_v15  ;;  %3826 = vmatprep.subr.bf16.mxu1 %v5986_v22 }
 0xa0f   :  { %2343 = vmatpush1.bf16.msra.mxu0 %v5082_v25  ;;  %3827 = vmatpush3.bf16.msra.mxu1 %v5084_v57 }
 0xa10   :  { %2344 = vmatprep.subr.bf16.mxu0 %v5088_v61  ;;  %3828 = vmatprep.subr.bf16.mxu1 %v5986_v22 }
 0xa13   :  { %2345 = vmatpush1.bf16.msra.mxu0 %v5092_v1  ;;  %3829 = vmatpush3.bf16.msra.mxu1 %v5094_v5 }
 0xa14   :  { %2411 = vmatprep.subr.bf16.mxu0 %v5143_v29  ;;  %3834 = vmatprep.subr.bf16.mxu1 %v5986_v22 }
 0xa16   :  { %2363 = vmatmul.mubr.bf16.vlgmr.msra.gmra.mxu0 %v6034_v23  ;;  %3831 = vmatmul.mubr.bf16.vlgmr.msra.gmra.mxu1 %v6034_v23 }
 0xa17   :  { %2412 = vmatpush1.bf16.msra.mxu0 %v5145_v31  ;;  %3835 = vmatpush3.bf16.msra.mxu1 %v5147_v32 }
 0xa18   :  { %2413 = vmatprep.subr.bf16.mxu0 %v5152_v33  ;;  %3836 = vmatprep.subr.bf16.mxu1 %v5986_v22 }
 0xa19   :  { %2443 = vmatprep.mubr.bf16.mxu0 %v5987_v21  ;;  %3850 = vmatprep.mubr.msk.bf16.mxu1 %vm4456_vm0, %v5986_v22 }
 0xa1b   :  { %2414 = vmatpush1.bf16.msra.mxu0 %v5155_v55  ;;  %3837 = vmatpush3.bf16.msra.mxu1 %v5157_v34 }
 0xa1c   :  { %2415 = vmatprep.subr.bf16.mxu0 %v5162_v35  ;;  %3838 = vmatprep.subr.bf16.mxu1 %v5986_v22 }
 0xa1f   :  { %2416 = vmatpush1.bf16.msra.mxu0 %v5165_v36  ;;  %3839 = vmatpush3.bf16.msra.mxu1 %v5167_v38 }
 0xa20   :  { %2417 = vmatprep.subr.bf16.mxu0 %v5172_v39  ;;  %3840 = vmatprep.subr.bf16.mxu1 %v5986_v22 }
 0xa23   :  { %2418 = vmatpush1.bf16.msra.mxu0 %v5175_v40  ;;  %3841 = vmatpush3.bf16.msra.mxu1 %v5177_v41 }
 0xa24   :  { %2419 = vmatprep.subr.bf16.mxu0 %v5182_v42  ;;  %3842 = vmatprep.subr.bf16.mxu1 %v5986_v22 }
 0xa27   :  { %2420 = vmatpush1.bf16.msra.mxu0 %v5185_v43  ;;  %3843 = vmatpush3.bf16.msra.mxu1 %v6035_v14 }
 0xa28   :  { %2421 = vmatprep.subr.bf16.mxu0 %v6036_v2  ;;  %3844 = vmatprep.subr.bf16.mxu1 %v5986_v22 }
 0xa2b   :  { %2422 = vmatpush1.bf16.msra.mxu0 %v6037_v37  ;;  %3845 = vmatpush3.bf16.msra.mxu1 %v6038_v26 }
 0xa2c   :  { %2423 = vmatprep.subr.bf16.mxu0 %v6039_v16  ;;  %3846 = vmatprep.subr.bf16.mxu1 %v5986_v22 }
 0xa2f   :  { %2424 = vmatpush1.bf16.msra.mxu0 %v6040_v6  ;;  %3847 = vmatpush3.bf16.msra.mxu1 %v6041_v30 }
 0xa30   :  { %2425 = vmatprep.subr.bf16.mxu0 %v6042_v27  ;;  %3848 = vmatprep.subr.bf16.mxu1 %v5986_v22 }
 0xa33   :  { %2426 = vmatpush1.bf16.msra.mxu0 %v6043_v3  ;;  %3849 = vmatpush3.bf16.msra.mxu1 %v6044_v54 }
 0xa34   :  { %2510 = vmatprep.subr.bf16.mxu0 %v5520_v17  ;;  %3854 = vmatprep.subr.bf16.mxu1 %v5986_v22 }
 0xab6   :  { %v2265_v60 = vpop.f32.mrf.mxu0  ;;  %v2306_v44 = vpop.f32.mrf.mxu1 }
 0xab7   :  { %v2312_v62 = vadd.f32 %v2265_v60, %v2185_v56  ;;  %v2322_v51 = vadd.f32 %v5256_v20, %v2306_v44 }
 0xab8   :  { %v2267_v59 = vpop.f32.mrf.mxu0  ;;  %v3812_v15 = vpop.f32.mrf.mxu1 }
 0xab9   :  { %v2314_v25 = vmul.f32 0.5, %v2312_v62  ;;  %v2313_v12 = vadd.f32 %v2267_v59, %v2187_v53  ;;  %v5542_v15 = vld [vmem:[#allocation8 + $0xa8] ss:$12 sps:$4 sm:$0xff]   ;;  %v5568_v53 = vld [vmem:[#allocation8 + $0x80] ss:$12 sps:$4 sm:$0xff]  }
 0xaba   :  { %v2269_v57 = vpop.f32.mrf.mxu0  ;;  %v2309_v61 = vpop.f32.mrf.mxu1 }
 0xabb   :  { %4214 = vtanh.f32 %v2314_v25  ;;  %v2315_v11 = vmul.f32 0.5, %v2313_v12  ;;  %v5545_v25 = vld [vmem:[#allocation8 + $0xb0] ss:$12 sps:$4 sm:$0xff]   ;;  %v5548_v57 = vld [vmem:[#allocation8 + $0x94] ss:$12 sps:$4 sm:$0xff]  }
 0xabc   :  { %v2270_v1 = vpop.f32.mrf.mxu0  ;;  %v3813_v5 = vpop.f32.mrf.mxu1  ;;  %v5558_v61 = vld [vmem:[#allocation8 + $0x98] ss:$12 sps:$4 sm:$0xff]  }
 0xabd   :  { %4216 = vtanh.f32 %v2315_v11  ;;  %v5561_v1 = vld [vmem:[#allocation8 + $0x7c] ss:$12 sps:$4 sm:$0xff]   ;;  %v5565_v5 = vld [vmem:[#allocation8 + $0x78] ss:$12 sps:$4 sm:$0xff]   ;;  %v5575_v11 = vld [vmem:[#allocation8 + $0x60] ss:$12 sps:$4 sm:$0xff]  }
 0xabe   :  { %v5571_v12 = vld [vmem:[#allocation8 + $0x64] ss:$12 sps:$4 sm:$0xff]  }
 0xac8   :  { %v4215_v50 = vpop.eup %4214 }
 0xac9   :  { %v2318_v49 = vmul.f32 0.5, %v4215_v50  ;;  %v5578_v50 = vld [vmem:[#allocation8 + $0x68] ss:$12 sps:$4 sm:$0xff]  }
 0xaca   :  { %v4217_v58 = vpop.eup %4216 }
 0xacb   :  { %v2320_v9 = vadd.f32 0.5, %v2318_v49  ;;  %v2319_v0 = vmul.f32 0.5, %v4217_v58  ;;  %v5581_v49 = vld [vmem:[#allocation8 + $0x4c] ss:$12 sps:$4 sm:$0xff]   ;;  %v5601_v58 = vld [vmem:[#allocation8 + $0x1c] ss:$12 sps:$4 sm:$0xff]  }
 0xacd   :  { %v2323_v4 = vmul.f32 %v2322_v51, %v2320_v9  ;;  %v2321_v60 = vadd.f32 0.5, %v2319_v0  ;;  %v5585_v9 = vld [vmem:[#allocation8 + $0x48] ss:$12 sps:$4 sm:$0xff]   ;;  %v5588_v51 = vld [vmem:[#allocation8 + $0x50] ss:$12 sps:$4 sm:$0xff]  }
 0xace   :  { %v5615_v0 = vld [vmem:[#allocation8] ss:$12 sps:$4 sm:$0xff]  }
 0xacf   :  { %v2324_v52 = vadd.f32 %v2323_v4, %v2226_v19  ;;  %v5591_v19 = vld [vmem:[#allocation8 + $0x34] ss:$12 sps:$4 sm:$0xff]   ;;  %v5595_v4 = vld [vmem:[#allocation8 + $0x30] ss:$12 sps:$4 sm:$0xff]  }
 0xad1   :  { %4218 = vtanh.f32 %v2324_v52  ;;  %v5598_v52 = vld [vmem:[#allocation8 + $0x38] ss:$12 sps:$4 sm:$0xff]  }
 0xad6   :  { %v5531_v47 = vpop.f32.mrf.mxu0  ;;  %v5533_v45 = vpop.f32.mrf.mxu1 }
 0xad8   :  { %v5535_v63 = vpop.f32.mrf.mxu0  ;;  %v3832_v18 = vpop.f32.mrf.mxu1 }
 0xad9   :  { %v5605_v18 = vld [vmem:[#allocation8 + $0x18] ss:$12 sps:$4 sm:$0xff]  }
 0xada   :  { %v2368_v7 = vpop.f32.mrf.mxu0  ;;  %v2408_v28 = vpop.f32.mrf.mxu1 }
 0xadb   :  { %v5608_v7 = vld [vmem:[#allocation8 + $0x20] ss:$12 sps:$4 sm:$0xff]   ;;  %v5611_v28 = vld [vmem:[#allocation8 + $0x4] ss:$12 sps:$4 sm:$0xff]  }
 0xadc   :  { %v2369_v8 = vpop.f32.mrf.mxu0  ;;  %v3833_v23 = vpop.f32.mrf.mxu1 }
 0xadd   :  { %v5618_v8 = vld [vmem:[#allocation8 + $0x8] ss:$12 sps:$4 sm:$0xff]   ;;  %v6045_v23 = vld [vmem:[#allocation26_spill] sm:$0xff] }
 0xade   :  { %v4219_v56 = vpop.eup %4218 }
 0xadf   :  { %v2326_v24 = vsub.f32 %v5446_v46, %v4219_v56  ;;  %v5555_v46 = vld [vmem:[#allocation8 + $0x90] ss:$12 sps:$4 sm:$0xff]  }
 0xae1   :  { %v2327_v44 = vmul.f32 %v2326_v24, %v2321_v60 }
 0xae3   :  { %v5538_v62 = vadd.f32 %v4219_v56, %v2327_v44 }
 0xae5   :  { %v2329_v59 = vpack.c.bf16 %v5538_v62, %v5538_v62 }
 0xae7   :  { %2444 = vmatmul.mubr.bf16.vlgmr.msra.gmra.mxu0 %v2329_v59  ;;  %3851 = vmatmul.mubr.bf16.vlgmr.msra.gmra.mxu1 %v2329_v59 }
 0xae8   :  { %2511 = vmatpush1.bf16.msra.mxu0 %v5542_v15  ;;  %3855 = vmatpush3.bf16.msra.mxu1 %v5545_v25 }
 0xae9   :  { %2512 = vmatprep.subr.bf16.mxu0 %v5548_v57  ;;  %3856 = vmatprep.subr.bf16.mxu1 %v5986_v22 }
 0xaea   :  { %2542 = vmatprep.mubr.bf16.mxu0 %v5987_v21  ;;  %3870 = vmatprep.mubr.msk.bf16.mxu1 %vm4456_vm0, %v5986_v22 }
 0xaec   :  { %2513 = vmatpush1.bf16.msra.mxu0 %v5555_v46  ;;  %3857 = vmatpush3.bf16.msra.mxu1 %v5558_v61 }
 0xaed   :  { %2514 = vmatprep.subr.bf16.mxu0 %v5561_v1  ;;  %3858 = vmatprep.subr.bf16.mxu1 %v5986_v22 }
 0xaf0   :  { %2515 = vmatpush1.bf16.msra.mxu0 %v5565_v5  ;;  %3859 = vmatpush3.bf16.msra.mxu1 %v5568_v53 }
 0xaf1   :  { %2516 = vmatprep.subr.bf16.mxu0 %v5571_v12  ;;  %3860 = vmatprep.subr.bf16.mxu1 %v5986_v22 }
 0xaf4   :  { %2517 = vmatpush1.bf16.msra.mxu0 %v5575_v11  ;;  %3861 = vmatpush3.bf16.msra.mxu1 %v5578_v50 }
 0xaf5   :  { %2518 = vmatprep.subr.bf16.mxu0 %v5581_v49  ;;  %3862 = vmatprep.subr.bf16.mxu1 %v5986_v22 }
 0xaf8   :  { %2519 = vmatpush1.bf16.msra.mxu0 %v5585_v9  ;;  %3863 = vmatpush3.bf16.msra.mxu1 %v5588_v51 }
 0xaf9   :  { %2520 = vmatprep.subr.bf16.mxu0 %v5591_v19  ;;  %3864 = vmatprep.subr.bf16.mxu1 %v5986_v22 }
 0xafc   :  { %2521 = vmatpush1.bf16.msra.mxu0 %v5595_v4  ;;  %3865 = vmatpush3.bf16.msra.mxu1 %v5598_v52 }
 0xafd   :  { %2522 = vmatprep.subr.bf16.mxu0 %v5601_v58  ;;  %3866 = vmatprep.subr.bf16.mxu1 %v5986_v22 }
 0xb00   :  { %2523 = vmatpush1.bf16.msra.mxu0 %v5605_v18  ;;  %3867 = vmatpush3.bf16.msra.mxu1 %v5608_v7 }
 0xb01   :  { %2524 = vmatprep.subr.bf16.mxu0 %v5611_v28  ;;  %3868 = vmatprep.subr.bf16.mxu1 %v5986_v22 }
 0xb04   :  { %2525 = vmatpush1.bf16.msra.mxu0 %v5615_v0  ;;  %3869 = vmatpush3.bf16.msra.mxu1 %v5618_v8 }
 0xb05   :  { %2591 = vmatprep.subr.bf16.mxu0 %v5143_v29  ;;  %3874 = vmatprep.subr.bf16.mxu1 %v5986_v22  ;;  %v2365_v29 = vadd.f32 %v5531_v47, %v5238_v48 }
 0xb07   :  { %2543 = vmatmul.mubr.bf16.vlgmr.msra.gmra.mxu0 %v6045_v23  ;;  %3871 = vmatmul.mubr.bf16.vlgmr.msra.gmra.mxu1 %v6045_v23 }
 0xb08   :  { %2592 = vmatpush1.bf16.msra.mxu0 %v5145_v31  ;;  %3875 = vmatpush3.bf16.msra.mxu1 %v5147_v32 }
 0xb09   :  { %2593 = vmatprep.subr.bf16.mxu0 %v5152_v33  ;;  %3876 = vmatprep.subr.bf16.mxu1 %v5986_v22 }
 0xb0a   :  { %2623 = vmatprep.mubr.bf16.mxu0 %v5987_v21  ;;  %3890 = vmatprep.mubr.msk.bf16.mxu1 %vm4456_vm0, %v5986_v22 }
 0xb0c   :  { %2594 = vmatpush1.bf16.msra.mxu0 %v5155_v55  ;;  %3877 = vmatpush3.bf16.msra.mxu1 %v5157_v34 }
 0xb0d   :  { %2595 = vmatprep.subr.bf16.mxu0 %v5162_v35  ;;  %3878 = vmatprep.subr.bf16.mxu1 %v5986_v22 }
 0xb10   :  { %2596 = vmatpush1.bf16.msra.mxu0 %v5165_v36  ;;  %3879 = vmatpush3.bf16.msra.mxu1 %v5167_v38 }
 0xb11   :  { %2597 = vmatprep.subr.bf16.mxu0 %v5172_v39  ;;  %3880 = vmatprep.subr.bf16.mxu1 %v5986_v22 }
 0xb14   :  { %2598 = vmatpush1.bf16.msra.mxu0 %v5175_v40  ;;  %3881 = vmatpush3.bf16.msra.mxu1 %v5177_v41  ;;  %v2367_v41 = vadd.f32 %v5535_v63, %v5244_v13 }
 0xb15   :  { %2599 = vmatprep.subr.bf16.mxu0 %v5182_v42  ;;  %3882 = vmatprep.subr.bf16.mxu1 %v5986_v22 }
 0xb18   :  { %2600 = vmatpush1.bf16.msra.mxu0 %v5185_v43  ;;  %3883 = vmatpush3.bf16.msra.mxu1 %v6035_v14 }
 0xb19   :  { %2601 = vmatprep.subr.bf16.mxu0 %v6036_v2  ;;  %3884 = vmatprep.subr.bf16.mxu1 %v5986_v22 }
 0xb1c   :  { %2602 = vmatpush1.bf16.msra.mxu0 %v6037_v37  ;;  %3885 = vmatpush3.bf16.msra.mxu1 %v6038_v26 }
 0xb1d   :  { %2603 = vmatprep.subr.bf16.mxu0 %v6039_v16  ;;  %3886 = vmatprep.subr.bf16.mxu1 %v5986_v22  ;;  %v2406_v16 = vadd.f32 %v5533_v45, %v5251_v10 }
 0xb20   :  { %2604 = vmatpush1.bf16.msra.mxu0 %v6040_v6  ;;  %3887 = vmatpush3.bf16.msra.mxu1 %v6041_v30 }
 0xb21   :  { %2605 = vmatprep.subr.bf16.mxu0 %v6042_v27  ;;  %3888 = vmatprep.subr.bf16.mxu1 %v5986_v22 }
 0xb24   :  { %2606 = vmatpush1.bf16.msra.mxu0 %v6043_v3  ;;  %3889 = vmatpush3.bf16.msra.mxu1 %v6044_v54 }
 0xb25   :  { %2690 = vmatprep.subr.bf16.mxu0 %v5520_v17  ;;  %3894 = vmatprep.subr.bf16.mxu1 %v5986_v22 }
 0xba7   :  { %v2445_v31 = vpop.f32.mrf.mxu0  ;;  %v2486_v32 = vpop.f32.mrf.mxu1 }
 0xba8   :  { %v2492_v33 = vadd.f32 %v2445_v31, %v2365_v29  ;;  %v2502_v26 = vadd.f32 %v5256_v20, %v2486_v32 }
 0xba9   :  { %v2447_v55 = vpop.f32.mrf.mxu0  ;;  %v3852_v34 = vpop.f32.mrf.mxu1 }
 0xbaa   :  { %v2494_v35 = vmul.f32 0.5, %v2492_v33  ;;  %v2493_v42 = vadd.f32 %v2447_v55, %v2367_v41  ;;  %v6046_v33 = vld [vmem:[#allocation28_spill] sm:$0xff]  ;;  %v5743_v41 = vld [vmem:[#allocation10 + $0x80] ss:$12 sps:$4 sm:$0xff]  }
 0xbab   :  { %v2449_v36 = vpop.f32.mrf.mxu0  ;;  %v2489_v38 = vpop.f32.mrf.mxu1  ;;  %v5717_v55 = vld [vmem:[#allocation10 + $0xa8] ss:$12 sps:$4 sm:$0xff]   ;;  %v5720_v34 = vld [vmem:[#allocation10 + $0xb0] ss:$12 sps:$4 sm:$0xff]  }
 0xbac   :  { %4220 = vtanh.f32 %v2494_v35  ;;  %v2495_v43 = vmul.f32 0.5, %v2493_v42  ;;  %v5723_v35 = vld [vmem:[#allocation10 + $0x94] ss:$12 sps:$4 sm:$0xff]   ;;  %v5730_v36 = vld [vmem:[#allocation10 + $0x90] ss:$12 sps:$4 sm:$0xff]  }
 0xbad   :  { %v2450_v39 = vpop.f32.mrf.mxu0  ;;  %v3853_v40 = vpop.f32.mrf.mxu1  ;;  %v5733_v38 = vld [vmem:[#allocation10 + $0x98] ss:$12 sps:$4 sm:$0xff]  }
 0xbae   :  { %4222 = vtanh.f32 %v2495_v43  ;;  %v5736_v39 = vld [vmem:[#allocation10 + $0x7c] ss:$12 sps:$4 sm:$0xff]   ;;  %v5740_v40 = vld [vmem:[#allocation10 + $0x78] ss:$12 sps:$4 sm:$0xff]   ;;  %v5750_v43 = vld [vmem:[#allocation10 + $0x60] ss:$12 sps:$4 sm:$0xff]  }
 0xbaf   :  { %v5746_v42 = vld [vmem:[#allocation10 + $0x64] ss:$12 sps:$4 sm:$0xff]  }
 0xbb9   :  { %v4221_v14 = vpop.eup %4220 }
 0xbba   :  { %v2498_v2 = vmul.f32 0.5, %v4221_v14  ;;  %v5753_v14 = vld [vmem:[#allocation10 + $0x68] ss:$12 sps:$4 sm:$0xff]  }
 0xbbb   :  { %v4223_v54 = vpop.eup %4222 }
 0xbbc   :  { %v2500_v37 = vadd.f32 0.5, %v2498_v2  ;;  %v2499_v24 = vmul.f32 0.5, %v4223_v54  ;;  %v5756_v2 = vld [vmem:[#allocation10 + $0x4c] ss:$12 sps:$4 sm:$0xff]   ;;  %v5776_v54 = vld [vmem:[#allocation10 + $0x1c] ss:$12 sps:$4 sm:$0xff]  }
 0xbbd   :  { %6050 = vst [vmem:[#allocation24_spill] sm:$0xff] %v5776_v54 }
 0xbbe   :  { %v2503_v6 = vmul.f32 %v2502_v26, %v2500_v37  ;;  %v2501_v23 = vadd.f32 0.5, %v2499_v24  ;;  %v5760_v37 = vld [vmem:[#allocation10 + $0x48] ss:$12 sps:$4 sm:$0xff]   ;;  %v5763_v26 = vld [vmem:[#allocation10 + $0x50] ss:$12 sps:$4 sm:$0xff]  }
 0xbbf   :  { %v5790_v24 = vld [vmem:[#allocation10] ss:$12 sps:$4 sm:$0xff]  }
 0xbc0   :  { %v2504_v30 = vadd.f32 %v2503_v6, %v2406_v16  ;;  %v5766_v16 = vld [vmem:[#allocation10 + $0x34] ss:$12 sps:$4 sm:$0xff]   ;;  %v5770_v6 = vld [vmem:[#allocation10 + $0x30] ss:$12 sps:$4 sm:$0xff]   ;;  %6054 = vst [vmem:[#allocation29_spill] sm:$0xff] %v5790_v24 }
 0xbc1   :  { %6047 = vst [vmem:[#allocation23_spill] sm:$0xff] %v5766_v16  ;;  %6048 = vst [vmem:[#allocation21_spill] sm:$0xff] %v5770_v6 }
 0xbc2   :  { %4224 = vtanh.f32 %v2504_v30  ;;  %v5773_v30 = vld [vmem:[#allocation10 + $0x38] ss:$12 sps:$4 sm:$0xff]  }
 0xbc3   :  { %6049 = vst [vmem:[#allocation19_spill] sm:$0xff] %v5773_v30 }
 0xbc7   :  { %v5667_v27 = vpop.f32.mrf.mxu0  ;;  %v5669_v3 = vpop.f32.mrf.mxu1 }
 0xbc9   :  { %v5671_v47 = vpop.f32.mrf.mxu0  ;;  %v3872_v63 = vpop.f32.mrf.mxu1 }
 0xbca   :  { %v5780_v63 = vld [vmem:[#allocation10 + $0x18] ss:$12 sps:$4 sm:$0xff]  }
 0xbcb   :  { %v2548_v56 = vpop.f32.mrf.mxu0  ;;  %v2588_v60 = vpop.f32.mrf.mxu1  ;;  %6051 = vst [vmem:[#allocation27_spill] sm:$0xff] %v5780_v63 }
 0xbcc   :  { %v5783_v56 = vld [vmem:[#allocation10 + $0x20] ss:$12 sps:$4 sm:$0xff]   ;;  %v5786_v60 = vld [vmem:[#allocation10 + $0x4] ss:$12 sps:$4 sm:$0xff]  }
 0xbcd   :  { %v2549_v44 = vpop.f32.mrf.mxu0  ;;  %v3873_v20 = vpop.f32.mrf.mxu1  ;;  %6052 = vst [vmem:[#allocation25_spill] sm:$0xff] %v5783_v56  ;;  %6053 = vst [vmem:[#allocation20_spill] sm:$0xff] %v5786_v60 }
 0xbce   :  { %v5793_v44 = vld [vmem:[#allocation10 + $0x8] ss:$12 sps:$4 sm:$0xff]   ;;  %v2545_v20 = vadd.f32 %v5667_v27, %v5238_v48  ;;  %v5805_v27 = vld [vmem:[%s5927_s8] ss:$0 sm:$0xff] }
 0xbcf   :  { %v4225_v59 = vpop.eup %4224  ;;  %6055 = vst [vmem:[#allocation30_spill] sm:$0xff] %v5793_v44 }
 0xbd0   :  { %v2506_v45 = vsub.f32 %v5538_v62, %v4225_v59  ;;  %v5711_v62 = vld [vmem:[#allocation10 + $0xac] ss:$12 sps:$4 sm:$0xff]  }
 0xbd2   :  { %v2507_v29 = vmul.f32 %v2506_v45, %v2501_v23 }
 0xbd4   :  { %v5674_v31 = vadd.f32 %v4225_v59, %v2507_v29 }
 0xbd6   :  { %v2509_v32 = vpack.c.bf16 %v5674_v31, %v5674_v31 }
 0xbd8   :  { %2624 = vmatmul.mubr.bf16.vlgmr.msra.gmra.mxu0 %v2509_v32  ;;  %3891 = vmatmul.mubr.bf16.vlgmr.msra.gmra.mxu1 %v2509_v32 }
 0xbd9   :  { %2691 = vmatpush1.bf16.msra.mxu0 %v5542_v15  ;;  %3895 = vmatpush3.bf16.msra.mxu1 %v5545_v25 }
 0xbda   :  { %2692 = vmatprep.subr.bf16.mxu0 %v5548_v57  ;;  %3896 = vmatprep.subr.bf16.mxu1 %v5986_v22 }
 0xbdb   :  { %2722 = vmatprep.mubr.bf16.mxu0 %v5987_v21  ;;  %3910 = vmatprep.mubr.msk.bf16.mxu1 %vm4456_vm0, %v5986_v22 }
 0xbdd   :  { %2693 = vmatpush1.bf16.msra.mxu0 %v5555_v46  ;;  %3897 = vmatpush3.bf16.msra.mxu1 %v5558_v61 }
 0xbde   :  { %2694 = vmatprep.subr.bf16.mxu0 %v5561_v1  ;;  %3898 = vmatprep.subr.bf16.mxu1 %v5986_v22 }
 0xbe1   :  { %2695 = vmatpush1.bf16.msra.mxu0 %v5565_v5  ;;  %3899 = vmatpush3.bf16.msra.mxu1 %v5568_v53 }
 0xbe2   :  { %2696 = vmatprep.subr.bf16.mxu0 %v5571_v12  ;;  %3900 = vmatprep.subr.bf16.mxu1 %v5986_v22 }
 0xbe5   :  { %2697 = vmatpush1.bf16.msra.mxu0 %v5575_v11  ;;  %3901 = vmatpush3.bf16.msra.mxu1 %v5578_v50 }
 0xbe6   :  { %2698 = vmatprep.subr.bf16.mxu0 %v5581_v49  ;;  %3902 = vmatprep.subr.bf16.mxu1 %v5986_v22 }
 0xbe9   :  { %2699 = vmatpush1.bf16.msra.mxu0 %v5585_v9  ;;  %3903 = vmatpush3.bf16.msra.mxu1 %v5588_v51 }
 0xbea   :  { %2700 = vmatprep.subr.bf16.mxu0 %v5591_v19  ;;  %3904 = vmatprep.subr.bf16.mxu1 %v5986_v22 }
 0xbed   :  { %2701 = vmatpush1.bf16.msra.mxu0 %v5595_v4  ;;  %3905 = vmatpush3.bf16.msra.mxu1 %v5598_v52 }
 0xbee   :  { %2702 = vmatprep.subr.bf16.mxu0 %v5601_v58  ;;  %3906 = vmatprep.subr.bf16.mxu1 %v5986_v22 }
 0xbf1   :  { %2703 = vmatpush1.bf16.msra.mxu0 %v5605_v18  ;;  %3907 = vmatpush3.bf16.msra.mxu1 %v5608_v7 }
 0xbf2   :  { %2704 = vmatprep.subr.bf16.mxu0 %v5611_v28  ;;  %3908 = vmatprep.subr.bf16.mxu1 %v5986_v22 }
 0xbf5   :  { %2705 = vmatpush1.bf16.msra.mxu0 %v5615_v0  ;;  %3909 = vmatpush3.bf16.msra.mxu1 %v5618_v8 }
 0xbf6   :  { %2771 = vmatprep.subr.bf16.mxu0 %v5711_v62  ;;  %3914 = vmatprep.subr.bf16.mxu1 %v5986_v22 }
 0xbf8   :  { %2723 = vmatmul.mubr.bf16.vlgmr.msra.gmra.mxu0 %v6046_v33  ;;  %3911 = vmatmul.mubr.bf16.vlgmr.msra.gmra.mxu1 %v6046_v33 }
 0xbf9   :  { %2772 = vmatpush1.bf16.msra.mxu0 %v5717_v55  ;;  %3915 = vmatpush3.bf16.msra.mxu1 %v5720_v34 }
 0xbfa   :  { %2773 = vmatprep.subr.bf16.mxu0 %v5723_v35  ;;  %3916 = vmatprep.subr.bf16.mxu1 %v5986_v22 }
 0xbfb   :  { %2803 = vmatprep.mubr.bf16.mxu0 %v5987_v21  ;;  %3930 = vmatprep.mubr.msk.bf16.mxu1 %vm4456_vm0, %v5986_v22 }
 0xbfd   :  { %2774 = vmatpush1.bf16.msra.mxu0 %v5730_v36  ;;  %3917 = vmatpush3.bf16.msra.mxu1 %v5733_v38 }
 0xbfe   :  { %2775 = vmatprep.subr.bf16.mxu0 %v5736_v39  ;;  %3918 = vmatprep.subr.bf16.mxu1 %v5986_v22 }
 0xc01   :  { %2776 = vmatpush1.bf16.msra.mxu0 %v5740_v40  ;;  %3919 = vmatpush3.bf16.msra.mxu1 %v5743_v41 }
 0xc02   :  { %2777 = vmatprep.subr.bf16.mxu0 %v5746_v42  ;;  %3920 = vmatprep.subr.bf16.mxu1 %v5986_v22 }
 0xc05   :  { %2778 = vmatpush1.bf16.msra.mxu0 %v5750_v43  ;;  %3921 = vmatpush3.bf16.msra.mxu1 %v5753_v14 }
 0xc06   :  { %2779 = vmatprep.subr.bf16.mxu0 %v5756_v2  ;;  %3922 = vmatprep.subr.bf16.mxu1 %v5986_v22 }
 0xc09   :  { %2780 = vmatpush1.bf16.msra.mxu0 %v5760_v37  ;;  %3923 = vmatpush3.bf16.msra.mxu1 %v5763_v26 }
 0xc0a   :  { %2781 = vmatprep.subr.bf16.mxu0 %v5766_v16  ;;  %3924 = vmatprep.subr.bf16.mxu1 %v5986_v22 }
 0xc0d   :  { %2782 = vmatpush1.bf16.msra.mxu0 %v5770_v6  ;;  %3925 = vmatpush3.bf16.msra.mxu1 %v5773_v30 }
 0xc0e   :  { %2783 = vmatprep.subr.bf16.mxu0 %v5776_v54  ;;  %3926 = vmatprep.subr.bf16.mxu1 %v5986_v22 }
 0xc11   :  { %2784 = vmatpush1.bf16.msra.mxu0 %v5780_v63  ;;  %3927 = vmatpush3.bf16.msra.mxu1 %v5783_v56 }
 0xc12   :  { %2785 = vmatprep.subr.bf16.mxu0 %v5786_v60  ;;  %3928 = vmatprep.subr.bf16.mxu1 %v5986_v22 }
 0xc15   :  { %2786 = vmatpush1.bf16.msra.mxu0 %v5790_v24  ;;  %3929 = vmatpush3.bf16.msra.mxu1 %v5793_v44  ;;  %v2547_v44 = vadd.f32 %v5671_v47, %v5244_v13 }
 0xc16   :  { %2870 = vmatprep.subr.bf16.mxu0 %v5520_v17  ;;  %3934 = vmatprep.subr.bf16.mxu1 %v5986_v22 }
 0xc98   :  { %v2625_v59 = vpop.f32.mrf.mxu0  ;;  %v2666_v23 = vpop.f32.mrf.mxu1 }
 0xc99   :  { %v2672_v45 = vadd.f32 %v2625_v59, %v2545_v20  ;;  %v2682_v20 = vadd.f32 %v5805_v27, %v2666_v23 }
 0xc9a   :  { %v2627_v29 = vpop.f32.mrf.mxu0  ;;  %v3892_v32 = vpop.f32.mrf.mxu1 }
 0xc9b   :  { %v2674_v33 = vmul.f32 0.5, %v2672_v45  ;;  %v2673_v17 = vadd.f32 %v2627_v29, %v2547_v44 }
 0xc9c   :  { %v2629_v60 = vpop.f32.mrf.mxu0  ;;  %v2669_v56 = vpop.f32.mrf.mxu1 }
 0xc9d   :  { %4226 = vtanh.f32 %v2674_v33  ;;  %v2675_v54 = vmul.f32 0.5, %v2673_v17  ;;  %v2586_v56 = vadd.f32 %v5669_v3, %v5251_v10 }
 0xc9e   :  { %v2630_v24 = vpop.f32.mrf.mxu0  ;;  %v3893_v63 = vpop.f32.mrf.mxu1 }
 0xc9f   :  { %4228 = vtanh.f32 %v2675_v54 }
 0xcaa   :  { %v4227_v30 = vpop.eup %4226 }
 0xcab   :  { %v2678_v6 = vmul.f32 0.5, %v4227_v30 }
 0xcac   :  { %v4229_v30 = vpop.eup %4228 }
 0xcad   :  { %v2680_v16 = vadd.f32 0.5, %v2678_v6  ;;  %v2679_v29 = vmul.f32 0.5, %v4229_v30 }
 0xcaf   :  { %v2683_v63 = vmul.f32 %v2682_v20, %v2680_v16  ;;  %v2681_v33 = vadd.f32 0.5, %v2679_v29  ;;  %v4142_v29 = vld [vmem:[#allocation11 + $0x28] sm:$0xff]  }
 0xcb1   :  { %v2684_v60 = vadd.f32 %v2683_v63, %v2586_v56 }
 0xcb3   :  { %4230 = vtanh.f32 %v2684_v60 }
 0xcb8   :  { %v5810_v47 = vpop.f32.mrf.mxu0  ;;  %v5812_v24 = vpop.f32.mrf.mxu1 }
 0xcba   :  { %v5814_v6 = vpop.f32.mrf.mxu0  ;;  %v3912_v44 = vpop.f32.mrf.mxu1 }
 0xcbc   :  { %v2728_v59 = vpop.f32.mrf.mxu0  ;;  %v2768_v45 = vpop.f32.mrf.mxu1 }
 0xcbd   :  { %v4140_v59 = vld [vmem:[#allocation11 + $0x38] sm:$0xff]   ;;  %v4141_v45 = vld [vmem:[#allocation11 + $0x30] sm:$0xff]  }
 0xcbe   :  { %v2729_v32 = vpop.f32.mrf.mxu0  ;;  %v3913_v23 = vpop.f32.mrf.mxu1 }
 0xcbf   :  { %v4143_v32 = vld [vmem:[#allocation11 + $0x20] sm:$0xff]   ;;  %v4144_v23 = vld [vmem:[#allocation11 + $0x18] sm:$0xff]  }
 0xcc0   :  { %v4231_v54 = vpop.eup %4230 }
 0xcc1   :  { %v2686_v3 = vsub.f32 %v5674_v31, %v4231_v54 }
 0xcc3   :  { %v2687_v16 = vmul.f32 %v2686_v3, %v2681_v33  ;;  %v4146_v33 = vld [vmem:[#allocation11 + $0x8] sm:$0xff]   ;;  %v4147_v3 = vld [vmem:[#allocation11] sm:$0xff]  }
 0xcc5   :  { %v5817_v17 = vadd.f32 %v4231_v54, %v2687_v16  ;;  %v4145_v54 = vld [vmem:[#allocation11 + $0x10] sm:$0xff]  }
 0xcc7   :  { %v2689_v20 = vpack.c.bf16 %v5817_v17, %v5817_v17 }
 0xcc9   :  { %2804 = vmatmul.mubr.bf16.vlgmr.msra.gmra.mxu0 %v2689_v20  ;;  %3931 = vmatmul.mubr.bf16.vlgmr.msra.gmra.mxu1 %v2689_v20 }
 0xcca   :  { %2871 = vmatpush1.bf16.msra.mxu0 %v5542_v15  ;;  %3935 = vmatpush3.bf16.msra.mxu1 %v5545_v25  ;;  %v6056_v15 = vld [vmem:[#allocation22_spill] sm:$0xff] }
 0xccb   :  { %2872 = vmatprep.subr.bf16.mxu0 %v5548_v57  ;;  %3936 = vmatprep.subr.bf16.mxu1 %v5986_v22  ;;  %v1346_v25 = vpack.c.bf16 %v6056_v15, %v6056_v15  ;;  %v6058_v57 = vld [vmem:[#allocation21_spill] sm:$0xff] }
 0xccc   :  { %2902 = vmatprep.mubr.bf16.mxu0 %v5987_v21  ;;  %3950 = vmatprep.mubr.msk.bf16.mxu1 %vm4456_vm0, %v5986_v22 }
 0xcce   :  { %2873 = vmatpush1.bf16.msra.mxu0 %v5555_v46  ;;  %3937 = vmatpush3.bf16.msra.mxu1 %v5558_v61  ;;  %v6059_v46 = vld [vmem:[#allocation19_spill] sm:$0xff]  ;;  %v6060_v61 = vld [vmem:[#allocation24_spill] sm:$0xff] }
 0xccf   :  { %2874 = vmatprep.subr.bf16.mxu0 %v5561_v1  ;;  %3938 = vmatprep.subr.bf16.mxu1 %v5986_v22  ;;  %v6061_v1 = vld [vmem:[#allocation27_spill] sm:$0xff] }
 0xcd2   :  { %2875 = vmatpush1.bf16.msra.mxu0 %v5565_v5  ;;  %3939 = vmatpush3.bf16.msra.mxu1 %v5568_v53  ;;  %v6062_v5 = vld [vmem:[#allocation25_spill] sm:$0xff]  ;;  %v6063_v53 = vld [vmem:[#allocation20_spill] sm:$0xff] }
 0xcd3   :  { %2876 = vmatprep.subr.bf16.mxu0 %v5571_v12  ;;  %3940 = vmatprep.subr.bf16.mxu1 %v5986_v22  ;;  %v6064_v12 = vld [vmem:[#allocation29_spill] sm:$0xff] }
 0xcd6   :  { %2877 = vmatpush1.bf16.msra.mxu0 %v5575_v11  ;;  %3941 = vmatpush3.bf16.msra.mxu1 %v5578_v50  ;;  %v6065_v11 = vld [vmem:[#allocation30_spill] sm:$0xff]  ;;  %v2725_v50 = vadd.f32 %v5810_v47, %v5238_v48 }
 0xcd7   :  { %2878 = vmatprep.subr.bf16.mxu0 %v5581_v49  ;;  %3942 = vmatprep.subr.bf16.mxu1 %v5986_v22 }
 0xcda   :  { %2879 = vmatpush1.bf16.msra.mxu0 %v5585_v9  ;;  %3943 = vmatpush3.bf16.msra.mxu1 %v5588_v51 }
 0xcdb   :  { %2880 = vmatprep.subr.bf16.mxu0 %v5591_v19  ;;  %3944 = vmatprep.subr.bf16.mxu1 %v5986_v22 }
 0xcde   :  { %2881 = vmatpush1.bf16.msra.mxu0 %v5595_v4  ;;  %3945 = vmatpush3.bf16.msra.mxu1 %v5598_v52 }
 0xcdf   :  { %2882 = vmatprep.subr.bf16.mxu0 %v5601_v58  ;;  %3946 = vmatprep.subr.bf16.mxu1 %v5986_v22 }
 0xce2   :  { %2883 = vmatpush1.bf16.msra.mxu0 %v5605_v18  ;;  %3947 = vmatpush3.bf16.msra.mxu1 %v5608_v7 }
 0xce3   :  { %2884 = vmatprep.subr.bf16.mxu0 %v5611_v28  ;;  %3948 = vmatprep.subr.bf16.mxu1 %v5986_v22 }
 0xce6   :  { %2885 = vmatpush1.bf16.msra.mxu0 %v5615_v0  ;;  %3949 = vmatpush3.bf16.msra.mxu1 %v5618_v8  ;;  %v2727_v0 = vadd.f32 %v5814_v6, %v5244_v13 }
 0xce7   :  { %2951 = vmatprep.subr.bf16.mxu0 %v5711_v62  ;;  %3954 = vmatprep.subr.bf16.mxu1 %v5986_v22 }
 0xce9   :  { %2903 = vmatmul.mubr.bf16.vlgmr.msra.gmra.mxu0 %v1346_v25  ;;  %3951 = vmatmul.mubr.bf16.vlgmr.msra.gmra.mxu1 %v1346_v25 }
 0xcea   :  { %2952 = vmatpush1.bf16.msra.mxu0 %v5717_v55  ;;  %3955 = vmatpush3.bf16.msra.mxu1 %v5720_v34 }
 0xceb   :  { %2953 = vmatprep.subr.bf16.mxu0 %v5723_v35  ;;  %3956 = vmatprep.subr.bf16.mxu1 %v5986_v22 }
 0xcec   :  { %2983 = vmatprep.mubr.bf16.mxu0 %v5987_v21  ;;  %3970 = vmatprep.mubr.msk.bf16.mxu1 %vm4456_vm0, %v5986_v22  ;;  %v6057_v21 = vld [vmem:[#allocation23_spill] sm:$0xff] }
 0xcee   :  { %2954 = vmatpush1.bf16.msra.mxu0 %v5730_v36  ;;  %3957 = vmatpush3.bf16.msra.mxu1 %v5733_v38  ;;  %v2766_v36 = vadd.f32 %v5812_v24, %v5251_v10 }
 0xcef   :  { %2955 = vmatprep.subr.bf16.mxu0 %v5736_v39  ;;  %3958 = vmatprep.subr.bf16.mxu1 %v5986_v22 }
 0xcf2   :  { %2956 = vmatpush1.bf16.msra.mxu0 %v5740_v40  ;;  %3959 = vmatpush3.bf16.msra.mxu1 %v5743_v41 }
 0xcf3   :  { %2957 = vmatprep.subr.bf16.mxu0 %v5746_v42  ;;  %3960 = vmatprep.subr.bf16.mxu1 %v5986_v22 }
 0xcf6   :  { %2958 = vmatpush1.bf16.msra.mxu0 %v5750_v43  ;;  %3961 = vmatpush3.bf16.msra.mxu1 %v5753_v14 }
 0xcf7   :  { %2959 = vmatprep.subr.bf16.mxu0 %v5756_v2  ;;  %3962 = vmatprep.subr.bf16.mxu1 %v5986_v22 }
 0xcfa   :  { %2960 = vmatpush1.bf16.msra.mxu0 %v5760_v37  ;;  %3963 = vmatpush3.bf16.msra.mxu1 %v5763_v26 }
 0xcfb   :  { %2961 = vmatprep.subr.bf16.mxu0 %v6057_v21  ;;  %3964 = vmatprep.subr.bf16.mxu1 %v5986_v22 }
 0xcfe   :  { %2962 = vmatpush1.bf16.msra.mxu0 %v6058_v57  ;;  %3965 = vmatpush3.bf16.msra.mxu1 %v6059_v46 }
 0xcff   :  { %2963 = vmatprep.subr.bf16.mxu0 %v6060_v61  ;;  %3966 = vmatprep.subr.bf16.mxu1 %v5986_v22 }
 0xd02   :  { %2964 = vmatpush1.bf16.msra.mxu0 %v6061_v1  ;;  %3967 = vmatpush3.bf16.msra.mxu1 %v6062_v5 }
 0xd03   :  { %2965 = vmatprep.subr.bf16.mxu0 %v6063_v53  ;;  %3968 = vmatprep.subr.bf16.mxu1 %v5986_v22 }
 0xd06   :  { %2966 = vmatpush1.bf16.msra.mxu0 %v6064_v12  ;;  %3969 = vmatpush3.bf16.msra.mxu1 %v6065_v11 }
 0xd07   :  { %3974 = vmatprep.subr.bf16.mxu0 %v5986_v22 }
 0xd89   :  { %v2805_v49 = vpop.f32.mrf.mxu0  ;;  %v2846_v9 = vpop.f32.mrf.mxu1 }
 0xd8a   :  { %v2852_v51 = vadd.f32 %v2805_v49, %v2725_v50  ;;  %v2862_v35 = vadd.f32 %v5805_v27, %v2846_v9 }
 0xd8b   :  { %v2807_v19 = vpop.f32.mrf.mxu0  ;;  %v3932_v4 = vpop.f32.mrf.mxu1 }
 0xd8c   :  { %v2854_v52 = vmul.f32 0.5, %v2852_v51  ;;  %v2853_v8 = vadd.f32 %v2807_v19, %v2727_v0 }
 0xd8d   :  { %v2809_v58 = vpop.f32.mrf.mxu0  ;;  %v2849_v18 = vpop.f32.mrf.mxu1 }
 0xd8e   :  { %4232 = vtanh.f32 %v2854_v52  ;;  %v2855_v31 = vmul.f32 0.5, %v2853_v8  ;;  %v3282_v8 = vld [vmem:[%s5929_s10] ss:$0 sm:$0xff] }
 0xd8f   :  { %v2810_v7 = vpop.f32.mrf.mxu0  ;;  %v3933_v28 = vpop.f32.mrf.mxu1 }
 0xd90   :  { %4234 = vtanh.f32 %v2855_v31 }
 0xd9b   :  { %v4233_v62 = vpop.eup %4232 }
 0xd9c   :  { %v2858_v55 = vmul.f32 0.5, %v4233_v62 }
 0xd9d   :  { %v4235_v42 = vpop.eup %4234 }
 0xd9e   :  { %v2860_v34 = vadd.f32 0.5, %v2858_v55  ;;  %v2859_v26 = vmul.f32 0.5, %v4235_v42 }
 0xda0   :  { %v2863_v38 = vmul.f32 %v2862_v35, %v2860_v34  ;;  %v2861_v47 = vadd.f32 0.5, %v2859_v26 }
 0xda2   :  { %v2864_v39 = vadd.f32 %v2863_v38, %v2766_v36 }
 0xda4   :  { %4236 = vtanh.f32 %v2864_v39 }
 0xda9   :  { %v2904_v40 = vpop.f32.mrf.mxu0  ;;  %v2945_v41 = vpop.f32.mrf.mxu1 }
 0xdaa   :  { %v2905_v16 = vadd.f32 %v2904_v40, %v5238_v48  ;;  %v2946_v9 = vadd.f32 %v2945_v41, %v5251_v10 }
 0xdab   :  { %v2906_v43 = vpop.f32.mrf.mxu0  ;;  %v3952_v14 = vpop.f32.mrf.mxu1 }
 0xdac   :  { %v2907_v53 = vadd.f32 %v2906_v43, %v5244_v13 }
 0xdad   :  { %v2908_v2 = vpop.f32.mrf.mxu0  ;;  %v2948_v37 = vpop.f32.mrf.mxu1 }
 0xdaf   :  { %v2909_v56 = vpop.f32.mrf.mxu0  ;;  %v3953_v63 = vpop.f32.mrf.mxu1 }
 0xdb1   :  { %v4237_v60 = vpop.eup %4236 }
 0xdb2   :  { %v2866_v30 = vsub.f32 %v5817_v17, %v4237_v60 }
 0xdb4   :  { %v2867_v6 = vmul.f32 %v2866_v30, %v2861_v47 }
 0xdb6   :  { %v2868_v44 = vadd.f32 %v4237_v60, %v2867_v6 }
 0xdb8   :  { %v2869_v24 = vpack.c.bf16 %v2868_v44, %v2868_v44 }
 0xdba   :  { %2984 = vmatmul.mubr.bf16.vlgmr.msra.gmra.mxu0 %v2869_v24  ;;  %3971 = vmatmul.mubr.bf16.vlgmr.msra.gmra.mxu1 %v2869_v24 }
 0xdbb   :  { %3990 = vmatprep.mubr.msk.bf16.mxu0 %vm4456_vm0, %v5986_v22  ;;  %3975 = vmatpush3.bf16.msra.mxu0 %v4140_v59 }
 0xdbc   :  { %3976 = vmatprep.subr.bf16.mxu0 %v5986_v22 }
 0xdbf   :  { %3977 = vmatpush3.bf16.msra.mxu0 %v4141_v45 }
 0xdc0   :  { %3978 = vmatprep.subr.bf16.mxu0 %v5986_v22 }
 0xdc3   :  { %3979 = vmatpush3.bf16.msra.mxu0 %v4142_v29 }
 0xdc4   :  { %3980 = vmatprep.subr.bf16.mxu0 %v5986_v22 }
 0xdc7   :  { %3981 = vmatpush3.bf16.msra.mxu0 %v4143_v32 }
 0xdc8   :  { %3982 = vmatprep.subr.bf16.mxu0 %v5986_v22 }
 0xdcb   :  { %3983 = vmatpush3.bf16.msra.mxu0 %v4144_v23 }
 0xdcc   :  { %3984 = vmatprep.subr.bf16.mxu0 %v5986_v22 }
 0xdcf   :  { %3985 = vmatpush3.bf16.msra.mxu0 %v4145_v54 }
 0xdd0   :  { %3986 = vmatprep.subr.bf16.mxu0 %v5986_v22 }
 0xdd3   :  { %3987 = vmatpush3.bf16.msra.mxu0 %v4146_v33 }
 0xdd4   :  { %3988 = vmatprep.subr.bf16.mxu0 %v5986_v22 }
 0xdd7   :  { %3989 = vmatpush3.bf16.msra.mxu0 %v4147_v3 }
 0xe7a   :  { %v2985_v17 = vpop.f32.mrf.mxu0  ;;  %v3026_v20 = vpop.f32.mrf.mxu1 }
 0xe7b   :  { %v3032_v15 = vadd.f32 %v2985_v17, %v2905_v16  ;;  %v3042_v48 = vadd.f32 %v5805_v27, %v3026_v20 }
 0xe7c   :  { %v2987_v25 = vpop.f32.mrf.mxu0  ;;  %v3972_v21 = vpop.f32.mrf.mxu1 }
 0xe7d   :  { %v3034_v57 = vmul.f32 0.5, %v3032_v15  ;;  %v3033_v12 = vadd.f32 %v2987_v25, %v2907_v53 }
 0xe7e   :  { %v2989_v46 = vpop.f32.mrf.mxu0  ;;  %v3029_v61 = vpop.f32.mrf.mxu1 }
 0xe7f   :  { %4238 = vtanh.f32 %v3034_v57  ;;  %v3035_v11 = vmul.f32 0.5, %v3033_v12 }
 0xe80   :  { %v2990_v1 = vpop.f32.mrf.mxu0  ;;  %v3973_v5 = vpop.f32.mrf.mxu1 }
 0xe81   :  { %4240 = vtanh.f32 %v3035_v11 }
 0xe8c   :  { %v4239_v50 = vpop.eup %4238 }
 0xe8d   :  { %v3038_v22 = vmul.f32 0.5, %v4239_v50 }
 0xe8e   :  { %v4241_v4 = vpop.eup %4240 }
 0xe8f   :  { %v3040_v49 = vadd.f32 0.5, %v3038_v22  ;;  %v3039_v52 = vmul.f32 0.5, %v4241_v4 }
 0xe91   :  { %v3043_v51 = vmul.f32 %v3042_v48, %v3040_v49  ;;  %v3041_v18 = vadd.f32 0.5, %v3039_v52 }
 0xe93   :  { %v3044_v19 = vadd.f32 %v3043_v51, %v2946_v9 }
 0xe95   :  { %4242 = vtanh.f32 %v3044_v19 }
 0xea2   :  { %v4243_v58 = vpop.eup %4242 }
 0xea3   :  { %v3046_v7 = vsub.f32 %v2868_v44, %v4243_v58 }
 0xea5   :  { %v3047_v28 = vmul.f32 %v3046_v7, %v3041_v18 }
 0xea7   :  { %v3048_v13 = vadd.f32 %v4243_v58, %v3047_v28 }
 0xea9   :  { %v3049_v0 = vpack.c.bf16 %v3048_v13, %v3048_v13 }
 0xeab   :  { %3991 = vmatmul.mubr.bf16.vlgmr.msra.gmra.mxu0 %v3049_v0 }
 0xf6b   :  { %v3155_v27 = vpop.f32.mrf.mxu0 }
 0xf6c   :  { %v3156_v10 = vadd.f32 %v3282_v8, %v3155_v27 }
 0xf6d   :  { %v3992_v31 = vpop.f32.mrf.mxu0 }
 0xf6e   :  { %3161 = vst [vmem:[#allocation13] sm:$0xff] %v3156_v10 }
 0xf6f   :  { %v3158_v62 = vpop.f32.mrf.mxu0 }
 0xf70   :  { %4425 = shalt.err (!%p4422_p6)
}
 0xf71   :  { %3171 = dma.vmem_to_hbm [thread:$0]  %s3169_s17, 128, %s5930_s11, [#allocation4]   ;;  %v3993_v55 = vpop.f32.mrf.mxu0 }
 0xf72   :  { %4442 = dma.done.wait [#allocation4], 128  }
 0xf73   :  { %4443 = vsyncadd [#allocation4], 4294967168 }
 0xf74   :  { %3175 = vsyncpa [#allocation3], 1 }
 0xf75   :  { %3176 = vsyncpa [#allocation6], 1 }
 0xf76   :  { %3177 = vsyncpa [#allocation9], 1 }
 0xf77   :  { %3178 = vsyncpa [#allocation12], 1 }
 0xf78   :  { %3179 = vsyncpa [#allocation4], 1 }

</bundles_post_ra>
